<compile_context>
chip_gen: v7x
topology: tpu7x:2x2x1
jax: 0.10.0
libtpu: 0.0.40
codegen_flags: <defaults>
</compile_context>

<pallas_src>
import jax
import jax.numpy as jnp
from jax import lax
from jax.experimental import pallas as pl
from jax.experimental.pallas import tpu as pltpu

# ---- small CLIP-text-like hyperparameters --------------------------------
B = 2            # batch
S = 8            # sequence length (stands in for CLIP's 77)
D = 128          # hidden size (lane-dense: multiple of 128)
H = 4            # attention heads
HD = D // H      # head dim (32)
MLP = 4 * D      # MLP hidden (512)
LAYERS = 2       # number of transformer layers
VOCAB = 100      # vocab size
EPS = 1e-5
NEG_INF = -1e9


def _layer_norm(x, g, b):
    mu = jnp.mean(x, axis=-1, keepdims=True)
    var = jnp.mean((x - mu) ** 2, axis=-1, keepdims=True)
    return (x - mu) * lax.rsqrt(var + EPS) * g + b


# ---- fused Pallas kernel: all layers + final LN ---------------------------
def text_encoder_kernel(x_ref, ln1g_ref, ln1b_ref, wq_ref, bq_ref, wk_ref,
                        bk_ref, wv_ref, bv_ref, wo_ref, bo_ref, ln2g_ref,
                        ln2b_ref, w1_ref, b1_ref, w2_ref, b2_ref,
                        lnfg_ref, lnfb_ref, o_ref):
    x0 = x_ref[0]                                              # (S, D) f32

    # Hoisted constants, shared by every layer (feedback #5).
    row = lax.broadcasted_iota(jnp.int32, (S, S), 0)
    col = lax.broadcasted_iota(jnp.int32, (S, S), 1)
    causal = jnp.where(col <= row, 0.0, NEG_INF).astype(jnp.float32)   # (S, S)
    scale = jnp.float32(1.0 / (HD ** 0.5))

    def layer_body(l, x):
        # ---- causal self-attention (pre-LN) ----
        xn = _layer_norm(x, ln1g_ref[l], ln1b_ref[l])          # f32
        xb = xn.astype(jnp.bfloat16)                           # bf16 into MXU
        attn = jnp.zeros((S, D), jnp.float32)
        for h in range(H):          # per-head weights: no lane slicing / concat
            lh = l * H + h
            qh = jnp.dot(xb, wq_ref[lh],
                         preferred_element_type=jnp.float32) + bq_ref[lh]
            kh = jnp.dot(xb, wk_ref[lh],
                         preferred_element_type=jnp.float32) + bk_ref[lh]
            vh = jnp.dot(xb, wv_ref[lh],
                         preferred_element_type=jnp.float32) + bv_ref[lh]
            # scores: (S, HD) x (S, HD)^T, scale folded into q
            s = lax.dot_general(qh * scale, kh, (((1,), (1,)), ((), ())),
                                preferred_element_type=jnp.float32) + causal
            s = s - jnp.max(s, axis=-1, keepdims=True)
            p = jnp.exp(s)
            p = p * pl.reciprocal(jnp.sum(p, axis=-1, keepdims=True),
                                  approx=True)
            ctx = jnp.dot(p, vh, preferred_element_type=jnp.float32)   # (S, HD)
            # fold this head's slice of the output projection in directly
            attn = attn + jnp.dot(ctx.astype(jnp.bfloat16), wo_ref[lh],
                                  preferred_element_type=jnp.float32)
        x = x + attn + bo_ref[l]

        # ---- MLP (pre-LN, quick_gelu) ----
        xn2 = _layer_norm(x, ln2g_ref[l], ln2b_ref[l])
        hdn = jnp.dot(xn2.astype(jnp.bfloat16), w1_ref[l],
                      preferred_element_type=jnp.float32) + b1_ref[l]
        hdn = hdn * jax.nn.sigmoid(1.702 * hdn)                # quick_gelu, f32
        out = jnp.dot(hdn.astype(jnp.bfloat16), w2_ref[l],
                      preferred_element_type=jnp.float32) + b2_ref[l]
        return x + out

    x = lax.fori_loop(0, LAYERS, layer_body, x0, unroll=True)
    o_ref[0] = _layer_norm(x, lnfg_ref[...], lnfb_ref[...])


# ---- wrappers -------------------------------------------------------------
_WEIGHT_ORDER = ("ln1_g", "ln1_b", "wq", "bq", "wk", "bk", "wv", "bv",
                 "wo", "bo", "ln2_g", "ln2_b", "w1", "b1", "w2", "b2",
                 "lnf_g", "lnf_b")


def _full_spec(arr):
    nd = arr.ndim
    return pl.BlockSpec(arr.shape, lambda b, _nd=nd: (0,) * _nd)


def run_encoder(x, params):
    weights = [params[k] for k in _WEIGHT_ORDER]
    in_specs = [pl.BlockSpec((1, S, D), lambda b: (b, 0, 0))] + \
               [_full_spec(w) for w in weights]
    return pl.pallas_call(
        text_encoder_kernel,
        out_shape=jax.ShapeDtypeStruct((B, S, D), jnp.float32),
        grid_spec=pltpu.PrefetchScalarGridSpec(
            num_scalar_prefetch=0,
            grid=(B,),                      # "parallel" -> v7x 2 TCs split batch
            in_specs=in_specs,
            out_specs=pl.BlockSpec((1, S, D), lambda b: (b, 0, 0)),
        ),
        compiler_params=pltpu.CompilerParams(
            dimension_semantics=("parallel",)),
    )(x, *weights)


@jax.jit
def text_encoder_forward(token_ids, params):
    # Glue: embedding gather (+ positional embedding) stays in plain JAX.
    x = params["tok_emb"][token_ids] + params["pos_emb"][None, :, :]   # (B,S,D)
    hidden = run_encoder(x, params)
    return hidden[:, 0, :]                                             # (B, D)


# ---- deterministic parameter construction ---------------------------------
def init_params(key):
    keys = iter(jax.random.split(key, 24))

    def nrm(shape, s=0.02, dtype=jnp.float32):
        return (jax.random.normal(next(keys), shape, jnp.float32) * s).astype(dtype)

    bf16 = jnp.bfloat16
    return {
        "tok_emb": nrm((VOCAB, D)),
        "pos_emb": nrm((S, D)),
        "ln1_g": 1.0 + nrm((LAYERS, 1, D), 0.05),
        "ln1_b": nrm((LAYERS, 1, D), 0.05),
        # per-(layer, head) stacked projections: wq/wk/wv map D -> HD,
        # wo maps HD -> D (so head outputs are accumulated, never concatenated)
        "wq": nrm((LAYERS * H, D, HD), dtype=bf16),
        "bq": nrm((LAYERS * H, 1, HD)),
        "wk": nrm((LAYERS * H, D, HD), dtype=bf16),
        "bk": nrm((LAYERS * H, 1, HD)),
        "wv": nrm((LAYERS * H, D, HD), dtype=bf16),
        "bv": nrm((LAYERS * H, 1, HD)),
        "wo": nrm((LAYERS * H, HD, D), dtype=bf16),
        "bo": nrm((LAYERS, 1, D)),
        "ln2_g": 1.0 + nrm((LAYERS, 1, D), 0.05),
        "ln2_b": nrm((LAYERS, 1, D), 0.05),
        "w1": nrm((LAYERS, D, MLP), dtype=bf16),
        "b1": nrm((LAYERS, 1, MLP)),
        "w2": nrm((LAYERS, MLP, D), dtype=bf16),
        "b2": nrm((LAYERS, 1, D)),
        "lnf_g": 1.0 + nrm((1, D), 0.05),
        "lnf_b": nrm((1, D), 0.05),
    }


# ---- pure-JAX f32 reference (standard multi-head formulation) -------------
def reference_forward(token_ids, params):
    f32 = jnp.float32
    x = params["tok_emb"][token_ids] + params["pos_emb"][None, :, :]
    row = lax.broadcasted_iota(jnp.int32, (S, S), 0)
    col = lax.broadcasted_iota(jnp.int32, (S, S), 1)
    causal = jnp.where(col <= row, 0.0, NEG_INF)
    for l in range(LAYERS):
        sl = slice(l * H, (l + 1) * H)
        wq = jnp.transpose(params["wq"][sl].astype(f32), (1, 0, 2)).reshape(D, D)
        wk = jnp.transpose(params["wk"][sl].astype(f32), (1, 0, 2)).reshape(D, D)
        wv = jnp.transpose(params["wv"][sl].astype(f32), (1, 0, 2)).reshape(D, D)
        wo = params["wo"][sl].astype(f32).reshape(D, D)
        bq = params["bq"][sl].reshape(1, D)
        bk = params["bk"][sl].reshape(1, D)
        bv = params["bv"][sl].reshape(1, D)

        xn = _layer_norm(x, params["ln1_g"][l], params["ln1_b"][l])
        q = xn @ wq + bq
        k = xn @ wk + bk
        v = xn @ wv + bv
        q = q.reshape(B, S, H, HD).transpose(0, 2, 1, 3)
        k = k.reshape(B, S, H, HD).transpose(0, 2, 1, 3)
        v = v.reshape(B, S, H, HD).transpose(0, 2, 1, 3)
        s = jnp.einsum("bhqd,bhkd->bhqk", q, k) / (HD ** 0.5) + causal
        pattn = jax.nn.softmax(s, axis=-1)
        a = jnp.einsum("bhqk,bhkd->bhqd", pattn, v)
        a = a.transpose(0, 2, 1, 3).reshape(B, S, D)
        x = x + (a @ wo + params["bo"][l])

        xn2 = _layer_norm(x, params["ln2_g"][l], params["ln2_b"][l])
        hdn = xn2 @ params["w1"][l].astype(f32) + params["b1"][l]
        hdn = hdn * jax.nn.sigmoid(1.702 * hdn)
        x = x + (hdn @ params["w2"][l].astype(f32) + params["b2"][l])
    x = _layer_norm(x, params["lnf_g"], params["lnf_b"])
    return x[:, 0, :]


if __name__ == "__main__":
    key = jax.random.PRNGKey(0)
    k_tok, k_par = jax.random.split(key)
    token_ids = jax.random.randint(k_tok, (B, S), 0, VOCAB, dtype=jnp.int32)
    params = init_params(k_par)

    out = text_encoder_forward(token_ids, params)
    out = jax.block_until_ready(out)
    assert out.shape == (B, D), out.shape

    ref = reference_forward(token_ids, params)
    err = float(jnp.max(jnp.abs(out - ref)))
    # bf16 MXU inputs + approx reciprocal vs. a pure-f32 reference -> 2e-2 tol.
    assert jnp.allclose(out, ref, rtol=2e-2, atol=2e-2), err

    print("KERNEL_OK")
</pallas_src>

<mosaic_0001>
module attributes {stable_mosaic.version = 11 : i64} {
  func.func @text_encoder_kernel(%arg0: i32, %arg1: memref<1x8x128xf32, #tpu.memory_space<vmem>>, %arg2: memref<2x1x128xf32, #tpu.memory_space<vmem>>, %arg3: memref<2x1x128xf32, #tpu.memory_space<vmem>>, %arg4: memref<8x128x32xbf16, #tpu.memory_space<vmem>>, %arg5: memref<8x1x32xf32, #tpu.memory_space<vmem>>, %arg6: memref<8x128x32xbf16, #tpu.memory_space<vmem>>, %arg7: memref<8x1x32xf32, #tpu.memory_space<vmem>>, %arg8: memref<8x128x32xbf16, #tpu.memory_space<vmem>>, %arg9: memref<8x1x32xf32, #tpu.memory_space<vmem>>, %arg10: memref<8x32x128xbf16, #tpu.memory_space<vmem>>, %arg11: memref<2x1x128xf32, #tpu.memory_space<vmem>>, %arg12: memref<2x1x128xf32, #tpu.memory_space<vmem>>, %arg13: memref<2x1x128xf32, #tpu.memory_space<vmem>>, %arg14: memref<2x128x512xbf16, #tpu.memory_space<vmem>>, %arg15: memref<2x1x512xf32, #tpu.memory_space<vmem>>, %arg16: memref<2x512x128xbf16, #tpu.memory_space<vmem>>, %arg17: memref<2x1x128xf32, #tpu.memory_space<vmem>>, %arg18: memref<1x128xf32, #tpu.memory_space<vmem>>, %arg19: memref<1x128xf32, #tpu.memory_space<vmem>>, %arg20: memref<1x8x128xf32, #tpu.memory_space<vmem>>) attributes {dimension_semantics = [#tpu.dimension_semantics<parallel>], iteration_bounds = array<i64: 2>, scalar_prefetch = 0 : i64, scratch_operands = 0 : i64, tpu.core_type = #tpu.core_type<tc>, window_params = [{transform_indices = @transform_0, window_bounds = array<i64: 1, 8, 128>}, {pipeline_mode = #tpu.pipeline_mode<synchronous>, transform_indices = @transform_1, window_bounds = array<i64: 2, 1, 128>}, {pipeline_mode = #tpu.pipeline_mode<synchronous>, transform_indices = @transform_2, window_bounds = array<i64: 2, 1, 128>}, {pipeline_mode = #tpu.pipeline_mode<synchronous>, transform_indices = @transform_3, window_bounds = array<i64: 8, 128, 32>}, {pipeline_mode = #tpu.pipeline_mode<synchronous>, transform_indices = @transform_4, window_bounds = array<i64: 8, 1, 32>}, {pipeline_mode = #tpu.pipeline_mode<synchronous>, transform_indices = @transform_5, window_bounds = array<i64: 8, 128, 32>}, {pipeline_mode = #tpu.pipeline_mode<synchronous>, transform_indices = @transform_6, window_bounds = array<i64: 8, 1, 32>}, {pipeline_mode = #tpu.pipeline_mode<synchronous>, transform_indices = @transform_7, window_bounds = array<i64: 8, 128, 32>}, {pipeline_mode = #tpu.pipeline_mode<synchronous>, transform_indices = @transform_8, window_bounds = array<i64: 8, 1, 32>}, {pipeline_mode = #tpu.pipeline_mode<synchronous>, transform_indices = @transform_9, window_bounds = array<i64: 8, 32, 128>}, {pipeline_mode = #tpu.pipeline_mode<synchronous>, transform_indices = @transform_10, window_bounds = array<i64: 2, 1, 128>}, {pipeline_mode = #tpu.pipeline_mode<synchronous>, transform_indices = @transform_11, window_bounds = array<i64: 2, 1, 128>}, {pipeline_mode = #tpu.pipeline_mode<synchronous>, transform_indices = @transform_12, window_bounds = array<i64: 2, 1, 128>}, {pipeline_mode = #tpu.pipeline_mode<synchronous>, transform_indices = @transform_13, window_bounds = array<i64: 2, 128, 512>}, {pipeline_mode = #tpu.pipeline_mode<synchronous>, transform_indices = @transform_14, window_bounds = array<i64: 2, 1, 512>}, {pipeline_mode = #tpu.pipeline_mode<synchronous>, transform_indices = @transform_15, window_bounds = array<i64: 2, 512, 128>}, {pipeline_mode = #tpu.pipeline_mode<synchronous>, transform_indices = @transform_16, window_bounds = array<i64: 2, 1, 128>}, {pipeline_mode = #tpu.pipeline_mode<synchronous>, transform_indices = @transform_17, window_bounds = array<i64: 1, 128>}, {pipeline_mode = #tpu.pipeline_mode<synchronous>, transform_indices = @transform_18, window_bounds = array<i64: 1, 128>}, {transform_indices = @transform_19, window_bounds = array<i64: 1, 8, 128>}]} {
    %c0 = arith.constant 0 : index
    %c0_0 = arith.constant 0 : index
    %c0_1 = arith.constant 0 : index
    %0 = vector.load %arg1[%c0, %c0_0, %c0_1] : memref<1x8x128xf32, #tpu.memory_space<vmem>>, vector<1x8x128xf32>
    %1 = vector.shape_cast %0 : vector<1x8x128xf32> to vector<8x128xf32>
    %2 = tpu.iota {dimensions = array<i32: 0>} : vector<8x8xi32>
    %3 = tpu.iota {dimensions = array<i32: 1>} : vector<8x8xi32>
    %4 = arith.cmpi sle, %3, %2 : vector<8x8xi32>
    %cst = arith.constant 0.000000e+00 : f32
    %cst_2 = arith.constant -1.000000e+09 : f32
    %5 = vector.broadcast %cst : f32 to vector<8x8xf32>
    %6 = vector.broadcast %cst_2 : f32 to vector<8x8xf32>
    %7 = arith.select %4, %5, %6 : vector<8x8xi1>, vector<8x8xf32>
    %cst_3 = arith.constant 0.176776692 : f32
    %c0_i32 = arith.constant 0 : i32
    %8 = arith.index_cast %c0_i32 : i32 to index
    %c0_4 = arith.constant 0 : index
    %c0_5 = arith.constant 0 : index
    %9 = vector.load %arg2[%8, %c0_4, %c0_5] : memref<2x1x128xf32, #tpu.memory_space<vmem>>, vector<1x1x128xf32>
    %10 = vector.shape_cast %9 : vector<1x1x128xf32> to vector<1x128xf32>
    %11 = arith.index_cast %c0_i32 : i32 to index
    %c0_6 = arith.constant 0 : index
    %c0_7 = arith.constant 0 : index
    %12 = vector.load %arg3[%11, %c0_6, %c0_7] : memref<2x1x128xf32, #tpu.memory_space<vmem>>, vector<1x1x128xf32>
    %13 = vector.shape_cast %12 : vector<1x1x128xf32> to vector<1x128xf32>
    %cst_8 = arith.constant dense<0.000000e+00> : vector<8xf32>
    %14 = vector.multi_reduction <add>, %1, %cst_8 [1] : vector<8x128xf32> to vector<8xf32>
    %15 = vector.shape_cast %14 : vector<8xf32> to vector<8x1xf32>
    %cst_9 = arith.constant 1.280000e+02 : f32
    %16 = vector.broadcast %cst_9 : f32 to vector<8x1xf32>
    %17 = arith.divf %15, %16 : vector<8x1xf32>
    %18 = vector.broadcast %17 : vector<8x1xf32> to vector<8x128xf32>
    %19 = arith.subf %1, %18 : vector<8x128xf32>
    %20 = arith.mulf %19, %19 : vector<8x128xf32>
    %cst_10 = arith.constant dense<0.000000e+00> : vector<8xf32>
    %21 = vector.multi_reduction <add>, %20, %cst_10 [1] : vector<8x128xf32> to vector<8xf32>
    %22 = vector.shape_cast %21 : vector<8xf32> to vector<8x1xf32>
    %cst_11 = arith.constant 1.280000e+02 : f32
    %23 = vector.broadcast %cst_11 : f32 to vector<8x1xf32>
    %24 = arith.divf %22, %23 : vector<8x1xf32>
    %25 = vector.broadcast %17 : vector<8x1xf32> to vector<8x128xf32>
    %26 = arith.subf %1, %25 : vector<8x128xf32>
    %cst_12 = arith.constant 9.99999974E-6 : f32
    %27 = vector.broadcast %cst_12 : f32 to vector<8x1xf32>
    %28 = arith.addf %24, %27 : vector<8x1xf32>
    %29 = math.rsqrt %28 : vector<8x1xf32>
    %30 = vector.broadcast %29 : vector<8x1xf32> to vector<8x128xf32>
    %31 = arith.mulf %26, %30 : vector<8x128xf32>
    %32 = vector.broadcast %10 : vector<1x128xf32> to vector<8x128xf32>
    %33 = arith.mulf %31, %32 : vector<8x128xf32>
    %34 = vector.broadcast %13 : vector<1x128xf32> to vector<8x128xf32>
    %35 = arith.addf %33, %34 : vector<8x128xf32>
    %36 = arith.truncf %35 : vector<8x128xf32> to vector<8x128xbf16>
    %cst_13 = arith.constant 0.000000e+00 : f32
    %37 = vector.broadcast %cst_13 : f32 to vector<8x128xf32>
    %c4_i32 = arith.constant 4 : i32
    %38 = arith.muli %c0_i32, %c4_i32 : i32
    %c0_i32_14 = arith.constant 0 : i32
    %39 = arith.addi %38, %c0_i32_14 : i32
    %40 = arith.index_cast %39 : i32 to index
    %c0_15 = arith.constant 0 : index
    %c0_16 = arith.constant 0 : index
    %41 = vector.load %arg4[%40, %c0_15, %c0_16] : memref<8x128x32xbf16, #tpu.memory_space<vmem>>, vector<1x128x32xbf16>
    %42 = vector.shape_cast %41 : vector<1x128x32xbf16> to vector<128x32xbf16>
    %cst_17 = arith.constant dense<0.000000e+00> : vector<8x32xf32>
    %43 = tpu.matmul %36, %42, %cst_17 {dimension_numbers = #tpu.dot_dimension_numbers<[1], [0], [0], [1], [0, 0, 1, 1], [], []>} : vector<8x128xbf16>, vector<128x32xbf16>, vector<8x32xf32> -> vector<8x32xf32>
    %44 = arith.index_cast %39 : i32 to index
    %c0_18 = arith.constant 0 : index
    %c0_19 = arith.constant 0 : index
    %45 = vector.load %arg5[%44, %c0_18, %c0_19] : memref<8x1x32xf32, #tpu.memory_space<vmem>>, vector<1x1x32xf32>
    %46 = vector.shape_cast %45 : vector<1x1x32xf32> to vector<1x32xf32>
    %47 = vector.broadcast %46 : vector<1x32xf32> to vector<8x32xf32>
    %48 = arith.addf %43, %47 : vector<8x32xf32>
    %49 = arith.index_cast %39 : i32 to index
    %c0_20 = arith.constant 0 : index
    %c0_21 = arith.constant 0 : index
    %50 = vector.load %arg6[%49, %c0_20, %c0_21] : memref<8x128x32xbf16, #tpu.memory_space<vmem>>, vector<1x128x32xbf16>
    %51 = vector.shape_cast %50 : vector<1x128x32xbf16> to vector<128x32xbf16>
    %cst_22 = arith.constant dense<0.000000e+00> : vector<8x32xf32>
    %52 = tpu.matmul %36, %51, %cst_22 {dimension_numbers = #tpu.dot_dimension_numbers<[1], [0], [0], [1], [0, 0, 1, 1], [], []>} : vector<8x128xbf16>, vector<128x32xbf16>, vector<8x32xf32> -> vector<8x32xf32>
    %53 = arith.index_cast %39 : i32 to index
    %c0_23 = arith.constant 0 : index
    %c0_24 = arith.constant 0 : index
    %54 = vector.load %arg7[%53, %c0_23, %c0_24] : memref<8x1x32xf32, #tpu.memory_space<vmem>>, vector<1x1x32xf32>
    %55 = vector.shape_cast %54 : vector<1x1x32xf32> to vector<1x32xf32>
    %56 = vector.broadcast %55 : vector<1x32xf32> to vector<8x32xf32>
    %57 = arith.addf %52, %56 : vector<8x32xf32>
    %58 = arith.index_cast %39 : i32 to index
    %c0_25 = arith.constant 0 : index
    %c0_26 = arith.constant 0 : index
    %59 = vector.load %arg8[%58, %c0_25, %c0_26] : memref<8x128x32xbf16, #tpu.memory_space<vmem>>, vector<1x128x32xbf16>
    %60 = vector.shape_cast %59 : vector<1x128x32xbf16> to vector<128x32xbf16>
    %cst_27 = arith.constant dense<0.000000e+00> : vector<8x32xf32>
    %61 = tpu.matmul %36, %60, %cst_27 {dimension_numbers = #tpu.dot_dimension_numbers<[1], [0], [0], [1], [0, 0, 1, 1], [], []>} : vector<8x128xbf16>, vector<128x32xbf16>, vector<8x32xf32> -> vector<8x32xf32>
    %62 = arith.index_cast %39 : i32 to index
    %c0_28 = arith.constant 0 : index
    %c0_29 = arith.constant 0 : index
    %63 = vector.load %arg9[%62, %c0_28, %c0_29] : memref<8x1x32xf32, #tpu.memory_space<vmem>>, vector<1x1x32xf32>
    %64 = vector.shape_cast %63 : vector<1x1x32xf32> to vector<1x32xf32>
    %65 = vector.broadcast %64 : vector<1x32xf32> to vector<8x32xf32>
    %66 = arith.addf %61, %65 : vector<8x32xf32>
    %67 = vector.broadcast %cst_3 : f32 to vector<8x32xf32>
    %68 = arith.mulf %48, %67 : vector<8x32xf32>
    %cst_30 = arith.constant dense<0.000000e+00> : vector<8x8xf32>
    %69 = tpu.matmul %68, %57, %cst_30 {dimension_numbers = #tpu.dot_dimension_numbers<[1], [1], [0], [0], [0, 0, 1, 0], [], []>} : vector<8x32xf32>, vector<8x32xf32>, vector<8x8xf32> -> vector<8x8xf32>
    %70 = arith.addf %69, %7 : vector<8x8xf32>
    %cst_31 = arith.constant dense<0xFF800000> : vector<8xf32>
    %71 = vector.multi_reduction <maximumf>, %70, %cst_31 [1] : vector<8x8xf32> to vector<8xf32>
    %72 = vector.shape_cast %71 : vector<8xf32> to vector<8x1xf32>
    %73 = vector.broadcast %72 : vector<8x1xf32> to vector<8x8xf32>
    %74 = arith.subf %70, %73 : vector<8x8xf32>
    %75 = math.exp %74 : vector<8x8xf32>
    %cst_32 = arith.constant dense<0.000000e+00> : vector<8xf32>
    %76 = vector.multi_reduction <add>, %75, %cst_32 [1] : vector<8x8xf32> to vector<8xf32>
    %77 = vector.shape_cast %76 : vector<8xf32> to vector<8x1xf32>
    %78 = tpu.reciprocal %77 {approx = true} : vector<8x1xf32> -> vector<8x1xf32>
    %79 = vector.broadcast %78 : vector<8x1xf32> to vector<8x8xf32>
    %80 = arith.mulf %75, %79 : vector<8x8xf32>
    %cst_33 = arith.constant dense<0.000000e+00> : vector<8x32xf32>
    %81 = tpu.matmul %80, %66, %cst_33 {dimension_numbers = #tpu.dot_dimension_numbers<[1], [0], [0], [1], [0, 0, 1, 1], [], []>} : vector<8x8xf32>, vector<8x32xf32>, vector<8x32xf32> -> vector<8x32xf32>
    %82 = arith.truncf %81 : vector<8x32xf32> to vector<8x32xbf16>
    %83 = arith.index_cast %39 : i32 to index
    %c0_34 = arith.constant 0 : index
    %c0_35 = arith.constant 0 : index
    %84 = vector.load %arg10[%83, %c0_34, %c0_35] : memref<8x32x128xbf16, #tpu.memory_space<vmem>>, vector<1x32x128xbf16>
    %85 = vector.shape_cast %84 : vector<1x32x128xbf16> to vector<32x128xbf16>
    %cst_36 = arith.constant dense<0.000000e+00> : vector<8x128xf32>
    %86 = tpu.matmul %82, %85, %cst_36 {dimension_numbers = #tpu.dot_dimension_numbers<[1], [0], [0], [1], [0, 0, 1, 1], [], []>} : vector<8x32xbf16>, vector<32x128xbf16>, vector<8x128xf32> -> vector<8x128xf32>
    %87 = arith.addf %37, %86 : vector<8x128xf32>
    %c4_i32_37 = arith.constant 4 : i32
    %88 = arith.muli %c0_i32, %c4_i32_37 : i32
    %c1_i32 = arith.constant 1 : i32
    %89 = arith.addi %88, %c1_i32 : i32
    %90 = arith.index_cast %89 : i32 to index
    %c0_38 = arith.constant 0 : index
    %c0_39 = arith.constant 0 : index
    %91 = vector.load %arg4[%90, %c0_38, %c0_39] : memref<8x128x32xbf16, #tpu.memory_space<vmem>>, vector<1x128x32xbf16>
    %92 = vector.shape_cast %91 : vector<1x128x32xbf16> to vector<128x32xbf16>
    %cst_40 = arith.constant dense<0.000000e+00> : vector<8x32xf32>
    %93 = tpu.matmul %36, %92, %cst_40 {dimension_numbers = #tpu.dot_dimension_numbers<[1], [0], [0], [1], [0, 0, 1, 1], [], []>} : vector<8x128xbf16>, vector<128x32xbf16>, vector<8x32xf32> -> vector<8x32xf32>
    %94 = arith.index_cast %89 : i32 to index
    %c0_41 = arith.constant 0 : index
    %c0_42 = arith.constant 0 : index
    %95 = vector.load %arg5[%94, %c0_41, %c0_42] : memref<8x1x32xf32, #tpu.memory_space<vmem>>, vector<1x1x32xf32>
    %96 = vector.shape_cast %95 : vector<1x1x32xf32> to vector<1x32xf32>
    %97 = vector.broadcast %96 : vector<1x32xf32> to vector<8x32xf32>
    %98 = arith.addf %93, %97 : vector<8x32xf32>
    %99 = arith.index_cast %89 : i32 to index
    %c0_43 = arith.constant 0 : index
    %c0_44 = arith.constant 0 : index
    %100 = vector.load %arg6[%99, %c0_43, %c0_44] : memref<8x128x32xbf16, #tpu.memory_space<vmem>>, vector<1x128x32xbf16>
    %101 = vector.shape_cast %100 : vector<1x128x32xbf16> to vector<128x32xbf16>
    %cst_45 = arith.constant dense<0.000000e+00> : vector<8x32xf32>
    %102 = tpu.matmul %36, %101, %cst_45 {dimension_numbers = #tpu.dot_dimension_numbers<[1], [0], [0], [1], [0, 0, 1, 1], [], []>} : vector<8x128xbf16>, vector<128x32xbf16>, vector<8x32xf32> -> vector<8x32xf32>
    %103 = arith.index_cast %89 : i32 to index
    %c0_46 = arith.constant 0 : index
    %c0_47 = arith.constant 0 : index
    %104 = vector.load %arg7[%103, %c0_46, %c0_47] : memref<8x1x32xf32, #tpu.memory_space<vmem>>, vector<1x1x32xf32>
    %105 = vector.shape_cast %104 : vector<1x1x32xf32> to vector<1x32xf32>
    %106 = vector.broadcast %105 : vector<1x32xf32> to vector<8x32xf32>
    %107 = arith.addf %102, %106 : vector<8x32xf32>
    %108 = arith.index_cast %89 : i32 to index
    %c0_48 = arith.constant 0 : index
    %c0_49 = arith.constant 0 : index
    %109 = vector.load %arg8[%108, %c0_48, %c0_49] : memref<8x128x32xbf16, #tpu.memory_space<vmem>>, vector<1x128x32xbf16>
    %110 = vector.shape_cast %109 : vector<1x128x32xbf16> to vector<128x32xbf16>
    %cst_50 = arith.constant dense<0.000000e+00> : vector<8x32xf32>
    %111 = tpu.matmul %36, %110, %cst_50 {dimension_numbers = #tpu.dot_dimension_numbers<[1], [0], [0], [1], [0, 0, 1, 1], [], []>} : vector<8x128xbf16>, vector<128x32xbf16>, vector<8x32xf32> -> vector<8x32xf32>
    %112 = arith.index_cast %89 : i32 to index
    %c0_51 = arith.constant 0 : index
    %c0_52 = arith.constant 0 : index
    %113 = vector.load %arg9[%112, %c0_51, %c0_52] : memref<8x1x32xf32, #tpu.memory_space<vmem>>, vector<1x1x32xf32>
    %114 = vector.shape_cast %113 : vector<1x1x32xf32> to vector<1x32xf32>
    %115 = vector.broadcast %114 : vector<1x32xf32> to vector<8x32xf32>
    %116 = arith.addf %111, %115 : vector<8x32xf32>
    %117 = vector.broadcast %cst_3 : f32 to vector<8x32xf32>
    %118 = arith.mulf %98, %117 : vector<8x32xf32>
    %cst_53 = arith.constant dense<0.000000e+00> : vector<8x8xf32>
    %119 = tpu.matmul %118, %107, %cst_53 {dimension_numbers = #tpu.dot_dimension_numbers<[1], [1], [0], [0], [0, 0, 1, 0], [], []>} : vector<8x32xf32>, vector<8x32xf32>, vector<8x8xf32> -> vector<8x8xf32>
    %120 = arith.addf %119, %7 : vector<8x8xf32>
    %cst_54 = arith.constant dense<0xFF800000> : vector<8xf32>
    %121 = vector.multi_reduction <maximumf>, %120, %cst_54 [1] : vector<8x8xf32> to vector<8xf32>
    %122 = vector.shape_cast %121 : vector<8xf32> to vector<8x1xf32>
    %123 = vector.broadcast %122 : vector<8x1xf32> to vector<8x8xf32>
    %124 = arith.subf %120, %123 : vector<8x8xf32>
    %125 = math.exp %124 : vector<8x8xf32>
    %cst_55 = arith.constant dense<0.000000e+00> : vector<8xf32>
    %126 = vector.multi_reduction <add>, %125, %cst_55 [1] : vector<8x8xf32> to vector<8xf32>
    %127 = vector.shape_cast %126 : vector<8xf32> to vector<8x1xf32>
    %128 = tpu.reciprocal %127 {approx = true} : vector<8x1xf32> -> vector<8x1xf32>
    %129 = vector.broadcast %128 : vector<8x1xf32> to vector<8x8xf32>
    %130 = arith.mulf %125, %129 : vector<8x8xf32>
    %cst_56 = arith.constant dense<0.000000e+00> : vector<8x32xf32>
    %131 = tpu.matmul %130, %116, %cst_56 {dimension_numbers = #tpu.dot_dimension_numbers<[1], [0], [0], [1], [0, 0, 1, 1], [], []>} : vector<8x8xf32>, vector<8x32xf32>, vector<8x32xf32> -> vector<8x32xf32>
    %132 = arith.truncf %131 : vector<8x32xf32> to vector<8x32xbf16>
    %133 = arith.index_cast %89 : i32 to index
    %c0_57 = arith.constant 0 : index
    %c0_58 = arith.constant 0 : index
    %134 = vector.load %arg10[%133, %c0_57, %c0_58] : memref<8x32x128xbf16, #tpu.memory_space<vmem>>, vector<1x32x128xbf16>
    %135 = vector.shape_cast %134 : vector<1x32x128xbf16> to vector<32x128xbf16>
    %cst_59 = arith.constant dense<0.000000e+00> : vector<8x128xf32>
    %136 = tpu.matmul %132, %135, %cst_59 {dimension_numbers = #tpu.dot_dimension_numbers<[1], [0], [0], [1], [0, 0, 1, 1], [], []>} : vector<8x32xbf16>, vector<32x128xbf16>, vector<8x128xf32> -> vector<8x128xf32>
    %137 = arith.addf %87, %136 : vector<8x128xf32>
    %c4_i32_60 = arith.constant 4 : i32
    %138 = arith.muli %c0_i32, %c4_i32_60 : i32
    %c2_i32 = arith.constant 2 : i32
    %139 = arith.addi %138, %c2_i32 : i32
    %140 = arith.index_cast %139 : i32 to index
    %c0_61 = arith.constant 0 : index
    %c0_62 = arith.constant 0 : index
    %141 = vector.load %arg4[%140, %c0_61, %c0_62] : memref<8x128x32xbf16, #tpu.memory_space<vmem>>, vector<1x128x32xbf16>
    %142 = vector.shape_cast %141 : vector<1x128x32xbf16> to vector<128x32xbf16>
    %cst_63 = arith.constant dense<0.000000e+00> : vector<8x32xf32>
    %143 = tpu.matmul %36, %142, %cst_63 {dimension_numbers = #tpu.dot_dimension_numbers<[1], [0], [0], [1], [0, 0, 1, 1], [], []>} : vector<8x128xbf16>, vector<128x32xbf16>, vector<8x32xf32> -> vector<8x32xf32>
    %144 = arith.index_cast %139 : i32 to index
    %c0_64 = arith.constant 0 : index
    %c0_65 = arith.constant 0 : index
    %145 = vector.load %arg5[%144, %c0_64, %c0_65] : memref<8x1x32xf32, #tpu.memory_space<vmem>>, vector<1x1x32xf32>
    %146 = vector.shape_cast %145 : vector<1x1x32xf32> to vector<1x32xf32>
    %147 = vector.broadcast %146 : vector<1x32xf32> to vector<8x32xf32>
    %148 = arith.addf %143, %147 : vector<8x32xf32>
    %149 = arith.index_cast %139 : i32 to index
    %c0_66 = arith.constant 0 : index
    %c0_67 = arith.constant 0 : index
    %150 = vector.load %arg6[%149, %c0_66, %c0_67] : memref<8x128x32xbf16, #tpu.memory_space<vmem>>, vector<1x128x32xbf16>
    %151 = vector.shape_cast %150 : vector<1x128x32xbf16> to vector<128x32xbf16>
    %cst_68 = arith.constant dense<0.000000e+00> : vector<8x32xf32>
    %152 = tpu.matmul %36, %151, %cst_68 {dimension_numbers = #tpu.dot_dimension_numbers<[1], [0], [0], [1], [0, 0, 1, 1], [], []>} : vector<8x128xbf16>, vector<128x32xbf16>, vector<8x32xf32> -> vector<8x32xf32>
    %153 = arith.index_cast %139 : i32 to index
    %c0_69 = arith.constant 0 : index
    %c0_70 = arith.constant 0 : index
    %154 = vector.load %arg7[%153, %c0_69, %c0_70] : memref<8x1x32xf32, #tpu.memory_space<vmem>>, vector<1x1x32xf32>
    %155 = vector.shape_cast %154 : vector<1x1x32xf32> to vector<1x32xf32>
    %156 = vector.broadcast %155 : vector<1x32xf32> to vector<8x32xf32>
    %157 = arith.addf %152, %156 : vector<8x32xf32>
    %158 = arith.index_cast %139 : i32 to index
    %c0_71 = arith.constant 0 : index
    %c0_72 = arith.constant 0 : index
    %159 = vector.load %arg8[%158, %c0_71, %c0_72] : memref<8x128x32xbf16, #tpu.memory_space<vmem>>, vector<1x128x32xbf16>
    %160 = vector.shape_cast %159 : vector<1x128x32xbf16> to vector<128x32xbf16>
    %cst_73 = arith.constant dense<0.000000e+00> : vector<8x32xf32>
    %161 = tpu.matmul %36, %160, %cst_73 {dimension_numbers = #tpu.dot_dimension_numbers<[1], [0], [0], [1], [0, 0, 1, 1], [], []>} : vector<8x128xbf16>, vector<128x32xbf16>, vector<8x32xf32> -> vector<8x32xf32>
    %162 = arith.index_cast %139 : i32 to index
    %c0_74 = arith.constant 0 : index
    %c0_75 = arith.constant 0 : index
    %163 = vector.load %arg9[%162, %c0_74, %c0_75] : memref<8x1x32xf32, #tpu.memory_space<vmem>>, vector<1x1x32xf32>
    %164 = vector.shape_cast %163 : vector<1x1x32xf32> to vector<1x32xf32>
    %165 = vector.broadcast %164 : vector<1x32xf32> to vector<8x32xf32>
    %166 = arith.addf %161, %165 : vector<8x32xf32>
    %167 = vector.broadcast %cst_3 : f32 to vector<8x32xf32>
    %168 = arith.mulf %148, %167 : vector<8x32xf32>
    %cst_76 = arith.constant dense<0.000000e+00> : vector<8x8xf32>
    %169 = tpu.matmul %168, %157, %cst_76 {dimension_numbers = #tpu.dot_dimension_numbers<[1], [1], [0], [0], [0, 0, 1, 0], [], []>} : vector<8x32xf32>, vector<8x32xf32>, vector<8x8xf32> -> vector<8x8xf32>
    %170 = arith.addf %169, %7 : vector<8x8xf32>
    %cst_77 = arith.constant dense<0xFF800000> : vector<8xf32>
    %171 = vector.multi_reduction <maximumf>, %170, %cst_77 [1] : vector<8x8xf32> to vector<8xf32>
    %172 = vector.shape_cast %171 : vector<8xf32> to vector<8x1xf32>
    %173 = vector.broadcast %172 : vector<8x1xf32> to vector<8x8xf32>
    %174 = arith.subf %170, %173 : vector<8x8xf32>
    %175 = math.exp %174 : vector<8x8xf32>
    %cst_78 = arith.constant dense<0.000000e+00> : vector<8xf32>
    %176 = vector.multi_reduction <add>, %175, %cst_78 [1] : vector<8x8xf32> to vector<8xf32>
    %177 = vector.shape_cast %176 : vector<8xf32> to vector<8x1xf32>
    %178 = tpu.reciprocal %177 {approx = true} : vector<8x1xf32> -> vector<8x1xf32>
    %179 = vector.broadcast %178 : vector<8x1xf32> to vector<8x8xf32>
    %180 = arith.mulf %175, %179 : vector<8x8xf32>
    %cst_79 = arith.constant dense<0.000000e+00> : vector<8x32xf32>
    %181 = tpu.matmul %180, %166, %cst_79 {dimension_numbers = #tpu.dot_dimension_numbers<[1], [0], [0], [1], [0, 0, 1, 1], [], []>} : vector<8x8xf32>, vector<8x32xf32>, vector<8x32xf32> -> vector<8x32xf32>
    %182 = arith.truncf %181 : vector<8x32xf32> to vector<8x32xbf16>
    %183 = arith.index_cast %139 : i32 to index
    %c0_80 = arith.constant 0 : index
    %c0_81 = arith.constant 0 : index
    %184 = vector.load %arg10[%183, %c0_80, %c0_81] : memref<8x32x128xbf16, #tpu.memory_space<vmem>>, vector<1x32x128xbf16>
    %185 = vector.shape_cast %184 : vector<1x32x128xbf16> to vector<32x128xbf16>
    %cst_82 = arith.constant dense<0.000000e+00> : vector<8x128xf32>
    %186 = tpu.matmul %182, %185, %cst_82 {dimension_numbers = #tpu.dot_dimension_numbers<[1], [0], [0], [1], [0, 0, 1, 1], [], []>} : vector<8x32xbf16>, vector<32x128xbf16>, vector<8x128xf32> -> vector<8x128xf32>
    %187 = arith.addf %137, %186 : vector<8x128xf32>
    %c4_i32_83 = arith.constant 4 : i32
    %188 = arith.muli %c0_i32, %c4_i32_83 : i32
    %c3_i32 = arith.constant 3 : i32
    %189 = arith.addi %188, %c3_i32 : i32
    %190 = arith.index_cast %189 : i32 to index
    %c0_84 = arith.constant 0 : index
    %c0_85 = arith.constant 0 : index
    %191 = vector.load %arg4[%190, %c0_84, %c0_85] : memref<8x128x32xbf16, #tpu.memory_space<vmem>>, vector<1x128x32xbf16>
    %192 = vector.shape_cast %191 : vector<1x128x32xbf16> to vector<128x32xbf16>
    %cst_86 = arith.constant dense<0.000000e+00> : vector<8x32xf32>
    %193 = tpu.matmul %36, %192, %cst_86 {dimension_numbers = #tpu.dot_dimension_numbers<[1], [0], [0], [1], [0, 0, 1, 1], [], []>} : vector<8x128xbf16>, vector<128x32xbf16>, vector<8x32xf32> -> vector<8x32xf32>
    %194 = arith.index_cast %189 : i32 to index
    %c0_87 = arith.constant 0 : index
    %c0_88 = arith.constant 0 : index
    %195 = vector.load %arg5[%194, %c0_87, %c0_88] : memref<8x1x32xf32, #tpu.memory_space<vmem>>, vector<1x1x32xf32>
    %196 = vector.shape_cast %195 : vector<1x1x32xf32> to vector<1x32xf32>
    %197 = vector.broadcast %196 : vector<1x32xf32> to vector<8x32xf32>
    %198 = arith.addf %193, %197 : vector<8x32xf32>
    %199 = arith.index_cast %189 : i32 to index
    %c0_89 = arith.constant 0 : index
    %c0_90 = arith.constant 0 : index
    %200 = vector.load %arg6[%199, %c0_89, %c0_90] : memref<8x128x32xbf16, #tpu.memory_space<vmem>>, vector<1x128x32xbf16>
    %201 = vector.shape_cast %200 : vector<1x128x32xbf16> to vector<128x32xbf16>
    %cst_91 = arith.constant dense<0.000000e+00> : vector<8x32xf32>
    %202 = tpu.matmul %36, %201, %cst_91 {dimension_numbers = #tpu.dot_dimension_numbers<[1], [0], [0], [1], [0, 0, 1, 1], [], []>} : vector<8x128xbf16>, vector<128x32xbf16>, vector<8x32xf32> -> vector<8x32xf32>
    %203 = arith.index_cast %189 : i32 to index
    %c0_92 = arith.constant 0 : index
    %c0_93 = arith.constant 0 : index
    %204 = vector.load %arg7[%203, %c0_92, %c0_93] : memref<8x1x32xf32, #tpu.memory_space<vmem>>, vector<1x1x32xf32>
    %205 = vector.shape_cast %204 : vector<1x1x32xf32> to vector<1x32xf32>
    %206 = vector.broadcast %205 : vector<1x32xf32> to vector<8x32xf32>
    %207 = arith.addf %202, %206 : vector<8x32xf32>
    %208 = arith.index_cast %189 : i32 to index
    %c0_94 = arith.constant 0 : index
    %c0_95 = arith.constant 0 : index
    %209 = vector.load %arg8[%208, %c0_94, %c0_95] : memref<8x128x32xbf16, #tpu.memory_space<vmem>>, vector<1x128x32xbf16>
    %210 = vector.shape_cast %209 : vector<1x128x32xbf16> to vector<128x32xbf16>
    %cst_96 = arith.constant dense<0.000000e+00> : vector<8x32xf32>
    %211 = tpu.matmul %36, %210, %cst_96 {dimension_numbers = #tpu.dot_dimension_numbers<[1], [0], [0], [1], [0, 0, 1, 1], [], []>} : vector<8x128xbf16>, vector<128x32xbf16>, vector<8x32xf32> -> vector<8x32xf32>
    %212 = arith.index_cast %189 : i32 to index
    %c0_97 = arith.constant 0 : index
    %c0_98 = arith.constant 0 : index
    %213 = vector.load %arg9[%212, %c0_97, %c0_98] : memref<8x1x32xf32, #tpu.memory_space<vmem>>, vector<1x1x32xf32>
    %214 = vector.shape_cast %213 : vector<1x1x32xf32> to vector<1x32xf32>
    %215 = vector.broadcast %214 : vector<1x32xf32> to vector<8x32xf32>
    %216 = arith.addf %211, %215 : vector<8x32xf32>
    %217 = vector.broadcast %cst_3 : f32 to vector<8x32xf32>
    %218 = arith.mulf %198, %217 : vector<8x32xf32>
    %cst_99 = arith.constant dense<0.000000e+00> : vector<8x8xf32>
    %219 = tpu.matmul %218, %207, %cst_99 {dimension_numbers = #tpu.dot_dimension_numbers<[1], [1], [0], [0], [0, 0, 1, 0], [], []>} : vector<8x32xf32>, vector<8x32xf32>, vector<8x8xf32> -> vector<8x8xf32>
    %220 = arith.addf %219, %7 : vector<8x8xf32>
    %cst_100 = arith.constant dense<0xFF800000> : vector<8xf32>
    %221 = vector.multi_reduction <maximumf>, %220, %cst_100 [1] : vector<8x8xf32> to vector<8xf32>
    %222 = vector.shape_cast %221 : vector<8xf32> to vector<8x1xf32>
    %223 = vector.broadcast %222 : vector<8x1xf32> to vector<8x8xf32>
    %224 = arith.subf %220, %223 : vector<8x8xf32>
    %225 = math.exp %224 : vector<8x8xf32>
    %cst_101 = arith.constant dense<0.000000e+00> : vector<8xf32>
    %226 = vector.multi_reduction <add>, %225, %cst_101 [1] : vector<8x8xf32> to vector<8xf32>
    %227 = vector.shape_cast %226 : vector<8xf32> to vector<8x1xf32>
    %228 = tpu.reciprocal %227 {approx = true} : vector<8x1xf32> -> vector<8x1xf32>
    %229 = vector.broadcast %228 : vector<8x1xf32> to vector<8x8xf32>
    %230 = arith.mulf %225, %229 : vector<8x8xf32>
    %cst_102 = arith.constant dense<0.000000e+00> : vector<8x32xf32>
    %231 = tpu.matmul %230, %216, %cst_102 {dimension_numbers = #tpu.dot_dimension_numbers<[1], [0], [0], [1], [0, 0, 1, 1], [], []>} : vector<8x8xf32>, vector<8x32xf32>, vector<8x32xf32> -> vector<8x32xf32>
    %232 = arith.truncf %231 : vector<8x32xf32> to vector<8x32xbf16>
    %233 = arith.index_cast %189 : i32 to index
    %c0_103 = arith.constant 0 : index
    %c0_104 = arith.constant 0 : index
    %234 = vector.load %arg10[%233, %c0_103, %c0_104] : memref<8x32x128xbf16, #tpu.memory_space<vmem>>, vector<1x32x128xbf16>
    %235 = vector.shape_cast %234 : vector<1x32x128xbf16> to vector<32x128xbf16>
    %cst_105 = arith.constant dense<0.000000e+00> : vector<8x128xf32>
    %236 = tpu.matmul %232, %235, %cst_105 {dimension_numbers = #tpu.dot_dimension_numbers<[1], [0], [0], [1], [0, 0, 1, 1], [], []>} : vector<8x32xbf16>, vector<32x128xbf16>, vector<8x128xf32> -> vector<8x128xf32>
    %237 = arith.addf %187, %236 : vector<8x128xf32>
    %238 = arith.addf %1, %237 : vector<8x128xf32>
    %239 = arith.index_cast %c0_i32 : i32 to index
    %c0_106 = arith.constant 0 : index
    %c0_107 = arith.constant 0 : index
    %240 = vector.load %arg11[%239, %c0_106, %c0_107] : memref<2x1x128xf32, #tpu.memory_space<vmem>>, vector<1x1x128xf32>
    %241 = vector.shape_cast %240 : vector<1x1x128xf32> to vector<1x128xf32>
    %242 = vector.broadcast %241 : vector<1x128xf32> to vector<8x128xf32>
    %243 = arith.addf %238, %242 : vector<8x128xf32>
    %244 = arith.index_cast %c0_i32 : i32 to index
    %c0_108 = arith.constant 0 : index
    %c0_109 = arith.constant 0 : index
    %245 = vector.load %arg12[%244, %c0_108, %c0_109] : memref<2x1x128xf32, #tpu.memory_space<vmem>>, vector<1x1x128xf32>
    %246 = vector.shape_cast %245 : vector<1x1x128xf32> to vector<1x128xf32>
    %247 = arith.index_cast %c0_i32 : i32 to index
    %c0_110 = arith.constant 0 : index
    %c0_111 = arith.constant 0 : index
    %248 = vector.load %arg13[%247, %c0_110, %c0_111] : memref<2x1x128xf32, #tpu.memory_space<vmem>>, vector<1x1x128xf32>
    %249 = vector.shape_cast %248 : vector<1x1x128xf32> to vector<1x128xf32>
    %cst_112 = arith.constant dense<0.000000e+00> : vector<8xf32>
    %250 = vector.multi_reduction <add>, %243, %cst_112 [1] : vector<8x128xf32> to vector<8xf32>
    %251 = vector.shape_cast %250 : vector<8xf32> to vector<8x1xf32>
    %cst_113 = arith.constant 1.280000e+02 : f32
    %252 = vector.broadcast %cst_113 : f32 to vector<8x1xf32>
    %253 = arith.divf %251, %252 : vector<8x1xf32>
    %254 = vector.broadcast %253 : vector<8x1xf32> to vector<8x128xf32>
    %255 = arith.subf %243, %254 : vector<8x128xf32>
    %256 = arith.mulf %255, %255 : vector<8x128xf32>
    %cst_114 = arith.constant dense<0.000000e+00> : vector<8xf32>
    %257 = vector.multi_reduction <add>, %256, %cst_114 [1] : vector<8x128xf32> to vector<8xf32>
    %258 = vector.shape_cast %257 : vector<8xf32> to vector<8x1xf32>
    %cst_115 = arith.constant 1.280000e+02 : f32
    %259 = vector.broadcast %cst_115 : f32 to vector<8x1xf32>
    %260 = arith.divf %258, %259 : vector<8x1xf32>
    %261 = vector.broadcast %253 : vector<8x1xf32> to vector<8x128xf32>
    %262 = arith.subf %243, %261 : vector<8x128xf32>
    %cst_116 = arith.constant 9.99999974E-6 : f32
    %263 = vector.broadcast %cst_116 : f32 to vector<8x1xf32>
    %264 = arith.addf %260, %263 : vector<8x1xf32>
    %265 = math.rsqrt %264 : vector<8x1xf32>
    %266 = vector.broadcast %265 : vector<8x1xf32> to vector<8x128xf32>
    %267 = arith.mulf %262, %266 : vector<8x128xf32>
    %268 = vector.broadcast %246 : vector<1x128xf32> to vector<8x128xf32>
    %269 = arith.mulf %267, %268 : vector<8x128xf32>
    %270 = vector.broadcast %249 : vector<1x128xf32> to vector<8x128xf32>
    %271 = arith.addf %269, %270 : vector<8x128xf32>
    %272 = arith.truncf %271 : vector<8x128xf32> to vector<8x128xbf16>
    %273 = arith.index_cast %c0_i32 : i32 to index
    %c0_117 = arith.constant 0 : index
    %c0_118 = arith.constant 0 : index
    %274 = vector.load %arg14[%273, %c0_117, %c0_118] : memref<2x128x512xbf16, #tpu.memory_space<vmem>>, vector<1x128x512xbf16>
    %275 = vector.shape_cast %274 : vector<1x128x512xbf16> to vector<128x512xbf16>
    %cst_119 = arith.constant dense<0.000000e+00> : vector<8x512xf32>
    %276 = tpu.matmul %272, %275, %cst_119 {dimension_numbers = #tpu.dot_dimension_numbers<[1], [0], [0], [1], [0, 0, 1, 1], [], []>} : vector<8x128xbf16>, vector<128x512xbf16>, vector<8x512xf32> -> vector<8x512xf32>
    %277 = arith.index_cast %c0_i32 : i32 to index
    %c0_120 = arith.constant 0 : index
    %c0_121 = arith.constant 0 : index
    %278 = vector.load %arg15[%277, %c0_120, %c0_121] : memref<2x1x512xf32, #tpu.memory_space<vmem>>, vector<1x1x512xf32>
    %279 = vector.shape_cast %278 : vector<1x1x512xf32> to vector<1x512xf32>
    %280 = vector.broadcast %279 : vector<1x512xf32> to vector<8x512xf32>
    %281 = arith.addf %276, %280 : vector<8x512xf32>
    %cst_122 = arith.constant 1.702000e+00 : f32
    %282 = vector.broadcast %cst_122 : f32 to vector<8x512xf32>
    %283 = arith.mulf %282, %281 : vector<8x512xf32>
    %284 = arith.negf %283 : vector<8x512xf32>
    %285 = math.exp %284 : vector<8x512xf32>
    %cst_123 = arith.constant 1.000000e+00 : f32
    %286 = vector.broadcast %cst_123 : f32 to vector<8x512xf32>
    %287 = arith.addf %286, %285 : vector<8x512xf32>
    %288 = arith.divf %286, %287 : vector<8x512xf32>
    %289 = arith.mulf %281, %288 : vector<8x512xf32>
    %290 = arith.truncf %289 : vector<8x512xf32> to vector<8x512xbf16>
    %291 = arith.index_cast %c0_i32 : i32 to index
    %c0_124 = arith.constant 0 : index
    %c0_125 = arith.constant 0 : index
    %292 = vector.load %arg16[%291, %c0_124, %c0_125] : memref<2x512x128xbf16, #tpu.memory_space<vmem>>, vector<1x512x128xbf16>
    %293 = vector.shape_cast %292 : vector<1x512x128xbf16> to vector<512x128xbf16>
    %cst_126 = arith.constant dense<0.000000e+00> : vector<8x128xf32>
    %294 = tpu.matmul %290, %293, %cst_126 {dimension_numbers = #tpu.dot_dimension_numbers<[1], [0], [0], [1], [0, 0, 1, 1], [], []>} : vector<8x512xbf16>, vector<512x128xbf16>, vector<8x128xf32> -> vector<8x128xf32>
    %295 = arith.index_cast %c0_i32 : i32 to index
    %c0_127 = arith.constant 0 : index
    %c0_128 = arith.constant 0 : index
    %296 = vector.load %arg17[%295, %c0_127, %c0_128] : memref<2x1x128xf32, #tpu.memory_space<vmem>>, vector<1x1x128xf32>
    %297 = vector.shape_cast %296 : vector<1x1x128xf32> to vector<1x128xf32>
    %298 = vector.broadcast %297 : vector<1x128xf32> to vector<8x128xf32>
    %299 = arith.addf %294, %298 : vector<8x128xf32>
    %300 = arith.addf %243, %299 : vector<8x128xf32>
    %c1_i32_129 = arith.constant 1 : i32
    %301 = arith.index_cast %c1_i32_129 : i32 to index
    %c0_130 = arith.constant 0 : index
    %c0_131 = arith.constant 0 : index
    %302 = vector.load %arg2[%301, %c0_130, %c0_131] : memref<2x1x128xf32, #tpu.memory_space<vmem>>, vector<1x1x128xf32>
    %303 = vector.shape_cast %302 : vector<1x1x128xf32> to vector<1x128xf32>
    %304 = arith.index_cast %c1_i32_129 : i32 to index
    %c0_132 = arith.constant 0 : index
    %c0_133 = arith.constant 0 : index
    %305 = vector.load %arg3[%304, %c0_132, %c0_133] : memref<2x1x128xf32, #tpu.memory_space<vmem>>, vector<1x1x128xf32>
    %306 = vector.shape_cast %305 : vector<1x1x128xf32> to vector<1x128xf32>
    %cst_134 = arith.constant dense<0.000000e+00> : vector<8xf32>
    %307 = vector.multi_reduction <add>, %300, %cst_134 [1] : vector<8x128xf32> to vector<8xf32>
    %308 = vector.shape_cast %307 : vector<8xf32> to vector<8x1xf32>
    %cst_135 = arith.constant 1.280000e+02 : f32
    %309 = vector.broadcast %cst_135 : f32 to vector<8x1xf32>
    %310 = arith.divf %308, %309 : vector<8x1xf32>
    %311 = vector.broadcast %310 : vector<8x1xf32> to vector<8x128xf32>
    %312 = arith.subf %300, %311 : vector<8x128xf32>
    %313 = arith.mulf %312, %312 : vector<8x128xf32>
    %cst_136 = arith.constant dense<0.000000e+00> : vector<8xf32>
    %314 = vector.multi_reduction <add>, %313, %cst_136 [1] : vector<8x128xf32> to vector<8xf32>
    %315 = vector.shape_cast %314 : vector<8xf32> to vector<8x1xf32>
    %cst_137 = arith.constant 1.280000e+02 : f32
    %316 = vector.broadcast %cst_137 : f32 to vector<8x1xf32>
    %317 = arith.divf %315, %316 : vector<8x1xf32>
    %318 = vector.broadcast %310 : vector<8x1xf32> to vector<8x128xf32>
    %319 = arith.subf %300, %318 : vector<8x128xf32>
    %cst_138 = arith.constant 9.99999974E-6 : f32
    %320 = vector.broadcast %cst_138 : f32 to vector<8x1xf32>
    %321 = arith.addf %317, %320 : vector<8x1xf32>
    %322 = math.rsqrt %321 : vector<8x1xf32>
    %323 = vector.broadcast %322 : vector<8x1xf32> to vector<8x128xf32>
    %324 = arith.mulf %319, %323 : vector<8x128xf32>
    %325 = vector.broadcast %303 : vector<1x128xf32> to vector<8x128xf32>
    %326 = arith.mulf %324, %325 : vector<8x128xf32>
    %327 = vector.broadcast %306 : vector<1x128xf32> to vector<8x128xf32>
    %328 = arith.addf %326, %327 : vector<8x128xf32>
    %329 = arith.truncf %328 : vector<8x128xf32> to vector<8x128xbf16>
    %cst_139 = arith.constant 0.000000e+00 : f32
    %330 = vector.broadcast %cst_139 : f32 to vector<8x128xf32>
    %c4_i32_140 = arith.constant 4 : i32
    %331 = arith.muli %c1_i32_129, %c4_i32_140 : i32
    %c0_i32_141 = arith.constant 0 : i32
    %332 = arith.addi %331, %c0_i32_141 : i32
    %333 = arith.index_cast %332 : i32 to index
    %c0_142 = arith.constant 0 : index
    %c0_143 = arith.constant 0 : index
    %334 = vector.load %arg4[%333, %c0_142, %c0_143] : memref<8x128x32xbf16, #tpu.memory_space<vmem>>, vector<1x128x32xbf16>
    %335 = vector.shape_cast %334 : vector<1x128x32xbf16> to vector<128x32xbf16>
    %cst_144 = arith.constant dense<0.000000e+00> : vector<8x32xf32>
    %336 = tpu.matmul %329, %335, %cst_144 {dimension_numbers = #tpu.dot_dimension_numbers<[1], [0], [0], [1], [0, 0, 1, 1], [], []>} : vector<8x128xbf16>, vector<128x32xbf16>, vector<8x32xf32> -> vector<8x32xf32>
    %337 = arith.index_cast %332 : i32 to index
    %c0_145 = arith.constant 0 : index
    %c0_146 = arith.constant 0 : index
    %338 = vector.load %arg5[%337, %c0_145, %c0_146] : memref<8x1x32xf32, #tpu.memory_space<vmem>>, vector<1x1x32xf32>
    %339 = vector.shape_cast %338 : vector<1x1x32xf32> to vector<1x32xf32>
    %340 = vector.broadcast %339 : vector<1x32xf32> to vector<8x32xf32>
    %341 = arith.addf %336, %340 : vector<8x32xf32>
    %342 = arith.index_cast %332 : i32 to index
    %c0_147 = arith.constant 0 : index
    %c0_148 = arith.constant 0 : index
    %343 = vector.load %arg6[%342, %c0_147, %c0_148] : memref<8x128x32xbf16, #tpu.memory_space<vmem>>, vector<1x128x32xbf16>
    %344 = vector.shape_cast %343 : vector<1x128x32xbf16> to vector<128x32xbf16>
    %cst_149 = arith.constant dense<0.000000e+00> : vector<8x32xf32>
    %345 = tpu.matmul %329, %344, %cst_149 {dimension_numbers = #tpu.dot_dimension_numbers<[1], [0], [0], [1], [0, 0, 1, 1], [], []>} : vector<8x128xbf16>, vector<128x32xbf16>, vector<8x32xf32> -> vector<8x32xf32>
    %346 = arith.index_cast %332 : i32 to index
    %c0_150 = arith.constant 0 : index
    %c0_151 = arith.constant 0 : index
    %347 = vector.load %arg7[%346, %c0_150, %c0_151] : memref<8x1x32xf32, #tpu.memory_space<vmem>>, vector<1x1x32xf32>
    %348 = vector.shape_cast %347 : vector<1x1x32xf32> to vector<1x32xf32>
    %349 = vector.broadcast %348 : vector<1x32xf32> to vector<8x32xf32>
    %350 = arith.addf %345, %349 : vector<8x32xf32>
    %351 = arith.index_cast %332 : i32 to index
    %c0_152 = arith.constant 0 : index
    %c0_153 = arith.constant 0 : index
    %352 = vector.load %arg8[%351, %c0_152, %c0_153] : memref<8x128x32xbf16, #tpu.memory_space<vmem>>, vector<1x128x32xbf16>
    %353 = vector.shape_cast %352 : vector<1x128x32xbf16> to vector<128x32xbf16>
    %cst_154 = arith.constant dense<0.000000e+00> : vector<8x32xf32>
    %354 = tpu.matmul %329, %353, %cst_154 {dimension_numbers = #tpu.dot_dimension_numbers<[1], [0], [0], [1], [0, 0, 1, 1], [], []>} : vector<8x128xbf16>, vector<128x32xbf16>, vector<8x32xf32> -> vector<8x32xf32>
    %355 = arith.index_cast %332 : i32 to index
    %c0_155 = arith.constant 0 : index
    %c0_156 = arith.constant 0 : index
    %356 = vector.load %arg9[%355, %c0_155, %c0_156] : memref<8x1x32xf32, #tpu.memory_space<vmem>>, vector<1x1x32xf32>
    %357 = vector.shape_cast %356 : vector<1x1x32xf32> to vector<1x32xf32>
    %358 = vector.broadcast %357 : vector<1x32xf32> to vector<8x32xf32>
    %359 = arith.addf %354, %358 : vector<8x32xf32>
    %360 = vector.broadcast %cst_3 : f32 to vector<8x32xf32>
    %361 = arith.mulf %341, %360 : vector<8x32xf32>
    %cst_157 = arith.constant dense<0.000000e+00> : vector<8x8xf32>
    %362 = tpu.matmul %361, %350, %cst_157 {dimension_numbers = #tpu.dot_dimension_numbers<[1], [1], [0], [0], [0, 0, 1, 0], [], []>} : vector<8x32xf32>, vector<8x32xf32>, vector<8x8xf32> -> vector<8x8xf32>
    %363 = arith.addf %362, %7 : vector<8x8xf32>
    %cst_158 = arith.constant dense<0xFF800000> : vector<8xf32>
    %364 = vector.multi_reduction <maximumf>, %363, %cst_158 [1] : vector<8x8xf32> to vector<8xf32>
    %365 = vector.shape_cast %364 : vector<8xf32> to vector<8x1xf32>
    %366 = vector.broadcast %365 : vector<8x1xf32> to vector<8x8xf32>
    %367 = arith.subf %363, %366 : vector<8x8xf32>
    %368 = math.exp %367 : vector<8x8xf32>
    %cst_159 = arith.constant dense<0.000000e+00> : vector<8xf32>
    %369 = vector.multi_reduction <add>, %368, %cst_159 [1] : vector<8x8xf32> to vector<8xf32>
    %370 = vector.shape_cast %369 : vector<8xf32> to vector<8x1xf32>
    %371 = tpu.reciprocal %370 {approx = true} : vector<8x1xf32> -> vector<8x1xf32>
    %372 = vector.broadcast %371 : vector<8x1xf32> to vector<8x8xf32>
    %373 = arith.mulf %368, %372 : vector<8x8xf32>
    %cst_160 = arith.constant dense<0.000000e+00> : vector<8x32xf32>
    %374 = tpu.matmul %373, %359, %cst_160 {dimension_numbers = #tpu.dot_dimension_numbers<[1], [0], [0], [1], [0, 0, 1, 1], [], []>} : vector<8x8xf32>, vector<8x32xf32>, vector<8x32xf32> -> vector<8x32xf32>
    %375 = arith.truncf %374 : vector<8x32xf32> to vector<8x32xbf16>
    %376 = arith.index_cast %332 : i32 to index
    %c0_161 = arith.constant 0 : index
    %c0_162 = arith.constant 0 : index
    %377 = vector.load %arg10[%376, %c0_161, %c0_162] : memref<8x32x128xbf16, #tpu.memory_space<vmem>>, vector<1x32x128xbf16>
    %378 = vector.shape_cast %377 : vector<1x32x128xbf16> to vector<32x128xbf16>
    %cst_163 = arith.constant dense<0.000000e+00> : vector<8x128xf32>
    %379 = tpu.matmul %375, %378, %cst_163 {dimension_numbers = #tpu.dot_dimension_numbers<[1], [0], [0], [1], [0, 0, 1, 1], [], []>} : vector<8x32xbf16>, vector<32x128xbf16>, vector<8x128xf32> -> vector<8x128xf32>
    %380 = arith.addf %330, %379 : vector<8x128xf32>
    %c4_i32_164 = arith.constant 4 : i32
    %381 = arith.muli %c1_i32_129, %c4_i32_164 : i32
    %c1_i32_165 = arith.constant 1 : i32
    %382 = arith.addi %381, %c1_i32_165 : i32
    %383 = arith.index_cast %382 : i32 to index
    %c0_166 = arith.constant 0 : index
    %c0_167 = arith.constant 0 : index
    %384 = vector.load %arg4[%383, %c0_166, %c0_167] : memref<8x128x32xbf16, #tpu.memory_space<vmem>>, vector<1x128x32xbf16>
    %385 = vector.shape_cast %384 : vector<1x128x32xbf16> to vector<128x32xbf16>
    %cst_168 = arith.constant dense<0.000000e+00> : vector<8x32xf32>
    %386 = tpu.matmul %329, %385, %cst_168 {dimension_numbers = #tpu.dot_dimension_numbers<[1], [0], [0], [1], [0, 0, 1, 1], [], []>} : vector<8x128xbf16>, vector<128x32xbf16>, vector<8x32xf32> -> vector<8x32xf32>
    %387 = arith.index_cast %382 : i32 to index
    %c0_169 = arith.constant 0 : index
    %c0_170 = arith.constant 0 : index
    %388 = vector.load %arg5[%387, %c0_169, %c0_170] : memref<8x1x32xf32, #tpu.memory_space<vmem>>, vector<1x1x32xf32>
    %389 = vector.shape_cast %388 : vector<1x1x32xf32> to vector<1x32xf32>
    %390 = vector.broadcast %389 : vector<1x32xf32> to vector<8x32xf32>
    %391 = arith.addf %386, %390 : vector<8x32xf32>
    %392 = arith.index_cast %382 : i32 to index
    %c0_171 = arith.constant 0 : index
    %c0_172 = arith.constant 0 : index
    %393 = vector.load %arg6[%392, %c0_171, %c0_172] : memref<8x128x32xbf16, #tpu.memory_space<vmem>>, vector<1x128x32xbf16>
    %394 = vector.shape_cast %393 : vector<1x128x32xbf16> to vector<128x32xbf16>
    %cst_173 = arith.constant dense<0.000000e+00> : vector<8x32xf32>
    %395 = tpu.matmul %329, %394, %cst_173 {dimension_numbers = #tpu.dot_dimension_numbers<[1], [0], [0], [1], [0, 0, 1, 1], [], []>} : vector<8x128xbf16>, vector<128x32xbf16>, vector<8x32xf32> -> vector<8x32xf32>
    %396 = arith.index_cast %382 : i32 to index
    %c0_174 = arith.constant 0 : index
    %c0_175 = arith.constant 0 : index
    %397 = vector.load %arg7[%396, %c0_174, %c0_175] : memref<8x1x32xf32, #tpu.memory_space<vmem>>, vector<1x1x32xf32>
    %398 = vector.shape_cast %397 : vector<1x1x32xf32> to vector<1x32xf32>
    %399 = vector.broadcast %398 : vector<1x32xf32> to vector<8x32xf32>
    %400 = arith.addf %395, %399 : vector<8x32xf32>
    %401 = arith.index_cast %382 : i32 to index
    %c0_176 = arith.constant 0 : index
    %c0_177 = arith.constant 0 : index
    %402 = vector.load %arg8[%401, %c0_176, %c0_177] : memref<8x128x32xbf16, #tpu.memory_space<vmem>>, vector<1x128x32xbf16>
    %403 = vector.shape_cast %402 : vector<1x128x32xbf16> to vector<128x32xbf16>
    %cst_178 = arith.constant dense<0.000000e+00> : vector<8x32xf32>
    %404 = tpu.matmul %329, %403, %cst_178 {dimension_numbers = #tpu.dot_dimension_numbers<[1], [0], [0], [1], [0, 0, 1, 1], [], []>} : vector<8x128xbf16>, vector<128x32xbf16>, vector<8x32xf32> -> vector<8x32xf32>
    %405 = arith.index_cast %382 : i32 to index
    %c0_179 = arith.constant 0 : index
    %c0_180 = arith.constant 0 : index
    %406 = vector.load %arg9[%405, %c0_179, %c0_180] : memref<8x1x32xf32, #tpu.memory_space<vmem>>, vector<1x1x32xf32>
    %407 = vector.shape_cast %406 : vector<1x1x32xf32> to vector<1x32xf32>
    %408 = vector.broadcast %407 : vector<1x32xf32> to vector<8x32xf32>
    %409 = arith.addf %404, %408 : vector<8x32xf32>
    %410 = vector.broadcast %cst_3 : f32 to vector<8x32xf32>
    %411 = arith.mulf %391, %410 : vector<8x32xf32>
    %cst_181 = arith.constant dense<0.000000e+00> : vector<8x8xf32>
    %412 = tpu.matmul %411, %400, %cst_181 {dimension_numbers = #tpu.dot_dimension_numbers<[1], [1], [0], [0], [0, 0, 1, 0], [], []>} : vector<8x32xf32>, vector<8x32xf32>, vector<8x8xf32> -> vector<8x8xf32>
    %413 = arith.addf %412, %7 : vector<8x8xf32>
    %cst_182 = arith.constant dense<0xFF800000> : vector<8xf32>
    %414 = vector.multi_reduction <maximumf>, %413, %cst_182 [1] : vector<8x8xf32> to vector<8xf32>
    %415 = vector.shape_cast %414 : vector<8xf32> to vector<8x1xf32>
    %416 = vector.broadcast %415 : vector<8x1xf32> to vector<8x8xf32>
    %417 = arith.subf %413, %416 : vector<8x8xf32>
    %418 = math.exp %417 : vector<8x8xf32>
    %cst_183 = arith.constant dense<0.000000e+00> : vector<8xf32>
    %419 = vector.multi_reduction <add>, %418, %cst_183 [1] : vector<8x8xf32> to vector<8xf32>
    %420 = vector.shape_cast %419 : vector<8xf32> to vector<8x1xf32>
    %421 = tpu.reciprocal %420 {approx = true} : vector<8x1xf32> -> vector<8x1xf32>
    %422 = vector.broadcast %421 : vector<8x1xf32> to vector<8x8xf32>
    %423 = arith.mulf %418, %422 : vector<8x8xf32>
    %cst_184 = arith.constant dense<0.000000e+00> : vector<8x32xf32>
    %424 = tpu.matmul %423, %409, %cst_184 {dimension_numbers = #tpu.dot_dimension_numbers<[1], [0], [0], [1], [0, 0, 1, 1], [], []>} : vector<8x8xf32>, vector<8x32xf32>, vector<8x32xf32> -> vector<8x32xf32>
    %425 = arith.truncf %424 : vector<8x32xf32> to vector<8x32xbf16>
    %426 = arith.index_cast %382 : i32 to index
    %c0_185 = arith.constant 0 : index
    %c0_186 = arith.constant 0 : index
    %427 = vector.load %arg10[%426, %c0_185, %c0_186] : memref<8x32x128xbf16, #tpu.memory_space<vmem>>, vector<1x32x128xbf16>
    %428 = vector.shape_cast %427 : vector<1x32x128xbf16> to vector<32x128xbf16>
    %cst_187 = arith.constant dense<0.000000e+00> : vector<8x128xf32>
    %429 = tpu.matmul %425, %428, %cst_187 {dimension_numbers = #tpu.dot_dimension_numbers<[1], [0], [0], [1], [0, 0, 1, 1], [], []>} : vector<8x32xbf16>, vector<32x128xbf16>, vector<8x128xf32> -> vector<8x128xf32>
    %430 = arith.addf %380, %429 : vector<8x128xf32>
    %c4_i32_188 = arith.constant 4 : i32
    %431 = arith.muli %c1_i32_129, %c4_i32_188 : i32
    %c2_i32_189 = arith.constant 2 : i32
    %432 = arith.addi %431, %c2_i32_189 : i32
    %433 = arith.index_cast %432 : i32 to index
    %c0_190 = arith.constant 0 : index
    %c0_191 = arith.constant 0 : index
    %434 = vector.load %arg4[%433, %c0_190, %c0_191] : memref<8x128x32xbf16, #tpu.memory_space<vmem>>, vector<1x128x32xbf16>
    %435 = vector.shape_cast %434 : vector<1x128x32xbf16> to vector<128x32xbf16>
    %cst_192 = arith.constant dense<0.000000e+00> : vector<8x32xf32>
    %436 = tpu.matmul %329, %435, %cst_192 {dimension_numbers = #tpu.dot_dimension_numbers<[1], [0], [0], [1], [0, 0, 1, 1], [], []>} : vector<8x128xbf16>, vector<128x32xbf16>, vector<8x32xf32> -> vector<8x32xf32>
    %437 = arith.index_cast %432 : i32 to index
    %c0_193 = arith.constant 0 : index
    %c0_194 = arith.constant 0 : index
    %438 = vector.load %arg5[%437, %c0_193, %c0_194] : memref<8x1x32xf32, #tpu.memory_space<vmem>>, vector<1x1x32xf32>
    %439 = vector.shape_cast %438 : vector<1x1x32xf32> to vector<1x32xf32>
    %440 = vector.broadcast %439 : vector<1x32xf32> to vector<8x32xf32>
    %441 = arith.addf %436, %440 : vector<8x32xf32>
    %442 = arith.index_cast %432 : i32 to index
    %c0_195 = arith.constant 0 : index
    %c0_196 = arith.constant 0 : index
    %443 = vector.load %arg6[%442, %c0_195, %c0_196] : memref<8x128x32xbf16, #tpu.memory_space<vmem>>, vector<1x128x32xbf16>
    %444 = vector.shape_cast %443 : vector<1x128x32xbf16> to vector<128x32xbf16>
    %cst_197 = arith.constant dense<0.000000e+00> : vector<8x32xf32>
    %445 = tpu.matmul %329, %444, %cst_197 {dimension_numbers = #tpu.dot_dimension_numbers<[1], [0], [0], [1], [0, 0, 1, 1], [], []>} : vector<8x128xbf16>, vector<128x32xbf16>, vector<8x32xf32> -> vector<8x32xf32>
    %446 = arith.index_cast %432 : i32 to index
    %c0_198 = arith.constant 0 : index
    %c0_199 = arith.constant 0 : index
    %447 = vector.load %arg7[%446, %c0_198, %c0_199] : memref<8x1x32xf32, #tpu.memory_space<vmem>>, vector<1x1x32xf32>
    %448 = vector.shape_cast %447 : vector<1x1x32xf32> to vector<1x32xf32>
    %449 = vector.broadcast %448 : vector<1x32xf32> to vector<8x32xf32>
    %450 = arith.addf %445, %449 : vector<8x32xf32>
    %451 = arith.index_cast %432 : i32 to index
    %c0_200 = arith.constant 0 : index
    %c0_201 = arith.constant 0 : index
    %452 = vector.load %arg8[%451, %c0_200, %c0_201] : memref<8x128x32xbf16, #tpu.memory_space<vmem>>, vector<1x128x32xbf16>
    %453 = vector.shape_cast %452 : vector<1x128x32xbf16> to vector<128x32xbf16>
    %cst_202 = arith.constant dense<0.000000e+00> : vector<8x32xf32>
    %454 = tpu.matmul %329, %453, %cst_202 {dimension_numbers = #tpu.dot_dimension_numbers<[1], [0], [0], [1], [0, 0, 1, 1], [], []>} : vector<8x128xbf16>, vector<128x32xbf16>, vector<8x32xf32> -> vector<8x32xf32>
    %455 = arith.index_cast %432 : i32 to index
    %c0_203 = arith.constant 0 : index
    %c0_204 = arith.constant 0 : index
    %456 = vector.load %arg9[%455, %c0_203, %c0_204] : memref<8x1x32xf32, #tpu.memory_space<vmem>>, vector<1x1x32xf32>
    %457 = vector.shape_cast %456 : vector<1x1x32xf32> to vector<1x32xf32>
    %458 = vector.broadcast %457 : vector<1x32xf32> to vector<8x32xf32>
    %459 = arith.addf %454, %458 : vector<8x32xf32>
    %460 = vector.broadcast %cst_3 : f32 to vector<8x32xf32>
    %461 = arith.mulf %441, %460 : vector<8x32xf32>
    %cst_205 = arith.constant dense<0.000000e+00> : vector<8x8xf32>
    %462 = tpu.matmul %461, %450, %cst_205 {dimension_numbers = #tpu.dot_dimension_numbers<[1], [1], [0], [0], [0, 0, 1, 0], [], []>} : vector<8x32xf32>, vector<8x32xf32>, vector<8x8xf32> -> vector<8x8xf32>
    %463 = arith.addf %462, %7 : vector<8x8xf32>
    %cst_206 = arith.constant dense<0xFF800000> : vector<8xf32>
    %464 = vector.multi_reduction <maximumf>, %463, %cst_206 [1] : vector<8x8xf32> to vector<8xf32>
    %465 = vector.shape_cast %464 : vector<8xf32> to vector<8x1xf32>
    %466 = vector.broadcast %465 : vector<8x1xf32> to vector<8x8xf32>
    %467 = arith.subf %463, %466 : vector<8x8xf32>
    %468 = math.exp %467 : vector<8x8xf32>
    %cst_207 = arith.constant dense<0.000000e+00> : vector<8xf32>
    %469 = vector.multi_reduction <add>, %468, %cst_207 [1] : vector<8x8xf32> to vector<8xf32>
    %470 = vector.shape_cast %469 : vector<8xf32> to vector<8x1xf32>
    %471 = tpu.reciprocal %470 {approx = true} : vector<8x1xf32> -> vector<8x1xf32>
    %472 = vector.broadcast %471 : vector<8x1xf32> to vector<8x8xf32>
    %473 = arith.mulf %468, %472 : vector<8x8xf32>
    %cst_208 = arith.constant dense<0.000000e+00> : vector<8x32xf32>
    %474 = tpu.matmul %473, %459, %cst_208 {dimension_numbers = #tpu.dot_dimension_numbers<[1], [0], [0], [1], [0, 0, 1, 1], [], []>} : vector<8x8xf32>, vector<8x32xf32>, vector<8x32xf32> -> vector<8x32xf32>
    %475 = arith.truncf %474 : vector<8x32xf32> to vector<8x32xbf16>
    %476 = arith.index_cast %432 : i32 to index
    %c0_209 = arith.constant 0 : index
    %c0_210 = arith.constant 0 : index
    %477 = vector.load %arg10[%476, %c0_209, %c0_210] : memref<8x32x128xbf16, #tpu.memory_space<vmem>>, vector<1x32x128xbf16>
    %478 = vector.shape_cast %477 : vector<1x32x128xbf16> to vector<32x128xbf16>
    %cst_211 = arith.constant dense<0.000000e+00> : vector<8x128xf32>
    %479 = tpu.matmul %475, %478, %cst_211 {dimension_numbers = #tpu.dot_dimension_numbers<[1], [0], [0], [1], [0, 0, 1, 1], [], []>} : vector<8x32xbf16>, vector<32x128xbf16>, vector<8x128xf32> -> vector<8x128xf32>
    %480 = arith.addf %430, %479 : vector<8x128xf32>
    %c4_i32_212 = arith.constant 4 : i32
    %481 = arith.muli %c1_i32_129, %c4_i32_212 : i32
    %c3_i32_213 = arith.constant 3 : i32
    %482 = arith.addi %481, %c3_i32_213 : i32
    %483 = arith.index_cast %482 : i32 to index
    %c0_214 = arith.constant 0 : index
    %c0_215 = arith.constant 0 : index
    %484 = vector.load %arg4[%483, %c0_214, %c0_215] : memref<8x128x32xbf16, #tpu.memory_space<vmem>>, vector<1x128x32xbf16>
    %485 = vector.shape_cast %484 : vector<1x128x32xbf16> to vector<128x32xbf16>
    %cst_216 = arith.constant dense<0.000000e+00> : vector<8x32xf32>
    %486 = tpu.matmul %329, %485, %cst_216 {dimension_numbers = #tpu.dot_dimension_numbers<[1], [0], [0], [1], [0, 0, 1, 1], [], []>} : vector<8x128xbf16>, vector<128x32xbf16>, vector<8x32xf32> -> vector<8x32xf32>
    %487 = arith.index_cast %482 : i32 to index
    %c0_217 = arith.constant 0 : index
    %c0_218 = arith.constant 0 : index
    %488 = vector.load %arg5[%487, %c0_217, %c0_218] : memref<8x1x32xf32, #tpu.memory_space<vmem>>, vector<1x1x32xf32>
    %489 = vector.shape_cast %488 : vector<1x1x32xf32> to vector<1x32xf32>
    %490 = vector.broadcast %489 : vector<1x32xf32> to vector<8x32xf32>
    %491 = arith.addf %486, %490 : vector<8x32xf32>
    %492 = arith.index_cast %482 : i32 to index
    %c0_219 = arith.constant 0 : index
    %c0_220 = arith.constant 0 : index
    %493 = vector.load %arg6[%492, %c0_219, %c0_220] : memref<8x128x32xbf16, #tpu.memory_space<vmem>>, vector<1x128x32xbf16>
    %494 = vector.shape_cast %493 : vector<1x128x32xbf16> to vector<128x32xbf16>
    %cst_221 = arith.constant dense<0.000000e+00> : vector<8x32xf32>
    %495 = tpu.matmul %329, %494, %cst_221 {dimension_numbers = #tpu.dot_dimension_numbers<[1], [0], [0], [1], [0, 0, 1, 1], [], []>} : vector<8x128xbf16>, vector<128x32xbf16>, vector<8x32xf32> -> vector<8x32xf32>
    %496 = arith.index_cast %482 : i32 to index
    %c0_222 = arith.constant 0 : index
    %c0_223 = arith.constant 0 : index
    %497 = vector.load %arg7[%496, %c0_222, %c0_223] : memref<8x1x32xf32, #tpu.memory_space<vmem>>, vector<1x1x32xf32>
    %498 = vector.shape_cast %497 : vector<1x1x32xf32> to vector<1x32xf32>
    %499 = vector.broadcast %498 : vector<1x32xf32> to vector<8x32xf32>
    %500 = arith.addf %495, %499 : vector<8x32xf32>
    %501 = arith.index_cast %482 : i32 to index
    %c0_224 = arith.constant 0 : index
    %c0_225 = arith.constant 0 : index
    %502 = vector.load %arg8[%501, %c0_224, %c0_225] : memref<8x128x32xbf16, #tpu.memory_space<vmem>>, vector<1x128x32xbf16>
    %503 = vector.shape_cast %502 : vector<1x128x32xbf16> to vector<128x32xbf16>
    %cst_226 = arith.constant dense<0.000000e+00> : vector<8x32xf32>
    %504 = tpu.matmul %329, %503, %cst_226 {dimension_numbers = #tpu.dot_dimension_numbers<[1], [0], [0], [1], [0, 0, 1, 1], [], []>} : vector<8x128xbf16>, vector<128x32xbf16>, vector<8x32xf32> -> vector<8x32xf32>
    %505 = arith.index_cast %482 : i32 to index
    %c0_227 = arith.constant 0 : index
    %c0_228 = arith.constant 0 : index
    %506 = vector.load %arg9[%505, %c0_227, %c0_228] : memref<8x1x32xf32, #tpu.memory_space<vmem>>, vector<1x1x32xf32>
    %507 = vector.shape_cast %506 : vector<1x1x32xf32> to vector<1x32xf32>
    %508 = vector.broadcast %507 : vector<1x32xf32> to vector<8x32xf32>
    %509 = arith.addf %504, %508 : vector<8x32xf32>
    %510 = vector.broadcast %cst_3 : f32 to vector<8x32xf32>
    %511 = arith.mulf %491, %510 : vector<8x32xf32>
    %cst_229 = arith.constant dense<0.000000e+00> : vector<8x8xf32>
    %512 = tpu.matmul %511, %500, %cst_229 {dimension_numbers = #tpu.dot_dimension_numbers<[1], [1], [0], [0], [0, 0, 1, 0], [], []>} : vector<8x32xf32>, vector<8x32xf32>, vector<8x8xf32> -> vector<8x8xf32>
    %513 = arith.addf %512, %7 : vector<8x8xf32>
    %cst_230 = arith.constant dense<0xFF800000> : vector<8xf32>
    %514 = vector.multi_reduction <maximumf>, %513, %cst_230 [1] : vector<8x8xf32> to vector<8xf32>
    %515 = vector.shape_cast %514 : vector<8xf32> to vector<8x1xf32>
    %516 = vector.broadcast %515 : vector<8x1xf32> to vector<8x8xf32>
    %517 = arith.subf %513, %516 : vector<8x8xf32>
    %518 = math.exp %517 : vector<8x8xf32>
    %cst_231 = arith.constant dense<0.000000e+00> : vector<8xf32>
    %519 = vector.multi_reduction <add>, %518, %cst_231 [1] : vector<8x8xf32> to vector<8xf32>
    %520 = vector.shape_cast %519 : vector<8xf32> to vector<8x1xf32>
    %521 = tpu.reciprocal %520 {approx = true} : vector<8x1xf32> -> vector<8x1xf32>
    %522 = vector.broadcast %521 : vector<8x1xf32> to vector<8x8xf32>
    %523 = arith.mulf %518, %522 : vector<8x8xf32>
    %cst_232 = arith.constant dense<0.000000e+00> : vector<8x32xf32>
    %524 = tpu.matmul %523, %509, %cst_232 {dimension_numbers = #tpu.dot_dimension_numbers<[1], [0], [0], [1], [0, 0, 1, 1], [], []>} : vector<8x8xf32>, vector<8x32xf32>, vector<8x32xf32> -> vector<8x32xf32>
    %525 = arith.truncf %524 : vector<8x32xf32> to vector<8x32xbf16>
    %526 = arith.index_cast %482 : i32 to index
    %c0_233 = arith.constant 0 : index
    %c0_234 = arith.constant 0 : index
    %527 = vector.load %arg10[%526, %c0_233, %c0_234] : memref<8x32x128xbf16, #tpu.memory_space<vmem>>, vector<1x32x128xbf16>
    %528 = vector.shape_cast %527 : vector<1x32x128xbf16> to vector<32x128xbf16>
    %cst_235 = arith.constant dense<0.000000e+00> : vector<8x128xf32>
    %529 = tpu.matmul %525, %528, %cst_235 {dimension_numbers = #tpu.dot_dimension_numbers<[1], [0], [0], [1], [0, 0, 1, 1], [], []>} : vector<8x32xbf16>, vector<32x128xbf16>, vector<8x128xf32> -> vector<8x128xf32>
    %530 = arith.addf %480, %529 : vector<8x128xf32>
    %531 = arith.addf %300, %530 : vector<8x128xf32>
    %532 = arith.index_cast %c1_i32_129 : i32 to index
    %c0_236 = arith.constant 0 : index
    %c0_237 = arith.constant 0 : index
    %533 = vector.load %arg11[%532, %c0_236, %c0_237] : memref<2x1x128xf32, #tpu.memory_space<vmem>>, vector<1x1x128xf32>
    %534 = vector.shape_cast %533 : vector<1x1x128xf32> to vector<1x128xf32>
    %535 = vector.broadcast %534 : vector<1x128xf32> to vector<8x128xf32>
    %536 = arith.addf %531, %535 : vector<8x128xf32>
    %537 = arith.index_cast %c1_i32_129 : i32 to index
    %c0_238 = arith.constant 0 : index
    %c0_239 = arith.constant 0 : index
    %538 = vector.load %arg12[%537, %c0_238, %c0_239] : memref<2x1x128xf32, #tpu.memory_space<vmem>>, vector<1x1x128xf32>
    %539 = vector.shape_cast %538 : vector<1x1x128xf32> to vector<1x128xf32>
    %540 = arith.index_cast %c1_i32_129 : i32 to index
    %c0_240 = arith.constant 0 : index
    %c0_241 = arith.constant 0 : index
    %541 = vector.load %arg13[%540, %c0_240, %c0_241] : memref<2x1x128xf32, #tpu.memory_space<vmem>>, vector<1x1x128xf32>
    %542 = vector.shape_cast %541 : vector<1x1x128xf32> to vector<1x128xf32>
    %cst_242 = arith.constant dense<0.000000e+00> : vector<8xf32>
    %543 = vector.multi_reduction <add>, %536, %cst_242 [1] : vector<8x128xf32> to vector<8xf32>
    %544 = vector.shape_cast %543 : vector<8xf32> to vector<8x1xf32>
    %cst_243 = arith.constant 1.280000e+02 : f32
    %545 = vector.broadcast %cst_243 : f32 to vector<8x1xf32>
    %546 = arith.divf %544, %545 : vector<8x1xf32>
    %547 = vector.broadcast %546 : vector<8x1xf32> to vector<8x128xf32>
    %548 = arith.subf %536, %547 : vector<8x128xf32>
    %549 = arith.mulf %548, %548 : vector<8x128xf32>
    %cst_244 = arith.constant dense<0.000000e+00> : vector<8xf32>
    %550 = vector.multi_reduction <add>, %549, %cst_244 [1] : vector<8x128xf32> to vector<8xf32>
    %551 = vector.shape_cast %550 : vector<8xf32> to vector<8x1xf32>
    %cst_245 = arith.constant 1.280000e+02 : f32
    %552 = vector.broadcast %cst_245 : f32 to vector<8x1xf32>
    %553 = arith.divf %551, %552 : vector<8x1xf32>
    %554 = vector.broadcast %546 : vector<8x1xf32> to vector<8x128xf32>
    %555 = arith.subf %536, %554 : vector<8x128xf32>
    %cst_246 = arith.constant 9.99999974E-6 : f32
    %556 = vector.broadcast %cst_246 : f32 to vector<8x1xf32>
    %557 = arith.addf %553, %556 : vector<8x1xf32>
    %558 = math.rsqrt %557 : vector<8x1xf32>
    %559 = vector.broadcast %558 : vector<8x1xf32> to vector<8x128xf32>
    %560 = arith.mulf %555, %559 : vector<8x128xf32>
    %561 = vector.broadcast %539 : vector<1x128xf32> to vector<8x128xf32>
    %562 = arith.mulf %560, %561 : vector<8x128xf32>
    %563 = vector.broadcast %542 : vector<1x128xf32> to vector<8x128xf32>
    %564 = arith.addf %562, %563 : vector<8x128xf32>
    %565 = arith.truncf %564 : vector<8x128xf32> to vector<8x128xbf16>
    %566 = arith.index_cast %c1_i32_129 : i32 to index
    %c0_247 = arith.constant 0 : index
    %c0_248 = arith.constant 0 : index
    %567 = vector.load %arg14[%566, %c0_247, %c0_248] : memref<2x128x512xbf16, #tpu.memory_space<vmem>>, vector<1x128x512xbf16>
    %568 = vector.shape_cast %567 : vector<1x128x512xbf16> to vector<128x512xbf16>
    %cst_249 = arith.constant dense<0.000000e+00> : vector<8x512xf32>
    %569 = tpu.matmul %565, %568, %cst_249 {dimension_numbers = #tpu.dot_dimension_numbers<[1], [0], [0], [1], [0, 0, 1, 1], [], []>} : vector<8x128xbf16>, vector<128x512xbf16>, vector<8x512xf32> -> vector<8x512xf32>
    %570 = arith.index_cast %c1_i32_129 : i32 to index
    %c0_250 = arith.constant 0 : index
    %c0_251 = arith.constant 0 : index
    %571 = vector.load %arg15[%570, %c0_250, %c0_251] : memref<2x1x512xf32, #tpu.memory_space<vmem>>, vector<1x1x512xf32>
    %572 = vector.shape_cast %571 : vector<1x1x512xf32> to vector<1x512xf32>
    %573 = vector.broadcast %572 : vector<1x512xf32> to vector<8x512xf32>
    %574 = arith.addf %569, %573 : vector<8x512xf32>
    %cst_252 = arith.constant 1.702000e+00 : f32
    %575 = vector.broadcast %cst_252 : f32 to vector<8x512xf32>
    %576 = arith.mulf %575, %574 : vector<8x512xf32>
    %577 = arith.negf %576 : vector<8x512xf32>
    %578 = math.exp %577 : vector<8x512xf32>
    %cst_253 = arith.constant 1.000000e+00 : f32
    %579 = vector.broadcast %cst_253 : f32 to vector<8x512xf32>
    %580 = arith.addf %579, %578 : vector<8x512xf32>
    %581 = arith.divf %579, %580 : vector<8x512xf32>
    %582 = arith.mulf %574, %581 : vector<8x512xf32>
    %583 = arith.truncf %582 : vector<8x512xf32> to vector<8x512xbf16>
    %584 = arith.index_cast %c1_i32_129 : i32 to index
    %c0_254 = arith.constant 0 : index
    %c0_255 = arith.constant 0 : index
    %585 = vector.load %arg16[%584, %c0_254, %c0_255] : memref<2x512x128xbf16, #tpu.memory_space<vmem>>, vector<1x512x128xbf16>
    %586 = vector.shape_cast %585 : vector<1x512x128xbf16> to vector<512x128xbf16>
    %cst_256 = arith.constant dense<0.000000e+00> : vector<8x128xf32>
    %587 = tpu.matmul %583, %586, %cst_256 {dimension_numbers = #tpu.dot_dimension_numbers<[1], [0], [0], [1], [0, 0, 1, 1], [], []>} : vector<8x512xbf16>, vector<512x128xbf16>, vector<8x128xf32> -> vector<8x128xf32>
    %588 = arith.index_cast %c1_i32_129 : i32 to index
    %c0_257 = arith.constant 0 : index
    %c0_258 = arith.constant 0 : index
    %589 = vector.load %arg17[%588, %c0_257, %c0_258] : memref<2x1x128xf32, #tpu.memory_space<vmem>>, vector<1x1x128xf32>
    %590 = vector.shape_cast %589 : vector<1x1x128xf32> to vector<1x128xf32>
    %591 = vector.broadcast %590 : vector<1x128xf32> to vector<8x128xf32>
    %592 = arith.addf %587, %591 : vector<8x128xf32>
    %593 = arith.addf %536, %592 : vector<8x128xf32>
    %c2_i32_259 = arith.constant 2 : i32
    %c0_260 = arith.constant 0 : index
    %c0_261 = arith.constant 0 : index
    %594 = vector.load %arg18[%c0_260, %c0_261] : memref<1x128xf32, #tpu.memory_space<vmem>>, vector<1x128xf32>
    %c0_262 = arith.constant 0 : index
    %c0_263 = arith.constant 0 : index
    %595 = vector.load %arg19[%c0_262, %c0_263] : memref<1x128xf32, #tpu.memory_space<vmem>>, vector<1x128xf32>
    %cst_264 = arith.constant dense<0.000000e+00> : vector<8xf32>
    %596 = vector.multi_reduction <add>, %593, %cst_264 [1] : vector<8x128xf32> to vector<8xf32>
    %597 = vector.shape_cast %596 : vector<8xf32> to vector<8x1xf32>
    %cst_265 = arith.constant 1.280000e+02 : f32
    %598 = vector.broadcast %cst_265 : f32 to vector<8x1xf32>
    %599 = arith.divf %597, %598 : vector<8x1xf32>
    %600 = vector.broadcast %599 : vector<8x1xf32> to vector<8x128xf32>
    %601 = arith.subf %593, %600 : vector<8x128xf32>
    %602 = arith.mulf %601, %601 : vector<8x128xf32>
    %cst_266 = arith.constant dense<0.000000e+00> : vector<8xf32>
    %603 = vector.multi_reduction <add>, %602, %cst_266 [1] : vector<8x128xf32> to vector<8xf32>
    %604 = vector.shape_cast %603 : vector<8xf32> to vector<8x1xf32>
    %cst_267 = arith.constant 1.280000e+02 : f32
    %605 = vector.broadcast %cst_267 : f32 to vector<8x1xf32>
    %606 = arith.divf %604, %605 : vector<8x1xf32>
    %607 = vector.broadcast %599 : vector<8x1xf32> to vector<8x128xf32>
    %608 = arith.subf %593, %607 : vector<8x128xf32>
    %cst_268 = arith.constant 9.99999974E-6 : f32
    %609 = vector.broadcast %cst_268 : f32 to vector<8x1xf32>
    %610 = arith.addf %606, %609 : vector<8x1xf32>
    %611 = math.rsqrt %610 : vector<8x1xf32>
    %612 = vector.broadcast %611 : vector<8x1xf32> to vector<8x128xf32>
    %613 = arith.mulf %608, %612 : vector<8x128xf32>
    %614 = vector.broadcast %594 : vector<1x128xf32> to vector<8x128xf32>
    %615 = arith.mulf %613, %614 : vector<8x128xf32>
    %616 = vector.broadcast %595 : vector<1x128xf32> to vector<8x128xf32>
    %617 = arith.addf %615, %616 : vector<8x128xf32>
    %c0_269 = arith.constant 0 : index
    %c0_270 = arith.constant 0 : index
    %c0_271 = arith.constant 0 : index
    %618 = vector.load %arg20[%c0_269, %c0_270, %c0_271] : memref<1x8x128xf32, #tpu.memory_space<vmem>>, vector<1x8x128xf32>
    %619 = vector.shape_cast %618 : vector<1x8x128xf32> to vector<8x128xf32>
    %620 = vector.shape_cast %617 : vector<8x128xf32> to vector<1x8x128xf32>
    tpu.vector_store %arg20[%c0_269, %c0_270, %c0_271], %620 {strides = array<i32>} : memref<1x8x128xf32, #tpu.memory_space<vmem>>, vector<1x8x128xf32>,
    return
  }
  func.func @transform_0(%arg0: i32) -> (i32, i32, i32) {
    %c0_i32 = arith.constant 0 : i32
    %c0_i32_0 = arith.constant 0 : i32
    %c0_i32_1 = arith.constant 0 : i32
    return %arg0, %c0_i32, %c0_i32_0 : i32, i32, i32
  }
  func.func @transform_1(%arg0: i32) -> (i32, i32, i32) {
    %c0_i32 = arith.constant 0 : i32
    %c0_i32_0 = arith.constant 0 : i32
    %c0_i32_1 = arith.constant 0 : i32
    %c0_i32_2 = arith.constant 0 : i32
    return %c0_i32, %c0_i32_0, %c0_i32_1 : i32, i32, i32
  }
  func.func @transform_2(%arg0: i32) -> (i32, i32, i32) {
    %c0_i32 = arith.constant 0 : i32
    %c0_i32_0 = arith.constant 0 : i32
    %c0_i32_1 = arith.constant 0 : i32
    %c0_i32_2 = arith.constant 0 : i32
    return %c0_i32, %c0_i32_0, %c0_i32_1 : i32, i32, i32
  }
  func.func @transform_3(%arg0: i32) -> (i32, i32, i32) {
    %c0_i32 = arith.constant 0 : i32
    %c0_i32_0 = arith.constant 0 : i32
    %c0_i32_1 = arith.constant 0 : i32
    %c0_i32_2 = arith.constant 0 : i32
    return %c0_i32, %c0_i32_0, %c0_i32_1 : i32, i32, i32
  }
  func.func @transform_4(%arg0: i32) -> (i32, i32, i32) {
    %c0_i32 = arith.constant 0 : i32
    %c0_i32_0 = arith.constant 0 : i32
    %c0_i32_1 = arith.constant 0 : i32
    %c0_i32_2 = arith.constant 0 : i32
    return %c0_i32, %c0_i32_0, %c0_i32_1 : i32, i32, i32
  }
  func.func @transform_5(%arg0: i32) -> (i32, i32, i32) {
    %c0_i32 = arith.constant 0 : i32
    %c0_i32_0 = arith.constant 0 : i32
    %c0_i32_1 = arith.constant 0 : i32
    %c0_i32_2 = arith.constant 0 : i32
    return %c0_i32, %c0_i32_0, %c0_i32_1 : i32, i32, i32
  }
  func.func @transform_6(%arg0: i32) -> (i32, i32, i32) {
    %c0_i32 = arith.constant 0 : i32
    %c0_i32_0 = arith.constant 0 : i32
    %c0_i32_1 = arith.constant 0 : i32
    %c0_i32_2 = arith.constant 0 : i32
    return %c0_i32, %c0_i32_0, %c0_i32_1 : i32, i32, i32
  }
  func.func @transform_7(%arg0: i32) -> (i32, i32, i32) {
    %c0_i32 = arith.constant 0 : i32
    %c0_i32_0 = arith.constant 0 : i32
    %c0_i32_1 = arith.constant 0 : i32
    %c0_i32_2 = arith.constant 0 : i32
    return %c0_i32, %c0_i32_0, %c0_i32_1 : i32, i32, i32
  }
  func.func @transform_8(%arg0: i32) -> (i32, i32, i32) {
    %c0_i32 = arith.constant 0 : i32
    %c0_i32_0 = arith.constant 0 : i32
    %c0_i32_1 = arith.constant 0 : i32
    %c0_i32_2 = arith.constant 0 : i32
    return %c0_i32, %c0_i32_0, %c0_i32_1 : i32, i32, i32
  }
  func.func @transform_9(%arg0: i32) -> (i32, i32, i32) {
    %c0_i32 = arith.constant 0 : i32
    %c0_i32_0 = arith.constant 0 : i32
    %c0_i32_1 = arith.constant 0 : i32
    %c0_i32_2 = arith.constant 0 : i32
    return %c0_i32, %c0_i32_0, %c0_i32_1 : i32, i32, i32
  }
  func.func @transform_10(%arg0: i32) -> (i32, i32, i32) {
    %c0_i32 = arith.constant 0 : i32
    %c0_i32_0 = arith.constant 0 : i32
    %c0_i32_1 = arith.constant 0 : i32
    %c0_i32_2 = arith.constant 0 : i32
    return %c0_i32, %c0_i32_0, %c0_i32_1 : i32, i32, i32
  }
  func.func @transform_11(%arg0: i32) -> (i32, i32, i32) {
    %c0_i32 = arith.constant 0 : i32
    %c0_i32_0 = arith.constant 0 : i32
    %c0_i32_1 = arith.constant 0 : i32
    %c0_i32_2 = arith.constant 0 : i32
    return %c0_i32, %c0_i32_0, %c0_i32_1 : i32, i32, i32
  }
  func.func @transform_12(%arg0: i32) -> (i32, i32, i32) {
    %c0_i32 = arith.constant 0 : i32
    %c0_i32_0 = arith.constant 0 : i32
    %c0_i32_1 = arith.constant 0 : i32
    %c0_i32_2 = arith.constant 0 : i32
    return %c0_i32, %c0_i32_0, %c0_i32_1 : i32, i32, i32
  }
  func.func @transform_13(%arg0: i32) -> (i32, i32, i32) {
    %c0_i32 = arith.constant 0 : i32
    %c0_i32_0 = arith.constant 0 : i32
    %c0_i32_1 = arith.constant 0 : i32
    %c0_i32_2 = arith.constant 0 : i32
    return %c0_i32, %c0_i32_0, %c0_i32_1 : i32, i32, i32
  }
  func.func @transform_14(%arg0: i32) -> (i32, i32, i32) {
    %c0_i32 = arith.constant 0 : i32
    %c0_i32_0 = arith.constant 0 : i32
    %c0_i32_1 = arith.constant 0 : i32
    %c0_i32_2 = arith.constant 0 : i32
    return %c0_i32, %c0_i32_0, %c0_i32_1 : i32, i32, i32
  }
  func.func @transform_15(%arg0: i32) -> (i32, i32, i32) {
    %c0_i32 = arith.constant 0 : i32
    %c0_i32_0 = arith.constant 0 : i32
    %c0_i32_1 = arith.constant 0 : i32
    %c0_i32_2 = arith.constant 0 : i32
    return %c0_i32, %c0_i32_0, %c0_i32_1 : i32, i32, i32
  }
  func.func @transform_16(%arg0: i32) -> (i32, i32, i32) {
    %c0_i32 = arith.constant 0 : i32
    %c0_i32_0 = arith.constant 0 : i32
    %c0_i32_1 = arith.constant 0 : i32
    %c0_i32_2 = arith.constant 0 : i32
    return %c0_i32, %c0_i32_0, %c0_i32_1 : i32, i32, i32
  }
  func.func @transform_17(%arg0: i32) -> (i32, i32) {
    %c0_i32 = arith.constant 0 : i32
    %c0_i32_0 = arith.constant 0 : i32
    %c0_i32_1 = arith.constant 0 : i32
    return %c0_i32, %c0_i32_0 : i32, i32
  }
  func.func @transform_18(%arg0: i32) -> (i32, i32) {
    %c0_i32 = arith.constant 0 : i32
    %c0_i32_0 = arith.constant 0 : i32
    %c0_i32_1 = arith.constant 0 : i32
    return %c0_i32, %c0_i32_0 : i32, i32
  }
  func.func @transform_19(%arg0: i32) -> (i32, i32, i32) {
    %c0_i32 = arith.constant 0 : i32
    %c0_i32_0 = arith.constant 0 : i32
    %c0_i32_1 = arith.constant 0 : i32
    return %arg0, %c0_i32, %c0_i32_0 : i32, i32, i32
  }
}

</mosaic_0001>

<bundles_post_ra>
// kernel: text_encoder_forward.1
= control target key start
LH: loop header
LB: loop body
LE: loop exit
PB: predicated region body
PF: predicated region fallthrough
CT: control target
= control target key end

     0   :  { %s10744_s0 = inlined_call_operand.vmem [shape: f32[2,8,128], index: 0, kind: input, shape index: {}]   ;;  %s10745_s1 = inlined_call_operand.vmem [shape: f32[2,1,128], index: 1, kind: input, shape index: {}]   ;;  %s10746_s2 = inlined_call_operand.vmem [shape: f32[2,1,128], index: 2, kind: input, shape index: {}]   ;;  %s10747_s3 = inlined_call_operand.vmem [shape: bf16[8,128,32], index: 3, kind: input, shape index: {}]   ;;  %s10748_s4 = inlined_call_operand.vmem [shape: f32[8,1,32], index: 4, kind: input, shape index: {}]   ;;  %s10749_s5 = inlined_call_operand.vmem [shape: bf16[8,128,32], index: 5, kind: input, shape index: {}]   ;;  %s10750_s6 = inlined_call_operand.vmem [shape: f32[8,1,32], index: 6, kind: input, shape index: {}]   ;;  %s10751_s7 = inlined_call_operand.vmem [shape: bf16[8,128,32], index: 7, kind: input, shape index: {}]   ;;  %s10752_s8 = inlined_call_operand.vmem [shape: f32[8,1,32], index: 8, kind: input, shape index: {}]   ;;  %s10753_s9 = inlined_call_operand.vmem [shape: bf16[8,32,128], index: 9, kind: input, shape index: {}]   ;;  %s10754_s10 = inlined_call_operand.vmem [shape: f32[2,1,128], index: 10, kind: input, shape index: {}]   ;;  %s10755_s11 = inlined_call_operand.vmem [shape: f32[2,1,128], index: 11, kind: input, shape index: {}]   ;;  %s10756_s12 = inlined_call_operand.vmem [shape: f32[2,1,128], index: 12, kind: input, shape index: {}]   ;;  %s10757_s13 = inlined_call_operand.vmem [shape: bf16[2,128,512], index: 13, kind: input, shape index: {}]   ;;  %s10758_s14 = inlined_call_operand.vmem [shape: f32[2,1,512], index: 14, kind: input, shape index: {}]   ;;  %s10759_s15 = inlined_call_operand.vmem [shape: bf16[2,512,128], index: 15, kind: input, shape index: {}]   ;;  %s10760_s16 = inlined_call_operand.vmem [shape: f32[2,1,128], index: 16, kind: input, shape index: {}]   ;;  %s10761_s17 = inlined_call_operand.vmem [shape: f32[1,128], index: 17, kind: input, shape index: {}]   ;;  %s10762_s18 = inlined_call_operand.vmem [shape: f32[1,128], index: 18, kind: input, shape index: {}]   ;;  %s10763_s19 = inlined_call_operand.vmem [shape: f32[2,8,128], index: 19, kind: output, shape index: {}]  }
   0x1   :  { %10769 = sst [smem:[#allocation3_spill]] %s10744_s0  ;;  %s9128_s0 = smov 0  }
   0x2   :  { %10770 = sst [smem:[#allocation4_spill]] %s10745_s1 }
   0x3   :  { %10771 = sst [smem:[#allocation5_spill]] %s10746_s2 }
   0x4   :  { %10772 = sst [smem:[#allocation6_spill]] %s10747_s3 }
   0x5 LB: > { %10773 = sst [smem:[#allocation2_spill]] %s9022_s0  ;;  %s6666_s30 = sadd.s32 4294967295, %s9022_s0   ;;  %s9022_s0 = sphi %s9128_s0, %s29_s0  }
   0x6   : > { %p6670_p0 = scmp.ge.s32.totalorder %s9022_s0, 1  ;;  %p536_p1 = scmp.lt.s32.totalorder %s9022_s0, 3 }
   0x8   : > { %p537_p2 = pnand %p6670_p0, %p536_p1 }
   0x9   : > { %p590_p3 = scmp.lt.s32.totalorder (!%p537_p2), %s6666_s30, 1  ;;  %s10774_s22 = sld [smem:[#allocation3_spill]] (!%p537_p2)  ;;  %v8574_v2 = vld [vmem:[%s10749_s5] sm:$0xff] (!%p537_p2)   ;;  %v9024_v3 = vmov (!%p537_p2), 0.0   ;;  %v8576_v5 = vld [vmem:[%s10749_s5 + $0x8] sm:$0xff] (!%p537_p2)   ;;  %v8578_v11 = vld [vmem:[%s10749_s5 + $0x10] sm:$0xff] (!%p537_p2)  }
   0xa   : > { %540 = sbr.rel (%p537_p2) target bundleno = 10391 (0x2897), region = 96  ;;  %s10775_s25 = sld [smem:[#allocation6_spill]] (!%p537_p2)  ;;  %7937 = vmatprep.subr.bf16.mxu0 (!%p537_p2), %v9024_v3  ;;  %7957 = vmatprep.subr.bf16.mxu1 (!%p537_p2), %v9024_v3  ;;  %v8580_v13 = vld [vmem:[%s10749_s5 + $0x18] sm:$0xff] (!%p537_p2)   ;;  %v8582_v15 = vld [vmem:[%s10749_s5 + $0x20] sm:$0xff] (!%p537_p2)   ;;  %v8584_v17 = vld [vmem:[%s10749_s5 + $0x28] sm:$0xff] (!%p537_p2)   ;;  %vm9025_vm0 = vmmov (!%p537_p2), 0  }
   0xb   : > { %7958 = vmatpush3.bf16.msra.mxu1 (!%p537_p2), %v8574_v2  ;;  %v8586_v19 = vld [vmem:[%s10749_s5 + $0x30] sm:$0xff] (!%p537_p2)   ;;  %v8588_v21 = vld [vmem:[%s10749_s5 + $0x38] sm:$0xff] (!%p537_p2)   ;;  %7953 = vmatprep.mubr.msk.bf16.mxu0 (!%p537_p2), %vm9025_vm0, %v9024_v3  ;;  %s10776_s27 = sld [smem:[#allocation4_spill]] (!%p537_p2)  ;;  %s10777_s21 = sld [smem:[#allocation5_spill]] (!%p537_p2)  ;;  %v8589_v31 = vld [vmem:[%s10751_s7] sm:$0xff] (!%p537_p2)   ;;  %vm969_vm1 = vcmask (!%p537_p2), 261120  }
   0xc   : > { %7959 = vmatprep.subr.bf16.mxu1 (!%p537_p2), %v9024_v3  ;;  %7973 = vmatprep.mubr.msk.bf16.mxu1 (!%p537_p2), %vm9025_vm0, %v9024_v3  ;;  %v8590_v33 = vld [vmem:[%s10751_s7 + $0x8] sm:$0xff] (!%p537_p2)   ;;  %v8591_v34 = vld [vmem:[%s10751_s7 + $0x10] sm:$0xff] (!%p537_p2)   ;;  %v8592_v35 = vld [vmem:[%s10751_s7 + $0x18] sm:$0xff] (!%p537_p2)   ;;  %vm1046_vm3 = vcmask (!%p537_p2), 64512  }
   0xd   : > { %v8593_v36 = vld [vmem:[%s10751_s7 + $0x20] sm:$0xff] (!%p537_p2)   ;;  %v8594_v37 = vld [vmem:[%s10751_s7 + $0x28] sm:$0xff] (!%p537_p2)   ;;  %v8595_v38 = vld [vmem:[%s10751_s7 + $0x30] sm:$0xff] (!%p537_p2)  }
   0xe   : > { %v8596_v39 = vld [vmem:[%s10751_s7 + $0x38] sm:$0xff] (!%p537_p2)   ;;  %v8597_v40 = vld [vmem:[%s10749_s5 + $0x40] sm:$0xff] (!%p537_p2)   ;;  %v8598_v41 = vld [vmem:[%s10749_s5 + $0x48] sm:$0xff] (!%p537_p2)  }
   0xf   : > { %7960 = vmatpush3.bf16.msra.mxu1 (!%p537_p2), %v8576_v5  ;;  %v8599_v42 = vld [vmem:[%s10749_s5 + $0x50] sm:$0xff] (!%p537_p2)   ;;  %v8600_v43 = vld [vmem:[%s10749_s5 + $0x58] sm:$0xff] (!%p537_p2)   ;;  %v8601_v44 = vld [vmem:[%s10749_s5 + $0x60] sm:$0xff] (!%p537_p2)  }
  0x10   : > { %v8573_v1 = vld [vmem:[%s10775_s25] sm:$0xff] (!%p537_p2)   ;;  %v8575_v4 = vld [vmem:[%s10775_s25 + $0x8] sm:$0xff] (!%p537_p2)   ;;  %v8577_v6 = vld [vmem:[%s10775_s25 + $0x10] sm:$0xff] (!%p537_p2)   ;;  %7961 = vmatprep.subr.bf16.mxu1 (!%p537_p2), %v9024_v3 }
  0x11   : > { %s10781_s30 = smov (!%p590_p3, %s6666_s30), 1  ;;  %7938 = vmatpush3.bf16.msra.mxu0 %v8573_v1  ;;  %v8579_v12 = vld [vmem:[%s10775_s25 + $0x18] sm:$0xff]   ;;  %v8581_v14 = vld [vmem:[%s10775_s25 + $0x20] sm:$0xff]   ;;  %v8583_v16 = vld [vmem:[%s10775_s25 + $0x28] sm:$0xff]  }
  0x12   : > { %s10767_s20 = sshll.u32 %s10781_s30, 3  ;;  %7939 = vmatprep.subr.bf16.mxu0 %v9024_v3  ;;  %v8585_v18 = vld [vmem:[%s10775_s25 + $0x30] sm:$0xff]   ;;  %v8587_v20 = vld [vmem:[%s10775_s25 + $0x38] sm:$0xff]   ;;  %v6673_v26 = vld [vmem:[%s10776_s27] ss:$0 sm:$0xff]  ;;  %s10778_s0 = sshll.u32 %s10781_s30, 3 }
  0x13   : > { %s9144_s2 = scalar_lea.vmem %s10774_s22, %s10767_s20  ;;  %7962 = vmatpush3.bf16.msra.mxu1 %v8578_v11  ;;  %v6674_v28 = vld [vmem:[%s10777_s21] ss:$0 sm:$0xff]  ;;  %v8602_v45 = vld [vmem:[%s10749_s5 + $0x68] sm:$0xff]   ;;  %v8603_v46 = vld [vmem:[%s10749_s5 + $0x70] sm:$0xff]   ;;  %s597_s23 = scalar_lea.vmem %s10763_s19, %s10778_s0 }
  0x14   : > { %v599_v0 = vld [vmem:[%s9144_s2] sm:$0xff]  ;;  %7963 = vmatprep.subr.bf16.mxu1 %v9024_v3  ;;  %v8604_v47 = vld [vmem:[%s10749_s5 + $0x78] sm:$0xff]  }
  0x15   : > { %608 = vadd.xlane.f32.xlu0 %v599_v0  ;;  %7940 = vmatpush3.bf16.msra.mxu0 %v8575_v4  ;;  %v6675_v48 = vld [vmem:[%s10748_s4] ss:$0 sm:$0xff]  ;;  %v6748_v4 = vld [vmem:[%s10750_s6 + $0x1] ss:$0 sm:$0xff] }
  0x16   : > { %7941 = vmatprep.subr.bf16.mxu0 %v9024_v3  ;;  %v6684_v49 = vld [vmem:[%s10750_s6] ss:$0 sm:$0xff] }
  0x17   : > { %7964 = vmatpush3.bf16.msra.mxu1 %v8580_v13  ;;  %v6693_v61 = vld [vmem:[%s10752_s8] ss:$0 sm:$0xff]  ;;  %v9026_v13 = vmov -1e+09  }
  0x18   : > { %7965 = vmatprep.subr.bf16.mxu1 %v9024_v3 }
  0x19   : > { %7942 = vmatpush3.bf16.msra.mxu0 %v8577_v6 }
  0x1a   : > { %7943 = vmatprep.subr.bf16.mxu0 %v9024_v3 }
  0x1b   : > { %7966 = vmatpush3.bf16.msra.mxu1 %v8582_v15 }
  0x1c   : > { %7967 = vmatprep.subr.bf16.mxu1 %v9024_v3 }
  0x1d   : > { %7944 = vmatpush3.bf16.msra.mxu0 %v8579_v12 }
  0x1e   : > { %7945 = vmatprep.subr.bf16.mxu0 %v9024_v3 }
  0x1f   : > { %7968 = vmatpush3.bf16.msra.mxu1 %v8584_v17 }
  0x20   : > { %7969 = vmatprep.subr.bf16.mxu1 %v9024_v3 }
  0x21   : > { %7946 = vmatpush3.bf16.msra.mxu0 %v8581_v14 }
  0x22   : > { %7947 = vmatprep.subr.bf16.mxu0 %v9024_v3 }
  0x23   : > { %7970 = vmatpush3.bf16.msra.mxu1 %v8586_v19 }
  0x24   : > { %7971 = vmatprep.subr.bf16.mxu1 %v9024_v3 }
  0x25   : > { %7948 = vmatpush3.bf16.msra.mxu0 %v8583_v16 }
  0x26   : > { %7949 = vmatprep.subr.bf16.mxu0 %v9024_v3 }
  0x27   : > { %7972 = vmatpush3.bf16.msra.mxu1 %v8588_v21 }
  0x28   : > { %7997 = vmatprep.subr.mxu1 %v9024_v3 }
  0x29   : > { %7950 = vmatpush3.bf16.msra.mxu0 %v8585_v18 }
  0x2a   : > { %7951 = vmatprep.subr.bf16.mxu0 %v9024_v3 }
  0x2d   : > { %7952 = vmatpush3.bf16.msra.mxu0 %v8587_v20 }
  0x2e   : > { %7977 = vmatprep.subr.bf16.mxu0 %v9024_v3 }
  0xa2   : > { %v609_v7 = vpop.xlane.xlu0 %608 }
  0xa3   : > { %v611_v8 = vmul.f32 0.0078125, %v609_v7 }
  0xa5   : > { %v612_v9 = vsub.f32 %v599_v0, %v611_v8 }
  0xa7   : > { %v613_v10 = vmul.f32 %v612_v9, %v612_v9 }
  0xa9   : > { %614 = vadd.xlane.f32.xlu0 %v613_v10  ;;  %v600_v10 = vlaneseq }
  0xab   : > { %v9321_v11 = vshrl.u32 %v600_v10, 7  ;;  %v603_v12 = vand.u32 127, %v600_v10 }
  0xad   : > { %vm604_vm2 = vcmp.le.s32.totalorder %v603_v12, %v9321_v11  ;;  %v6839_v12 = vld [vmem:[%s10750_s6 + $0x2] ss:$0 sm:$0xff] }
  0xae   : > { %v9324_v14 = vsel %vm604_vm2, 0.0, %v9026_v13 }
 0x136   : > { %v615_v22 = vpop.xlane.xlu0 %614 }
 0x137   : > { %v616_v23 = vmul.f32 0.0078125, %v615_v22 }
 0x139   : > { %v617_v24 = vadd.f32 1e-05, %v616_v23 }
 0x13b   : > { %8941 = vrsqrt.f32 %v617_v24 }
 0x145   : > { %v8942_v25 = vpop.eup %8941 }
 0x146   : > { %v619_v27 = vmul.f32 %v8942_v25, %v612_v9 }
 0x148   : > { %v626_v29 = vmul.f32 %v6673_v26, %v619_v27  ;;  %v8605_v26 = vld [vmem:[%s10775_s25 + $0x40] sm:$0xff]  }
 0x14a   : > { %v633_v30 = vadd.f32 %v6674_v28, %v626_v29  ;;  %v8606_v28 = vld [vmem:[%s10775_s25 + $0x48] sm:$0xff]   ;;  %v8607_v29 = vld [vmem:[%s10775_s25 + $0x50] sm:$0xff]  }
 0x14c   : > { %v9226_v32 = vpack.c.bf16 %v633_v30, %v633_v30  ;;  %v8608_v30 = vld [vmem:[%s10775_s25 + $0x58] sm:$0xff]  }
 0x14e   : > { %7954 = vmatmul.mubr.bf16.vlgmr.msra.gmra.mrb[0].mxu0 %v9226_v32  ;;  %7974 = vmatmul.mubr.bf16.vlgmr.msra.gmra.mrb[0].mxu1 %v9226_v32 }
 0x14f   : > { %7978 = vmatpush3.bf16.msra.mxu0 %v8589_v31  ;;  %7993 = vmatprep.mubr.msk.bf16.mxu0 %vm9025_vm0, %v9024_v3  ;;  %v8609_v31 = vld [vmem:[%s10775_s25 + $0x60] sm:$0xff]  }
 0x150   : > { %7979 = vmatprep.subr.bf16.mxu0 %v9024_v3  ;;  %7999 = vmatprep.mubr.msk.f32.mxu1 %vm9025_vm0, %v9024_v3 }
 0x153   : > { %7980 = vmatpush3.bf16.msra.mxu0 %v8590_v33  ;;  %v8610_v33 = vld [vmem:[%s10775_s25 + $0x68] sm:$0xff]  }
 0x154   : > { %7981 = vmatprep.subr.bf16.mxu0 %v9024_v3 }
 0x157   : > { %7982 = vmatpush3.bf16.msra.mxu0 %v8591_v34  ;;  %v8611_v34 = vld [vmem:[%s10775_s25 + $0x70] sm:$0xff]  }
 0x158   : > { %7983 = vmatprep.subr.bf16.mxu0 %v9024_v3 }
 0x15b   : > { %7984 = vmatpush3.bf16.msra.mxu0 %v8592_v35  ;;  %v8612_v35 = vld [vmem:[%s10775_s25 + $0x78] sm:$0xff]  }
 0x15c   : > { %7985 = vmatprep.subr.bf16.mxu0 %v9024_v3 }
 0x15f   : > { %7986 = vmatpush3.bf16.msra.mxu0 %v8593_v36  ;;  %v8613_v36 = vld [vmem:[%s10751_s7 + $0x40] sm:$0xff]  }
 0x160   : > { %7987 = vmatprep.subr.bf16.mxu0 %v9024_v3 }
 0x163   : > { %7988 = vmatpush3.bf16.msra.mxu0 %v8594_v37  ;;  %v8614_v37 = vld [vmem:[%s10751_s7 + $0x48] sm:$0xff]  }
 0x164   : > { %7989 = vmatprep.subr.bf16.mxu0 %v9024_v3 }
 0x167   : > { %7990 = vmatpush3.bf16.msra.mxu0 %v8595_v38  ;;  %v8615_v38 = vld [vmem:[%s10751_s7 + $0x50] sm:$0xff]  }
 0x168   : > { %7991 = vmatprep.subr.bf16.mxu0 %v9024_v3 }
 0x16b   : > { %7992 = vmatpush3.bf16.msra.mxu0 %v8596_v39  ;;  %v8616_v39 = vld [vmem:[%s10751_s7 + $0x58] sm:$0xff]  }
 0x16c   : > { %8027 = vmatprep.subr.bf16.mxu0 %v9024_v3 }
 0x16e   : > { %7994 = vmatmul.mubr.bf16.vlgmr.msra.gmra.mrb[4].mxu0 %v9226_v32 }
 0x16f   : > { %8028 = vmatpush3.bf16.msra.mxu0 %v8597_v40  ;;  %8043 = vmatprep.mubr.msk.bf16.mxu0 %vm9025_vm0, %v9024_v3  ;;  %v8617_v40 = vld [vmem:[%s10751_s7 + $0x60] sm:$0xff]  }
 0x170   : > { %8029 = vmatprep.subr.bf16.mxu0 %v9024_v3 }
 0x173   : > { %8030 = vmatpush3.bf16.msra.mxu0 %v8598_v41  ;;  %v8618_v41 = vld [vmem:[%s10751_s7 + $0x68] sm:$0xff]  }
 0x174   : > { %8031 = vmatprep.subr.bf16.mxu0 %v9024_v3 }
 0x177   : > { %8032 = vmatpush3.bf16.msra.mxu0 %v8599_v42  ;;  %v8619_v42 = vld [vmem:[%s10751_s7 + $0x70] sm:$0xff]  }
 0x178   : > { %8033 = vmatprep.subr.bf16.mxu0 %v9024_v3 }
 0x17b   : > { %8034 = vmatpush3.bf16.msra.mxu0 %v8600_v43  ;;  %v8620_v43 = vld [vmem:[%s10751_s7 + $0x78] sm:$0xff]  }
 0x17c   : > { %8035 = vmatprep.subr.bf16.mxu0 %v9024_v3 }
 0x17f   : > { %8036 = vmatpush3.bf16.msra.mxu0 %v8601_v44  ;;  %v8621_v44 = vld [vmem:[%s10753_s9] sm:$0xff]  }
 0x180   : > { %8037 = vmatprep.subr.bf16.mxu0 %v9024_v3 }
 0x183   : > { %8038 = vmatpush3.bf16.msra.mxu0 %v8602_v45  ;;  %v8622_v45 = vld [vmem:[%s10753_s9 + $0x8] sm:$0xff]  }
 0x184   : > { %8039 = vmatprep.subr.bf16.mxu0 %v9024_v3 }
 0x187   : > { %8040 = vmatpush3.bf16.msra.mxu0 %v8603_v46 }
 0x188   : > { %8041 = vmatprep.subr.bf16.mxu0 %v9024_v3 }
 0x18b   : > { %8042 = vmatpush3.bf16.msra.mxu0 %v8604_v47  ;;  %v8623_v47 = vld [vmem:[%s10749_s5 + $0x80] sm:$0xff]  }
 0x18c   : > { %8067 = vmatprep.subr.mxu0 %v9024_v3 }
 0x18e   : > { %8044 = vmatmul.mubr.bf16.vlgmr.msra.gmra.mrb[8].mxu0 %v9226_v32 }
 0x18f   : > { %8069 = vmatprep.mubr.msk.f32.mxu0 %vm9025_vm0, %v9024_v3 }
 0x221   : > { %v740_v50 = vpop.f32.mrb[0].mxu0  ;;  %v851_v51 = vpop.f32.mrb[0].mxu1 }
 0x222   : > { %v741_v52 = vadd.f32 %v6675_v48, %v740_v50  ;;  %v852_v53 = vadd.f32 %v6684_v49, %v851_v51  ;;  %v7955_v54 = vpop.f32.mrb[1].mxu0  ;;  %v7975_v55 = vpop.f32.mrb[1].mxu1  ;;  %v8624_v50 = vld [vmem:[%s10749_s5 + $0x88] sm:$0xff]   ;;  %v8625_v51 = vld [vmem:[%s10749_s5 + $0x90] sm:$0xff]  }
 0x223   : > { %v743_v56 = vpop.f32.mrb[2].mxu0  ;;  %v854_v57 = vpop.f32.mrb[2].mxu1  ;;  %v8628_v54 = vld [vmem:[%s10749_s5 + $0xa8] sm:$0xff]   ;;  %v8629_v55 = vld [vmem:[%s10749_s5 + $0xb0] sm:$0xff]  }
 0x224   : > { %v968_v58 = vmul.f32 0.17677669, %v741_v52  ;;  %v7956_v59 = vpop.f32.mrb[3].mxu0  ;;  %v7976_v60 = vpop.f32.mrb[3].mxu1  ;;  %7998 = vmatpush3.xpose.msk.msra.mxu1 %vm969_vm1, %v852_v53  ;;  %v8626_v52 = vld [vmem:[%s10749_s5 + $0x98] sm:$0xff]   ;;  %v8627_v53 = vld [vmem:[%s10749_s5 + $0xa0] sm:$0xff]  }
 0x225   : > { %8002 = vmatprep.subr.mxu1 %v9024_v3  ;;  %v8630_v56 = vld [vmem:[%s10749_s5 + $0xb8] sm:$0xff]   ;;  %v6722_v57 = vld [vmem:[%s10748_s4 + $0x1] ss:$0 sm:$0xff] }
 0x227   : > { %8000 = vmatmul.mubr.msk.f32.vlgmr.msra.gmra.mrb[4].mxu1 %vm969_vm1, %v968_v58 }
 0x228   : > { %8004 = vmatprep.mubr.msk.f32.mxu1 %vm9025_vm0, %v9024_v3 }
 0x241   : > { %v962_v62 = vpop.f32.mrb[4].mxu0 }
 0x242   : > { %v963_v63 = vadd.f32 %v6693_v61, %v962_v62  ;;  %v7995_v0 = vpop.f32.mrb[5].mxu0 }
 0x243   : > { %v965_v1 = vpop.f32.mrb[6].mxu0  ;;  %v6774_v0 = vld [vmem:[%s10752_s8 + $0x1] ss:$0 sm:$0xff] }
 0x244   : > { %v7996_v2 = vpop.f32.mrb[7].mxu0  ;;  %8003 = vmatpush3.msra.mxu1 %v963_v63 }
 0x245   : > { %8007 = vmatprep.subr.bf16.mxu1 %v9024_v3 }
 0x261   : > { %v1356_v5 = vpop.f32.mrb[8].mxu0 }
 0x262   : > { %v1357_v6 = vadd.f32 %v6748_v4, %v1356_v5  ;;  %v8045_v7 = vpop.f32.mrb[9].mxu0 }
 0x263   : > { %v1359_v8 = vpop.f32.mrb[10].mxu0 }
 0x264   : > { %v8046_v9 = vpop.f32.mrb[11].mxu0  ;;  %8068 = vmatpush3.xpose.msk.msra.mxu0 %vm969_vm1, %v1357_v6 }
 0x265   : > { %8072 = vmatprep.subr.mxu0 %v9024_v3 }
 0x2fa   : > { %v1042_v15 = vpop.f32.mrb[4].mxu1 }
 0x2fb   : > { %v1043_v16 = vadd.f32 %v1042_v15, %v9324_v14  ;;  %v8001_v17 = vpop.f32.mrb[5].mxu1 }
 0x2fd   : > { %v1047_v18 = vsel %vm1046_vm3, %v1043_v16, -inf }
 0x2fe   : > { %1048 = vmax.xlane.f32.xlu1 %v1047_v18 }
 0x38b   : > { %v1049_v19 = vpop.xlane.xlu1 %1048 }
 0x38c   : > { %v1050_v20 = vsub.f32 %v1043_v16, %v1049_v19 }
 0x38e   : > { %v1051_v21 = vmul.f32 1.442695, %v1050_v20 }
 0x390   : > { %8943 = vpow2.f32 %v1051_v21 }
 0x39a   : > { %v8944_v22 = vpop.eup %8943 }
 0x39b   : > { %v1053_v23 = vsel %vm1046_vm3, %v8944_v22, 0.0 }
 0x39c   : > { %1054 = vadd.xlane.f32.xlu1 %v1053_v23 }
 0x429   : > { %v1055_v24 = vpop.xlane.xlu1 %1054 }
 0x42a   : > { %8945 = vrcp.f32 %v1055_v24 }
 0x434   : > { %v8946_v25 = vpop.eup %8945 }
 0x435   : > { %v1057_v27 = vmul.f32 %v8946_v25, %v8944_v22 }
 0x437   : > { %8005 = vmatmul.mubr.msk.f32.vlgmr.msra.gmra.mrb[6].mxu1 %vm1046_vm3, %v1057_v27 }
 0x438   : > { %8008 = vmatpush3.bf16.msra.mxu1 %v8605_v26  ;;  %8023 = vmatprep.mubr.msk.bf16.mxu1 %vm9025_vm0, %v9024_v3 }
 0x439   : > { %8009 = vmatprep.subr.bf16.mxu1 %v9024_v3 }
 0x43c   : > { %8010 = vmatpush3.bf16.msra.mxu1 %v8606_v28 }
 0x43d   : > { %8011 = vmatprep.subr.bf16.mxu1 %v9024_v3 }
 0x440   : > { %8012 = vmatpush3.bf16.msra.mxu1 %v8607_v29 }
 0x441   : > { %8013 = vmatprep.subr.bf16.mxu1 %v9024_v3 }
 0x444   : > { %8014 = vmatpush3.bf16.msra.mxu1 %v8608_v30  ;;  %v8631_v30 = vld [vmem:[%s10753_s9 + $0x10] sm:$0xff]  }
 0x445   : > { %8015 = vmatprep.subr.bf16.mxu1 %v9024_v3 }
 0x448   : > { %8016 = vmatpush3.bf16.msra.mxu1 %v8609_v31 }
 0x449   : > { %8017 = vmatprep.subr.bf16.mxu1 %v9024_v3 }
 0x44c   : > { %8018 = vmatpush3.bf16.msra.mxu1 %v8610_v33  ;;  %v8632_v33 = vld [vmem:[%s10753_s9 + $0x18] sm:$0xff]  }
 0x44d   : > { %8019 = vmatprep.subr.bf16.mxu1 %v9024_v3 }
 0x450   : > { %8020 = vmatpush3.bf16.msra.mxu1 %v8611_v34 }
 0x451   : > { %8021 = vmatprep.subr.bf16.mxu1 %v9024_v3 }
 0x454   : > { %8022 = vmatpush3.bf16.msra.mxu1 %v8612_v35  ;;  %v8633_v35 = vld [vmem:[%s10775_s25 + $0x80] sm:$0xff]  }
 0x455   : > { %8047 = vmatprep.subr.bf16.mxu1 %v9024_v3 }
 0x457   : > { %8024 = vmatmul.mubr.bf16.vlgmr.msra.gmra.mrb[8].mxu1 %v9226_v32 }
 0x458   : > { %8048 = vmatpush3.bf16.msra.mxu1 %v8613_v36  ;;  %8063 = vmatprep.mubr.msk.bf16.mxu1 %vm9025_vm0, %v9024_v3 }
 0x459   : > { %8049 = vmatprep.subr.bf16.mxu1 %v9024_v3 }
 0x45c   : > { %8050 = vmatpush3.bf16.msra.mxu1 %v8614_v37 }
 0x45d   : > { %8051 = vmatprep.subr.bf16.mxu1 %v9024_v3 }
 0x460   : > { %8052 = vmatpush3.bf16.msra.mxu1 %v8615_v38  ;;  %v8634_v38 = vld [vmem:[%s10775_s25 + $0x88] sm:$0xff]  }
 0x461   : > { %8053 = vmatprep.subr.bf16.mxu1 %v9024_v3 }
 0x464   : > { %8054 = vmatpush3.bf16.msra.mxu1 %v8616_v39  ;;  %v8635_v39 = vld [vmem:[%s10775_s25 + $0x90] sm:$0xff]  }
 0x465   : > { %8055 = vmatprep.subr.bf16.mxu1 %v9024_v3 }
 0x468   : > { %8056 = vmatpush3.bf16.msra.mxu1 %v8617_v40  ;;  %v8636_v40 = vld [vmem:[%s10775_s25 + $0x98] sm:$0xff]  }
 0x469   : > { %8057 = vmatprep.subr.bf16.mxu1 %v9024_v3 }
 0x46c   : > { %8058 = vmatpush3.bf16.msra.mxu1 %v8618_v41  ;;  %v8637_v41 = vld [vmem:[%s10775_s25 + $0xa0] sm:$0xff]  }
 0x46d   : > { %8059 = vmatprep.subr.bf16.mxu1 %v9024_v3 }
 0x470   : > { %8060 = vmatpush3.bf16.msra.mxu1 %v8619_v42  ;;  %v8638_v42 = vld [vmem:[%s10775_s25 + $0xa8] sm:$0xff]  }
 0x471   : > { %8061 = vmatprep.subr.bf16.mxu1 %v9024_v3 }
 0x474   : > { %8062 = vmatpush3.bf16.msra.mxu1 %v8620_v43  ;;  %v8639_v43 = vld [vmem:[%s10775_s25 + $0xb0] sm:$0xff]  }
 0x475   : > { %8085 = vmatprep.subr.bf16.mxu1 %v9024_v3 }
 0x477   : > { %8064 = vmatmul.mubr.bf16.vlgmr.msra.gmra.mrb[12].mxu1 %v9226_v32 }
 0x478   : > { %8086 = vmatpush3.bf16.msra.mxu1 %v8621_v44  ;;  %8089 = vmatprep.mubr.msk.bf16.mxu1 %vm9025_vm0, %v9024_v3  ;;  %v8640_v44 = vld [vmem:[%s10775_s25 + $0xb8] sm:$0xff]  }
 0x479   : > { %8087 = vmatprep.subr.bf16.mxu1 %v9024_v3 }
 0x47c   : > { %8088 = vmatpush3.bf16.msra.mxu1 %v8622_v45  ;;  %v8641_v45 = vld [vmem:[%s10751_s7 + $0x80] sm:$0xff]  }
 0x47d   : > { %8113 = vmatprep.subr.bf16.mxu1 %v9024_v3 }
 0x50a   : > { %v1127_v46 = vpop.f32.mrb[6].mxu1 }
 0x50b   : > { %v1131_v48 = vpack.c.bf16 %v1127_v46, %v1127_v46  ;;  %v8006_v49 = vpop.f32.mrb[7].mxu1  ;;  %v8642_v46 = vld [vmem:[%s10751_s7 + $0x88] sm:$0xff]  }
 0x50c   : > { %v8645_v49 = vld [vmem:[%s10751_s7 + $0xa0] sm:$0xff]  }
 0x50d   : > { %8090 = vmatmul.mubr.msk.bf16.vlgmr.msra.gmra.mrb[16].mxu1 %vm969_vm1, %v1131_v48  ;;  %v8644_v48 = vld [vmem:[%s10751_s7 + $0x98] sm:$0xff]  }
 0x50e   : > { %8114 = vmatpush3.bf16.msra.mxu1 %v8623_v47  ;;  %8129 = vmatprep.mubr.msk.bf16.mxu1 %vm9025_vm0, %v9024_v3  ;;  %v8643_v47 = vld [vmem:[%s10751_s7 + $0x90] sm:$0xff]  }
 0x50f   : > { %8115 = vmatprep.subr.bf16.mxu1 %v9024_v3 }
 0x512   : > { %8116 = vmatpush3.bf16.msra.mxu1 %v8624_v50  ;;  %v8646_v50 = vld [vmem:[%s10751_s7 + $0xa8] sm:$0xff]  }
 0x513   : > { %8117 = vmatprep.subr.bf16.mxu1 %v9024_v3 }
 0x516   : > { %8118 = vmatpush3.bf16.msra.mxu1 %v8625_v51  ;;  %v8647_v51 = vld [vmem:[%s10751_s7 + $0xb0] sm:$0xff]  }
 0x517   : > { %8119 = vmatprep.subr.bf16.mxu1 %v9024_v3 }
 0x51a   : > { %8120 = vmatpush3.bf16.msra.mxu1 %v8626_v52  ;;  %v8648_v52 = vld [vmem:[%s10751_s7 + $0xb8] sm:$0xff]  }
 0x51b   : > { %8121 = vmatprep.subr.bf16.mxu1 %v9024_v3 }
 0x51e   : > { %8122 = vmatpush3.bf16.msra.mxu1 %v8627_v53  ;;  %v8649_v53 = vld [vmem:[%s10749_s5 + $0xc0] sm:$0xff]  }
 0x51f   : > { %8123 = vmatprep.subr.bf16.mxu1 %v9024_v3 }
 0x522   : > { %8124 = vmatpush3.bf16.msra.mxu1 %v8628_v54  ;;  %v8650_v54 = vld [vmem:[%s10749_s5 + $0xc8] sm:$0xff]  }
 0x523   : > { %8125 = vmatprep.subr.bf16.mxu1 %v9024_v3 }
 0x526   : > { %8126 = vmatpush3.bf16.msra.mxu1 %v8629_v55  ;;  %v8651_v55 = vld [vmem:[%s10749_s5 + $0xd0] sm:$0xff]  }
 0x527   : > { %8127 = vmatprep.subr.bf16.mxu1 %v9024_v3 }
 0x52a   : > { %v1243_v58 = vpop.f32.mrb[8].mxu1  ;;  %8128 = vmatpush3.bf16.msra.mxu1 %v8630_v56  ;;  %v8652_v56 = vld [vmem:[%s10749_s5 + $0xd8] sm:$0xff]  }
 0x52b   : > { %v1244_v59 = vadd.f32 %v6722_v57, %v1243_v58  ;;  %v8025_v60 = vpop.f32.mrb[9].mxu1  ;;  %8153 = vmatprep.subr.mxu1 %v9024_v3  ;;  %v8653_v57 = vld [vmem:[%s10749_s5 + $0xe0] sm:$0xff]   ;;  %v8654_v58 = vld [vmem:[%s10749_s5 + $0xe8] sm:$0xff]  }
 0x52c   : > { %v1246_v61 = vpop.f32.mrb[10].mxu1  ;;  %v8656_v60 = vld [vmem:[%s10749_s5 + $0xf8] sm:$0xff]  }
 0x52d   : > { %v1475_v62 = vmul.f32 0.17677669, %v1244_v59  ;;  %v8026_v63 = vpop.f32.mrb[11].mxu1  ;;  %8130 = vmatmul.mubr.bf16.vlgmr.msra.gmra.mrb[20].mxu1 %v9226_v32  ;;  %v8655_v59 = vld [vmem:[%s10749_s5 + $0xf0] sm:$0xff]  }
 0x52e   : > { %8155 = vmatprep.mubr.msk.f32.mxu1 %vm9025_vm0, %v9024_v3 }
 0x52f   : > { %8070 = vmatmul.mubr.msk.f32.vlgmr.msra.gmra.mrb[12].mxu0 %vm969_vm1, %v1475_v62 }
 0x530   : > { %8074 = vmatprep.mubr.msk.f32.mxu0 %vm9025_vm0, %v9024_v3 }
 0x54a   : > { %v1469_v1 = vpop.f32.mrb[12].mxu1 }
 0x54b   : > { %v1470_v2 = vadd.f32 %v6774_v0, %v1469_v1  ;;  %v8065_v4 = vpop.f32.mrb[13].mxu1 }
 0x54c   : > { %v1472_v5 = vpop.f32.mrb[14].mxu1 }
 0x54d   : > { %v8066_v6 = vpop.f32.mrb[15].mxu1  ;;  %8073 = vmatpush3.msra.mxu0 %v1470_v2  ;;  %v6813_v2 = vld [vmem:[%s10748_s4 + $0x2] ss:$0 sm:$0xff] }
 0x54e   : > { %8077 = vmatprep.subr.bf16.mxu0 %v9024_v3 }
 0x5e0   : > { %v9458_v7 = vpop.f32.mrb[16].mxu1 }
 0x5e1   : > { %v8091_v8 = vpop.f32.mrb[17].mxu1 }
 0x5e2   : > { %v1749_v9 = vpop.f32.mrb[18].mxu1 }
 0x5e3   : > { %v8092_v10 = vpop.f32.mrb[19].mxu1 }
 0x600   : > { %v1972_v13 = vpop.f32.mrb[20].mxu1 }
 0x601   : > { %v1973_v15 = vadd.f32 %v6839_v12, %v1972_v13  ;;  %v8131_v16 = vpop.f32.mrb[21].mxu1 }
 0x602   : > { %v1548_v17 = vpop.f32.mrb[12].mxu0  ;;  %v1975_v18 = vpop.f32.mrb[22].mxu1 }
 0x603   : > { %v1549_v19 = vadd.f32 %v1548_v17, %v9324_v14  ;;  %v8071_v20 = vpop.f32.mrb[13].mxu0  ;;  %v8132_v21 = vpop.f32.mrb[23].mxu1  ;;  %8154 = vmatpush3.xpose.msk.msra.mxu1 %vm969_vm1, %v1973_v15  ;;  %v6927_v18 = vld [vmem:[%s10750_s6 + $0x3] ss:$0 sm:$0xff] }
 0x604   : > { %8158 = vmatprep.subr.mxu1 %v9024_v3 }
 0x605   : > { %v1552_v22 = vsel %vm1046_vm3, %v1549_v19, -inf }
 0x606   : > { %1553 = vmax.xlane.f32.xlu0 %v1552_v22 }
 0x693   : > { %v1554_v23 = vpop.xlane.xlu0 %1553 }
 0x694   : > { %v1555_v24 = vsub.f32 %v1549_v19, %v1554_v23 }
 0x696   : > { %v1556_v25 = vmul.f32 1.442695, %v1555_v24 }
 0x698   : > { %8947 = vpow2.f32 %v1556_v25 }
 0x6a2   : > { %v8948_v26 = vpop.eup %8947 }
 0x6a3   : > { %v1558_v27 = vsel %vm1046_vm3, %v8948_v26, 0.0 }
 0x6a4   : > { %1559 = vadd.xlane.f32.xlu1 %v1558_v27 }
 0x731   : > { %v1560_v28 = vpop.xlane.xlu1 %1559 }
 0x732   : > { %8949 = vrcp.f32 %v1560_v28 }
 0x73c   : > { %v8950_v29 = vpop.eup %8949 }
 0x73d   : > { %v1562_v31 = vmul.f32 %v8950_v29, %v8948_v26 }
 0x73f   : > { %8075 = vmatmul.mubr.msk.f32.vlgmr.msra.gmra.mrb[14].mxu0 %vm1046_vm3, %v1562_v31 }
 0x740   : > { %8078 = vmatpush3.bf16.msra.mxu0 %v8631_v30  ;;  %8081 = vmatprep.mubr.msk.bf16.mxu0 %vm9025_vm0, %v9024_v3 }
 0x741   : > { %8079 = vmatprep.subr.bf16.mxu0 %v9024_v3 }
 0x744   : > { %8080 = vmatpush3.bf16.msra.mxu0 %v8632_v33 }
 0x745   : > { %8093 = vmatprep.subr.bf16.mxu0 %v9024_v3 }
 0x812   : > { %v1632_v34 = vpop.f32.mrb[14].mxu0 }
 0x813   : > { %v1636_v36 = vpack.c.bf16 %v1632_v34, %v1632_v34  ;;  %v8076_v37 = vpop.f32.mrb[15].mxu0 }
 0x815   : > { %8082 = vmatmul.mubr.msk.bf16.vlgmr.msra.gmra.mrb[16].mxu0 %vm969_vm1, %v1636_v36  ;;  %v8657_v36 = vld [vmem:[%s10753_s9 + $0x20] sm:$0xff]  }
 0x816   : > { %8094 = vmatpush3.bf16.msra.mxu0 %v8633_v35  ;;  %8109 = vmatprep.mubr.msk.bf16.mxu0 %vm9025_vm0, %v9024_v3 }
 0x817   : > { %8095 = vmatprep.subr.bf16.mxu0 %v9024_v3 }
 0x81a   : > { %8096 = vmatpush3.bf16.msra.mxu0 %v8634_v38  ;;  %v8658_v38 = vld [vmem:[%s10753_s9 + $0x28] sm:$0xff]  }
 0x81b   : > { %8097 = vmatprep.subr.bf16.mxu0 %v9024_v3 }
 0x81e   : > { %8098 = vmatpush3.bf16.msra.mxu0 %v8635_v39 }
 0x81f   : > { %8099 = vmatprep.subr.bf16.mxu0 %v9024_v3 }
 0x822   : > { %8100 = vmatpush3.bf16.msra.mxu0 %v8636_v40  ;;  %v8659_v40 = vld [vmem:[%s10775_s25 + $0xc0] sm:$0xff]  }
 0x823   : > { %8101 = vmatprep.subr.bf16.mxu0 %v9024_v3 }
 0x826   : > { %8102 = vmatpush3.bf16.msra.mxu0 %v8637_v41 }
 0x827   : > { %8103 = vmatprep.subr.bf16.mxu0 %v9024_v3 }
 0x82a   : > { %8104 = vmatpush3.bf16.msra.mxu0 %v8638_v42 }
 0x82b   : > { %8105 = vmatprep.subr.bf16.mxu0 %v9024_v3 }
 0x82e   : > { %8106 = vmatpush3.bf16.msra.mxu0 %v8639_v43  ;;  %v8660_v43 = vld [vmem:[%s10775_s25 + $0xc8] sm:$0xff]  }
 0x82f   : > { %8107 = vmatprep.subr.bf16.mxu0 %v9024_v3 }
 0x832   : > { %8108 = vmatpush3.bf16.msra.mxu0 %v8640_v44  ;;  %v8661_v44 = vld [vmem:[%s10775_s25 + $0xd0] sm:$0xff]  }
 0x833   : > { %8133 = vmatprep.subr.bf16.mxu0 %v9024_v3 }
 0x835   : > { %8110 = vmatmul.mubr.bf16.vlgmr.msra.gmra.mrb[20].mxu0 %v9226_v32 }
 0x836   : > { %8134 = vmatpush3.bf16.msra.mxu0 %v8641_v45  ;;  %8149 = vmatprep.mubr.msk.bf16.mxu0 %vm9025_vm0, %v9024_v3  ;;  %v8662_v45 = vld [vmem:[%s10775_s25 + $0xd8] sm:$0xff]  }
 0x837   : > { %8135 = vmatprep.subr.bf16.mxu0 %v9024_v3 }
 0x83a   : > { %8136 = vmatpush3.bf16.msra.mxu0 %v8642_v46  ;;  %v8663_v46 = vld [vmem:[%s10775_s25 + $0xe0] sm:$0xff]  }
 0x83b   : > { %8137 = vmatprep.subr.bf16.mxu0 %v9024_v3 }
 0x83e   : > { %8138 = vmatpush3.bf16.msra.mxu0 %v8643_v47  ;;  %v8664_v47 = vld [vmem:[%s10775_s25 + $0xe8] sm:$0xff]  }
 0x83f   : > { %8139 = vmatprep.subr.bf16.mxu0 %v9024_v3 }
 0x842   : > { %8140 = vmatpush3.bf16.msra.mxu0 %v8644_v48  ;;  %v8665_v48 = vld [vmem:[%s10775_s25 + $0xf0] sm:$0xff]  }
 0x843   : > { %8141 = vmatprep.subr.bf16.mxu0 %v9024_v3 }
 0x846   : > { %8142 = vmatpush3.bf16.msra.mxu0 %v8645_v49  ;;  %v8666_v49 = vld [vmem:[%s10775_s25 + $0xf8] sm:$0xff]  }
 0x847   : > { %8143 = vmatprep.subr.bf16.mxu0 %v9024_v3 }
 0x84a   : > { %8144 = vmatpush3.bf16.msra.mxu0 %v8646_v50  ;;  %v8667_v50 = vld [vmem:[%s10751_s7 + $0xc0] sm:$0xff]  }
 0x84b   : > { %8145 = vmatprep.subr.bf16.mxu0 %v9024_v3 }
 0x84e   : > { %8146 = vmatpush3.bf16.msra.mxu0 %v8647_v51  ;;  %v8668_v51 = vld [vmem:[%s10751_s7 + $0xc8] sm:$0xff]  }
 0x84f   : > { %8147 = vmatprep.subr.bf16.mxu0 %v9024_v3 }
 0x852   : > { %8148 = vmatpush3.bf16.msra.mxu0 %v8648_v52  ;;  %v8669_v52 = vld [vmem:[%s10751_s7 + $0xd0] sm:$0xff]  }
 0x853   : > { %8191 = vmatprep.subr.bf16.mxu0 %v9024_v3 }
 0x855   : > { %8150 = vmatmul.mubr.bf16.vlgmr.msra.gmra.mrb[24].mxu0 %v9226_v32 }
 0x856   : > { %8192 = vmatpush3.bf16.msra.mxu0 %v8649_v53  ;;  %8207 = vmatprep.mubr.msk.bf16.mxu0 %vm9025_vm0, %v9024_v3  ;;  %v8670_v53 = vld [vmem:[%s10751_s7 + $0xd8] sm:$0xff]  }
 0x857   : > { %8193 = vmatprep.subr.bf16.mxu0 %v9024_v3 }
 0x85a   : > { %8194 = vmatpush3.bf16.msra.mxu0 %v8650_v54  ;;  %v8671_v54 = vld [vmem:[%s10751_s7 + $0xe0] sm:$0xff]  }
 0x85b   : > { %8195 = vmatprep.subr.bf16.mxu0 %v9024_v3 }
 0x85e   : > { %8196 = vmatpush3.bf16.msra.mxu0 %v8651_v55  ;;  %v8672_v55 = vld [vmem:[%s10751_s7 + $0xe8] sm:$0xff]  }
 0x85f   : > { %8197 = vmatprep.subr.bf16.mxu0 %v9024_v3 }
 0x862   : > { %8198 = vmatpush3.bf16.msra.mxu0 %v8652_v56  ;;  %v8673_v56 = vld [vmem:[%s10751_s7 + $0xf0] sm:$0xff]  }
 0x863   : > { %8199 = vmatprep.subr.bf16.mxu0 %v9024_v3 }
 0x866   : > { %8200 = vmatpush3.bf16.msra.mxu0 %v8653_v57  ;;  %v8674_v57 = vld [vmem:[%s10751_s7 + $0xf8] sm:$0xff]  }
 0x867   : > { %8201 = vmatprep.subr.bf16.mxu0 %v9024_v3 }
 0x86a   : > { %8202 = vmatpush3.bf16.msra.mxu0 %v8654_v58 }
 0x86b   : > { %8203 = vmatprep.subr.bf16.mxu0 %v9024_v3 }
 0x86e   : > { %8204 = vmatpush3.bf16.msra.mxu0 %v8655_v59 }
 0x86f   : > { %8205 = vmatprep.subr.bf16.mxu0 %v9024_v3 }
 0x872   : > { %8206 = vmatpush3.bf16.msra.mxu0 %v8656_v60 }
 0x873   : > { %8231 = vmatprep.subr.mxu0 %v9024_v3 }
 0x875   : > { %8208 = vmatmul.mubr.bf16.vlgmr.msra.gmra.mrb[28].mxu0 %v9226_v32 }
 0x876   : > { %8233 = vmatprep.mubr.msk.f32.mxu0 %vm9025_vm0, %v9024_v3 }
 0x8e8   : > { %v1691_v61 = vpop.f32.mrb[16].mxu0 }
 0x8e9   : > { %v9588_v62 = vadd.f32 %v9458_v7, %v1691_v61  ;;  %v8083_v63 = vpop.f32.mrb[17].mxu0  ;;  %v6865_v7 = vld [vmem:[%s10752_s8 + $0x2] ss:$0 sm:$0xff] }
 0x8ea   : > { %v1694_v0 = vpop.f32.mrb[18].mxu0 }
 0x8eb   : > { %v8084_v1 = vpop.f32.mrb[19].mxu0  ;;  %v6901_v0 = vld [vmem:[%s10748_s4 + $0x3] ss:$0 sm:$0xff] }
 0x908   : > { %v1859_v4 = vpop.f32.mrb[20].mxu0 }
 0x909   : > { %v1860_v5 = vadd.f32 %v6813_v2, %v1859_v4  ;;  %v8111_v6 = vpop.f32.mrb[21].mxu0 }
 0x90a   : > { %v1862_v8 = vpop.f32.mrb[22].mxu0 }
 0x90b   : > { %v2091_v9 = vmul.f32 0.17677669, %v1860_v5  ;;  %v8112_v10 = vpop.f32.mrb[23].mxu0 }
 0x90d   : > { %8156 = vmatmul.mubr.msk.f32.vlgmr.msra.gmra.mrb[24].mxu1 %vm969_vm1, %v2091_v9 }
 0x90e   : > { %8160 = vmatprep.mubr.msk.f32.mxu1 %vm9025_vm0, %v9024_v3 }
 0x928   : > { %v2085_v12 = vpop.f32.mrb[24].mxu0 }
 0x929   : > { %v2086_v13 = vadd.f32 %v6865_v7, %v2085_v12  ;;  %v8151_v15 = vpop.f32.mrb[25].mxu0 }
 0x92a   : > { %v2088_v16 = vpop.f32.mrb[26].mxu0 }
 0x92b   : > { %v8152_v17 = vpop.f32.mrb[27].mxu0  ;;  %8159 = vmatpush3.msra.mxu1 %v2086_v13 }
 0x92c   : > { %8163 = vmatprep.subr.bf16.mxu1 %v9024_v3 }
 0x948   : > { %v2534_v19 = vpop.f32.mrb[28].mxu0 }
 0x949   : > { %v2535_v20 = vadd.f32 %v6927_v18, %v2534_v19  ;;  %v8209_v21 = vpop.f32.mrb[29].mxu0 }
 0x94a   : > { %v2537_v22 = vpop.f32.mrb[30].mxu0 }
 0x94b   : > { %v8210_v23 = vpop.f32.mrb[31].mxu0  ;;  %8232 = vmatpush3.xpose.msk.msra.mxu0 %vm969_vm1, %v2535_v20 }
 0x94c   : > { %8236 = vmatprep.subr.mxu0 %v9024_v3 }
 0x9e0   : > { %v2164_v24 = vpop.f32.mrb[24].mxu1 }
 0x9e1   : > { %v2165_v25 = vadd.f32 %v2164_v24, %v9324_v14  ;;  %v8157_v26 = vpop.f32.mrb[25].mxu1 }
 0x9e3   : > { %v2168_v27 = vsel %vm1046_vm3, %v2165_v25, -inf }
 0x9e4   : > { %2169 = vmax.xlane.f32.xlu0 %v2168_v27  ;;  %v8676_v27 = vld [vmem:[%s10753_s9 + $0x38] sm:$0xff]  }
 0xa71   : > { %v2170_v28 = vpop.xlane.xlu0 %2169 }
 0xa72   : > { %v2171_v29 = vsub.f32 %v2165_v25, %v2170_v28  ;;  %v8675_v25 = vld [vmem:[%s10753_s9 + $0x30] sm:$0xff]  }
 0xa74   : > { %v2172_v30 = vmul.f32 1.442695, %v2171_v29 }
 0xa76   : > { %8951 = vpow2.f32 %v2172_v30 }
 0xa80   : > { %v8952_v31 = vpop.eup %8951 }
 0xa81   : > { %v2174_v33 = vsel %vm1046_vm3, %v8952_v31, 0.0 }
 0xa82   : > { %2175 = vadd.xlane.f32.xlu1 %v2174_v33 }
 0xb0f   : > { %v2176_v34 = vpop.xlane.xlu1 %2175 }
 0xb10   : > { %8953 = vrcp.f32 %v2176_v34 }
 0xb1a   : > { %v8954_v35 = vpop.eup %8953 }
 0xb1b   : > { %v2178_v37 = vmul.f32 %v8954_v35, %v8952_v31 }
 0xb1d   : > { %8161 = vmatmul.mubr.msk.f32.vlgmr.msra.gmra.mrb[26].mxu1 %vm1046_vm3, %v2178_v37  ;;  %v9015_v37 = vld [vmem:[%s9144_s2] sm:$0xff] }
 0xb1e   : > { %8164 = vmatpush3.bf16.msra.mxu1 %v8657_v36  ;;  %8167 = vmatprep.mubr.msk.bf16.mxu1 %vm9025_vm0, %v9024_v3  ;;  %v6972_v36 = vld [vmem:[%s10754_s10] ss:$0 sm:$0xff] }
 0xb1f   : > { %8165 = vmatprep.subr.bf16.mxu1 %v9024_v3 }
 0xb22   : > { %8166 = vmatpush3.bf16.msra.mxu1 %v8658_v38 }
 0xb23   : > { %8171 = vmatprep.subr.bf16.mxu1 %v9024_v3 }
 0xbf0   : > { %v2248_v39 = vpop.f32.mrb[26].mxu1 }
 0xbf1   : > { %v2252_v41 = vpack.c.bf16 %v2248_v39, %v2248_v39  ;;  %v8162_v42 = vpop.f32.mrb[27].mxu1 }
 0xbf2   : > { %v8679_v42 = vld [vmem:[%s10757_s13 + $0x4] ss:$16 sps:$4 sm:$0xff]  }
 0xbf3   : > { %8168 = vmatmul.mubr.msk.bf16.vlgmr.msra.gmra.mrb[28].mxu1 %vm969_vm1, %v2252_v41  ;;  %v8677_v41 = vld [vmem:[%s10757_s13] ss:$16 sps:$4 sm:$0xff]  }
 0xbf4   : > { %8172 = vmatpush3.bf16.msra.mxu1 %v8659_v40  ;;  %8187 = vmatprep.mubr.msk.bf16.mxu1 %vm9025_vm0, %v9024_v3 }
 0xbf5   : > { %8173 = vmatprep.subr.bf16.mxu1 %v9024_v3 }
 0xbf8   : > { %8174 = vmatpush3.bf16.msra.mxu1 %v8660_v43  ;;  %v8680_v43 = vld [vmem:[%s10757_s13 + $0x8] ss:$16 sps:$4 sm:$0xff]  }
 0xbf9   : > { %8175 = vmatprep.subr.bf16.mxu1 %v9024_v3 }
 0xbfc   : > { %8176 = vmatpush3.bf16.msra.mxu1 %v8661_v44  ;;  %v8682_v44 = vld [vmem:[%s10757_s13 + $0xc] ss:$16 sps:$4 sm:$0xff]  }
 0xbfd   : > { %8177 = vmatprep.subr.bf16.mxu1 %v9024_v3 }
 0xc00   : > { %8178 = vmatpush3.bf16.msra.mxu1 %v8662_v45  ;;  %v8685_v45 = vld [vmem:[%s10757_s13 + $0x24] ss:$16 sps:$4 sm:$0xff]  }
 0xc01   : > { %8179 = vmatprep.subr.bf16.mxu1 %v9024_v3 }
 0xc04   : > { %8180 = vmatpush3.bf16.msra.mxu1 %v8663_v46  ;;  %v8688_v46 = vld [vmem:[%s10757_s13 + $0x2c] ss:$16 sps:$4 sm:$0xff]  }
 0xc05   : > { %8181 = vmatprep.subr.bf16.mxu1 %v9024_v3 }
 0xc08   : > { %8182 = vmatpush3.bf16.msra.mxu1 %v8664_v47  ;;  %v8683_v47 = vld [vmem:[%s10757_s13 + $0x20] ss:$16 sps:$4 sm:$0xff]  }
 0xc09   : > { %8183 = vmatprep.subr.bf16.mxu1 %v9024_v3 }
 0xc0c   : > { %8184 = vmatpush3.bf16.msra.mxu1 %v8665_v48  ;;  %v8686_v48 = vld [vmem:[%s10757_s13 + $0x28] ss:$16 sps:$4 sm:$0xff]  }
 0xc0d   : > { %8185 = vmatprep.subr.bf16.mxu1 %v9024_v3 }
 0xc10   : > { %8186 = vmatpush3.bf16.msra.mxu1 %v8666_v49  ;;  %v8691_v49 = vld [vmem:[%s10757_s13 + $0x44] ss:$16 sps:$4 sm:$0xff]  }
 0xc11   : > { %8211 = vmatprep.subr.bf16.mxu1 %v9024_v3 }
 0xc13   : > { %8188 = vmatmul.mubr.bf16.vlgmr.msra.gmra.mrb[32].mxu1 %v9226_v32 }
 0xc14   : > { %8212 = vmatpush3.bf16.msra.mxu1 %v8667_v50  ;;  %8227 = vmatprep.mubr.msk.bf16.mxu1 %vm9025_vm0, %v9024_v3  ;;  %v8694_v50 = vld [vmem:[%s10757_s13 + $0x4c] ss:$16 sps:$4 sm:$0xff]  }
 0xc15   : > { %8213 = vmatprep.subr.bf16.mxu1 %v9024_v3 }
 0xc18   : > { %8214 = vmatpush3.bf16.msra.mxu1 %v8668_v51  ;;  %v8689_v51 = vld [vmem:[%s10757_s13 + $0x40] ss:$16 sps:$4 sm:$0xff]  }
 0xc19   : > { %8215 = vmatprep.subr.bf16.mxu1 %v9024_v3 }
 0xc1c   : > { %8216 = vmatpush3.bf16.msra.mxu1 %v8669_v52  ;;  %v8692_v52 = vld [vmem:[%s10757_s13 + $0x48] ss:$16 sps:$4 sm:$0xff]  }
 0xc1d   : > { %8217 = vmatprep.subr.bf16.mxu1 %v9024_v3 }
 0xc20   : > { %8218 = vmatpush3.bf16.msra.mxu1 %v8670_v53 }
 0xc21   : > { %8219 = vmatprep.subr.bf16.mxu1 %v9024_v3 }
 0xc24   : > { %8220 = vmatpush3.bf16.msra.mxu1 %v8671_v54 }
 0xc25   : > { %8221 = vmatprep.subr.bf16.mxu1 %v9024_v3 }
 0xc28   : > { %8222 = vmatpush3.bf16.msra.mxu1 %v8672_v55 }
 0xc29   : > { %8223 = vmatprep.subr.bf16.mxu1 %v9024_v3 }
 0xc2c   : > { %8224 = vmatpush3.bf16.msra.mxu1 %v8673_v56 }
 0xc2d   : > { %8225 = vmatprep.subr.bf16.mxu1 %v9024_v3 }
 0xc30   : > { %8226 = vmatpush3.bf16.msra.mxu1 %v8674_v57  ;;  %v8697_v57 = vld [vmem:[%s10757_s13 + $0x64] ss:$16 sps:$4 sm:$0xff]  }
 0xc31   : > { %3168 = vmatprep.subr.bf16.mxu1 %v8682_v44  ;;  %v8741_v44 = vld [vmem:[%s10759_s15 + $0x60] sm:$0xff]  }
 0xc33   : > { %8228 = vmatmul.mubr.bf16.vlgmr.msra.gmra.mrb[36].mxu1 %v9226_v32  ;;  %v6953_v32 = vld [vmem:[%s10752_s8 + $0x3] ss:$0 sm:$0xff] }
 0xc34   : > { %3169 = vmatpush1.bf16.msra.mxu1 %v8680_v43  ;;  %v8740_v43 = vld [vmem:[%s10759_s15 + $0x98] sm:$0xff]  }
 0xc35   : > { %3170 = vmatprep.subr.bf16.mxu1 %v8688_v46  ;;  %v8743_v46 = vld [vmem:[%s10759_s15 + $0x20] sm:$0xff]  }
 0xc38   : > { %3171 = vmatpush1.bf16.msra.mxu1 %v8686_v48  ;;  %v8745_v48 = vld [vmem:[%s10759_s15 + $0x68] sm:$0xff]  }
 0xc39   : > { %3172 = vmatprep.subr.bf16.mxu1 %v8694_v50  ;;  %v8747_v50 = vld [vmem:[%s10759_s15 + $0x28] sm:$0xff]  }
 0xc3c   : > { %3173 = vmatpush1.bf16.msra.mxu1 %v8692_v52  ;;  %v8749_v52 = vld [vmem:[%s10759_s15 + $0x70] sm:$0xff]  }
 0xcc6   : > { %v2307_v58 = vpop.f32.mrb[28].mxu1 }
 0xcc7   : > { %v2313_v59 = vadd.f32 %v2307_v58, %v9588_v62  ;;  %v8169_v60 = vpop.f32.mrb[29].mxu1  ;;  %v8700_v58 = vld [vmem:[%s10757_s13 + $0x6c] ss:$16 sps:$4 sm:$0xff]  }
 0xcc8   : > { %v2310_v61 = vpop.f32.mrb[30].mxu1  ;;  %v8698_v60 = vld [vmem:[%s10757_s13 + $0x68] ss:$16 sps:$4 sm:$0xff]   ;;  %3174 = vmatprep.subr.bf16.mxu1 %v8700_v58 }
 0xcc9   : > { %v8170_v63 = vpop.f32.mrb[31].mxu1  ;;  %3175 = vmatpush1.bf16.msra.mxu1 %v8698_v60  ;;  %v8701_v61 = vld [vmem:[%s10757_s13 + $0x80] ss:$16 sps:$4 sm:$0xff]   ;;  %v8755_v58 = vld [vmem:[%s10759_s15 + $0x38] sm:$0xff]   ;;  %v2949_v60 = vsub.s32 0, %v9321_v11 }
 0xcca   : > { %v8703_v63 = vld [vmem:[%s10757_s13 + $0x84] ss:$16 sps:$4 sm:$0xff]  }
 0xce6   : > { %v2421_v1 = vpop.f32.mrb[32].mxu1 }
 0xce7   : > { %v2422_v2 = vadd.f32 %v6901_v0, %v2421_v1  ;;  %v8189_v4 = vpop.f32.mrb[33].mxu1  ;;  %v8704_v0 = vld [vmem:[%s10757_s13 + $0x88] ss:$16 sps:$4 sm:$0xff]   ;;  %v8706_v1 = vld [vmem:[%s10757_s13 + $0x8c] ss:$16 sps:$4 sm:$0xff]  }
 0xce8   : > { %v2424_v5 = vpop.f32.mrb[34].mxu1  ;;  %v8712_v4 = vld [vmem:[%s10757_s13 + $0xac] ss:$16 sps:$4 sm:$0xff]   ;;  %3176 = vmatprep.subr.bf16.mxu1 %v8706_v1  ;;  %v2961_v1 = vsub.s32 3, %v9321_v11 }
 0xce9   : > { %v2653_v6 = vmul.f32 0.17677669, %v2422_v2  ;;  %v8190_v8 = vpop.f32.mrb[35].mxu1  ;;  %v8709_v2 = vld [vmem:[%s10757_s13 + $0xa4] ss:$16 sps:$4 sm:$0xff]   ;;  %3177 = vmatpush1.bf16.msra.mxu1 %v8704_v0  ;;  %v2953_v0 = vsub.s32 1, %v9321_v11 }
 0xcea   : > { %v8707_v5 = vld [vmem:[%s10757_s13 + $0xa0] ss:$16 sps:$4 sm:$0xff]   ;;  %3178 = vmatprep.subr.bf16.mxu1 %v8712_v4  ;;  %v8715_v8 = vld [vmem:[%s10757_s13 + $0xc4] ss:$16 sps:$4 sm:$0xff]  }
 0xceb   : > { %8234 = vmatmul.mubr.msk.f32.vlgmr.msra.gmra.mrb[32].mxu0 %vm969_vm1, %v2653_v6  ;;  %v8710_v6 = vld [vmem:[%s10757_s13 + $0xa8] ss:$16 sps:$4 sm:$0xff]  }
 0xcec   : > { %8238 = vmatprep.mubr.msk.f32.mxu0 %vm9025_vm0, %v9024_v3 }
 0xced   : > { %3179 = vmatpush1.bf16.msra.mxu1 %v8710_v6 }
 0xd06   : > { %v2647_v62 = vpop.f32.mrb[36].mxu1 }
 0xd07   : > { %v2648_v9 = vadd.f32 %v6953_v32, %v2647_v62  ;;  %v8229_v10 = vpop.f32.mrb[37].mxu1  ;;  %v8718_v32 = vld [vmem:[%s10757_s13 + $0xcc] ss:$16 sps:$4 sm:$0xff]   ;;  %v9027_v62 = vmov 0  }
 0xd08   : > { %v2650_v7 = vpop.f32.mrb[38].mxu1  ;;  %3200 = vmatprep.mubr.bf16.mxu1 %v9027_v62  ;;  %v8716_v10 = vld [vmem:[%s10757_s13 + $0xc8] ss:$16 sps:$4 sm:$0xff]   ;;  %3180 = vmatprep.subr.bf16.mxu1 %v8718_v32 }
 0xd09   : > { %v8230_v12 = vpop.f32.mrb[39].mxu1  ;;  %8237 = vmatpush3.msra.mxu0 %v2648_v9  ;;  %v8713_v9 = vld [vmem:[%s10757_s13 + $0xc0] ss:$16 sps:$4 sm:$0xff]   ;;  %v8721_v7 = vld [vmem:[%s10757_s13 + $0xe4] ss:$16 sps:$4 sm:$0xff]   ;;  %3181 = vmatpush1.bf16.msra.mxu1 %v8716_v10 }
 0xd0a   : > { %8241 = vmatprep.subr.bf16.mxu0 %v9024_v3  ;;  %v8724_v12 = vld [vmem:[%s10757_s13 + $0xec] ss:$16 sps:$4 sm:$0xff]  }
 0xd0b   : > { %3182 = vmatprep.subr.bf16.mxu1 %v8724_v12 }
 0xdbe   : > { %v2726_v13 = vpop.f32.mrb[32].mxu0 }
 0xdbf   : > { %v2727_v15 = vadd.f32 %v2726_v13, %v9324_v14  ;;  %v8235_v16 = vpop.f32.mrb[33].mxu0  ;;  %v8719_v13 = vld [vmem:[%s10757_s13 + $0xe0] ss:$16 sps:$4 sm:$0xff]  }
 0xdc1   : > { %v2730_v17 = vsel %vm1046_vm3, %v2727_v15, -inf }
 0xdc2   : > { %2731 = vmax.xlane.f32.xlu0 %v2730_v17 }
 0xe4f   : > { %v2732_v18 = vpop.xlane.xlu0 %2731 }
 0xe50   : > { %v2733_v19 = vsub.f32 %v2727_v15, %v2732_v18  ;;  %v8722_v15 = vld [vmem:[%s10757_s13 + $0xe8] ss:$16 sps:$4 sm:$0xff]  }
 0xe51   : > { %3183 = vmatpush1.bf16.msra.mxu1 %v8722_v15 }
 0xe52   : > { %v2734_v20 = vmul.f32 1.442695, %v2733_v19 }
 0xe54   : > { %8955 = vpow2.f32 %v2734_v20  ;;  %v6973_v20 = vld [vmem:[%s10755_s11] ss:$0 sm:$0xff] }
 0xe5e   : > { %v8956_v21 = vpop.eup %8955 }
 0xe5f   : > { %v2736_v22 = vsel %vm1046_vm3, %v8956_v21, 0.0 }
 0xe60   : > { %2737 = vadd.xlane.f32.xlu1 %v2736_v22  ;;  %v6974_v22 = vld [vmem:[%s10756_s12] ss:$0 sm:$0xff] }
 0xeed   : > { %v2738_v23 = vpop.xlane.xlu1 %2737 }
 0xeee   : > { %8957 = vrcp.f32 %v2738_v23 }
 0xef8   : > { %v8958_v24 = vpop.eup %8957 }
 0xef9   : > { %v2740_v26 = vmul.f32 %v8958_v24, %v8956_v21 }
 0xefb   : > { %8239 = vmatmul.mubr.msk.f32.vlgmr.msra.gmra.mrb[34].mxu0 %vm1046_vm3, %v2740_v26  ;;  %v8725_v26 = vld [vmem:[%s10759_s15 + $0x40] sm:$0xff]  }
 0xefc   : > { %8242 = vmatpush3.bf16.msra.mxu0 %v8675_v25  ;;  %8245 = vmatprep.mubr.msk.bf16.mxu0 %vm9025_vm0, %v9024_v3 }
 0xefd   : > { %8243 = vmatprep.subr.bf16.mxu0 %v9024_v3 }
 0xf00   : > { %8244 = vmatpush3.bf16.msra.mxu0 %v8676_v27  ;;  %v8726_v27 = vld [vmem:[%s10759_s15 + $0xc0] sm:$0xff]  }
 0xf01   : > { %3127 = vmatprep.subr.bf16.mxu0 %v8679_v42  ;;  %7735 = vmatprep.subr.bf16.mxu1 %v8726_v27  ;;  %v8739_v42 = vld [vmem:[%s10759_s15 + $0x18] sm:$0xff]  }
 0xfce   : > { %v2810_v28 = vpop.f32.mrb[34].mxu0 }
 0xfcf   : > { %v2814_v29 = vpack.c.bf16 %v2810_v28, %v2810_v28  ;;  %v8240_v30 = vpop.f32.mrb[35].mxu0  ;;  %v8727_v28 = vld [vmem:[%s10759_s15] sm:$0xff]  }
 0xfd0   : > { %v8729_v30 = vld [vmem:[%s10759_s15 + $0x48] sm:$0xff]  }
 0xfd1   : > { %8246 = vmatmul.mubr.msk.bf16.vlgmr.msra.gmra.mrb[36].mxu0 %vm969_vm1, %v2814_v29  ;;  %v8728_v29 = vld [vmem:[%s10759_s15 + $0x80] sm:$0xff]  }
 0xfd2   : > { %3128 = vmatpush1.bf16.msra.mxu0 %v8677_v41  ;;  %3159 = vmatprep.mubr.bf16.mxu0 %v9027_v62  ;;  %v8738_v41 = vld [vmem:[%s10759_s15 + $0xd8] sm:$0xff]  }
 0xfd3   : > { %3129 = vmatprep.subr.bf16.mxu0 %v8685_v45  ;;  %v8742_v45 = vld [vmem:[%s10759_s15 + $0xe0] sm:$0xff]  }
 0xfd6   : > { %3130 = vmatpush1.bf16.msra.mxu0 %v8683_v47  ;;  %v8744_v47 = vld [vmem:[%s10759_s15 + $0xa0] sm:$0xff]  }
 0xfd7   : > { %3131 = vmatprep.subr.bf16.mxu0 %v8691_v49  ;;  %v8746_v49 = vld [vmem:[%s10759_s15 + $0xe8] sm:$0xff]  }
 0xfda   : > { %3132 = vmatpush1.bf16.msra.mxu0 %v8689_v51  ;;  %v8748_v51 = vld [vmem:[%s10759_s15 + $0xa8] sm:$0xff]  }
 0xfdb   : > { %3133 = vmatprep.subr.bf16.mxu0 %v8697_v57  ;;  %v8754_v57 = vld [vmem:[%s10759_s15 + $0xf8] sm:$0xff]  }
0x10a4   : > { %v2869_v31 = vpop.f32.mrb[36].mxu0 }
0x10a5   : > { %v2875_v33 = vadd.f32 %v2869_v31, %v2313_v59  ;;  %v8247_v34 = vpop.f32.mrb[37].mxu0  ;;  %v8695_v59 = vld [vmem:[%s10757_s13 + $0x60] ss:$16 sps:$4 sm:$0xff]   ;;  %v8730_v31 = vld [vmem:[%s10759_s15 + $0xc8] sm:$0xff]  }
0x10a6   : > { %v2872_v35 = vpop.f32.mrb[38].mxu0  ;;  %3134 = vmatpush1.bf16.msra.mxu0 %v8695_v59  ;;  %v8732_v34 = vld [vmem:[%s10759_s15 + $0x88] sm:$0xff]   ;;  %v8756_v59 = vld [vmem:[%s10759_s15 + $0xb8] sm:$0xff]  }
0x10a7   : > { %v2876_v38 = vadd.f32 %v9015_v37, %v2875_v33  ;;  %v8248_v39 = vpop.f32.mrb[39].mxu0  ;;  %3135 = vmatprep.subr.bf16.mxu0 %v8703_v63  ;;  %v8731_v33 = vld [vmem:[%s10759_s15 + $0x8] sm:$0xff]   ;;  %v8733_v35 = vld [vmem:[%s10759_s15 + $0x50] sm:$0xff]   ;;  %v2945_v63 = vld [vmem:[%s10758_s14] sm:$0xf] }
0x10a8   : > { %v8735_v37 = vld [vmem:[%s10759_s15 + $0x10] sm:$0xff]   ;;  %v8737_v39 = vld [vmem:[%s10759_s15 + $0x58] sm:$0xff]   ;;  %v2962_v6 = vrot.slane %v2945_v63, %v2961_v1 }
0x10a9   : > { %v9718_v40 = vadd.f32 %v6972_v36, %v2876_v38  ;;  %v8734_v36 = vld [vmem:[%s10759_s15 + $0xd0] sm:$0xff]  }
0x10aa   : > { %3136 = vmatpush1.bf16.msra.mxu0 %v8701_v61  ;;  %v8736_v38 = vld [vmem:[%s10759_s15 + $0x90] sm:$0xff]   ;;  %v2957_v61 = vsub.s32 2, %v9321_v11 }
0x10ab   : > { %2887 = vadd.xlane.f32.xlu0 %v9718_v40  ;;  %3137 = vmatprep.subr.bf16.mxu0 %v8709_v2  ;;  %v2950_v2 = vrot.slane %v2945_v63, %v2949_v60 }
0x10ac   : > { %v2958_v4 = vrot.slane %v2945_v63, %v2957_v61 }
0x10ae   : > { %3138 = vmatpush1.bf16.msra.mxu0 %v8707_v5  ;;  %v2954_v5 = vrot.slane %v2945_v63, %v2953_v0 }
0x10af   : > { %3139 = vmatprep.subr.bf16.mxu0 %v8715_v8 }
0x10b2   : > { %3140 = vmatpush1.bf16.msra.mxu0 %v8713_v9 }
0x10b3   : > { %3141 = vmatprep.subr.bf16.mxu0 %v8721_v7 }
0x10b6   : > { %3142 = vmatpush1.bf16.msra.mxu0 %v8719_v13 }
0x10b7   : > { %7713 = vmatprep.subr.bf16.mxu0 %v8725_v26 }
0x1138   : > { %v2888_v53 = vpop.xlane.xlu0 %2887 }
0x1139   : > { %v2889_v54 = vmul.f32 0.0078125, %v2888_v53  ;;  %v8750_v53 = vld [vmem:[%s10759_s15 + $0xf0] sm:$0xff]  }
0x113b   : > { %v2890_v55 = vsub.f32 %v9718_v40, %v2889_v54  ;;  %v8751_v54 = vld [vmem:[%s10759_s15 + $0x30] sm:$0xff]  }
0x113d   : > { %v2891_v56 = vmul.f32 %v2890_v55, %v2890_v55 }
0x113f   : > { %2892 = vadd.xlane.f32.xlu1 %v2891_v56  ;;  %v8753_v56 = vld [vmem:[%s10759_s15 + $0x78] sm:$0xff]  }
0x11cc   : > { %v2893_v16 = vpop.xlane.xlu1 %2892 }
0x11cd   : > { %v2894_v17 = vmul.f32 0.0078125, %v2893_v16 }
0x11cf   : > { %v2895_v18 = vadd.f32 1e-05, %v2894_v17 }
0x11d1   : > { %8959 = vrsqrt.f32 %v2895_v18 }
0x11db   : > { %v8960_v19 = vpop.eup %8959 }
0x11dc   : > { %v2897_v21 = vmul.f32 %v8960_v19, %v2890_v55  ;;  %v8752_v55 = vld [vmem:[%s10759_s15 + $0xb0] sm:$0xff]  }
0x11de   : > { %v2904_v23 = vmul.f32 %v6973_v20, %v2897_v21 }
0x11e0   : > { %v2911_v24 = vadd.f32 %v6974_v22, %v2904_v23 }
0x11e2   : > { %v2912_v25 = vpack.c.bf16 %v2911_v24, %v2911_v24 }
0x11e4   : > { %3160 = vmatmul.mubr.bf16.vlgmr.msra.gmra.mrb[40].mxu0 %v2912_v25  ;;  %3201 = vmatmul.mubr.bf16.vlgmr.msra.gmra.mrb[40].mxu1 %v2912_v25 }
0x11e5   : > { %7714 = vmatpush3.bf16.msra.mxu0 %v8727_v28  ;;  %7736 = vmatpush3.bf16.msra.mxu1 %v8728_v29 }
0x11e6   : > { %7715 = vmatprep.subr.bf16.mxu0 %v8729_v30  ;;  %7737 = vmatprep.subr.bf16.mxu1 %v8730_v31 }
0x11e9   : > { %7716 = vmatpush3.bf16.msra.mxu0 %v8731_v33  ;;  %7738 = vmatpush3.bf16.msra.mxu1 %v8732_v34 }
0x11ea   : > { %7717 = vmatprep.subr.bf16.mxu0 %v8733_v35  ;;  %7739 = vmatprep.subr.bf16.mxu1 %v8734_v36 }
0x11ed   : > { %7718 = vmatpush3.bf16.msra.mxu0 %v8735_v37  ;;  %7740 = vmatpush3.bf16.msra.mxu1 %v8736_v38 }
0x11ee   : > { %7719 = vmatprep.subr.bf16.mxu0 %v8737_v39  ;;  %7741 = vmatprep.subr.bf16.mxu1 %v8738_v41 }
0x11f1   : > { %7720 = vmatpush3.bf16.msra.mxu0 %v8739_v42  ;;  %7742 = vmatpush3.bf16.msra.mxu1 %v8740_v43 }
0x11f2   : > { %7721 = vmatprep.subr.bf16.mxu0 %v8741_v44  ;;  %7743 = vmatprep.subr.bf16.mxu1 %v8742_v45 }
0x11f5   : > { %7722 = vmatpush3.bf16.msra.mxu0 %v8743_v46  ;;  %7744 = vmatpush3.bf16.msra.mxu1 %v8744_v47 }
0x11f6   : > { %7723 = vmatprep.subr.bf16.mxu0 %v8745_v48  ;;  %7745 = vmatprep.subr.bf16.mxu1 %v8746_v49 }
0x11f9   : > { %7724 = vmatpush3.bf16.msra.mxu0 %v8747_v50  ;;  %7746 = vmatpush3.bf16.msra.mxu1 %v8748_v51 }
0x11fa   : > { %7725 = vmatprep.subr.bf16.mxu0 %v8749_v52  ;;  %7747 = vmatprep.subr.bf16.mxu1 %v8750_v53  ;;  %v7011_v52 = vld [vmem:[%s10760_s16] ss:$0 sm:$0xff] }
0x11fd   : > { %7726 = vmatpush3.bf16.msra.mxu0 %v8751_v54  ;;  %7748 = vmatpush3.bf16.msra.mxu1 %v8752_v55 }
0x11fe   : > { %7727 = vmatprep.subr.bf16.mxu0 %v8753_v56  ;;  %7749 = vmatprep.subr.bf16.mxu1 %v8754_v57 }
0x1201   : > { %7728 = vmatpush3.bf16.msra.mxu0 %v8755_v58  ;;  %7750 = vmatpush3.bf16.msra.mxu1 %v8756_v59 }
0x1202   : > { %8249 = vmatprep.subr.bf16.mxu0 %v9024_v3  ;;  %8269 = vmatprep.subr.bf16.mxu1 %v9024_v3 }
0x12b7   : > { %v3161_v8 = vpop.f32.mrb[40].mxu0  ;;  %v3202_v32 = vpop.f32.mrb[40].mxu1 }
0x12b8   : > { %v3162_v9 = vadd.f32 %v3161_v8, %v2950_v2  ;;  %v3203_v10 = vadd.f32 %v3202_v32, %v2958_v4  ;;  %v3163_v7 = vpop.f32.mrb[41].mxu0  ;;  %v3204_v12 = vpop.f32.mrb[41].mxu1  ;;  %v8758_v8 = vld [vmem:[%s10749_s5 + $0x100] sm:$0xff]   ;;  %v8759_v32 = vld [vmem:[%s10775_s25 + $0x108] sm:$0xff]  }
0x12b9   : > { %v3164_v13 = vadd.f32 %v3163_v7, %v2954_v5  ;;  %v3205_v15 = vadd.f32 %v3204_v12, %v2962_v6  ;;  %v3165_v16 = vpop.f32.mrb[42].mxu0  ;;  %v3206_v17 = vpop.f32.mrb[42].mxu1  ;;  %v8757_v6 = vld [vmem:[%s10775_s25 + $0x100] sm:$0xff]  }
0x12ba   : > { %v7007_v18 = vmul.f32 -1.702, %v3162_v9  ;;  %v7009_v19 = vmul.f32 -1.702, %v3203_v10  ;;  %v3166_v20 = vpop.f32.mrb[43].mxu0  ;;  %v3207_v21 = vpop.f32.mrb[43].mxu1 }
0x12bb   : > { %v7008_v22 = vmul.f32 -1.702, %v3164_v13  ;;  %v7010_v23 = vmul.f32 -1.702, %v3205_v15  ;;  %v8763_v16 = vld [vmem:[%s10775_s25 + $0x118] sm:$0xff]   ;;  %v8767_v20 = vld [vmem:[%s10775_s25 + $0x128] sm:$0xff]  }
0x12bc   : > { %v3217_v24 = vmul.f32 1.442695, %v7007_v18  ;;  %v3221_v25 = vmul.f32 1.442695, %v7009_v19  ;;  %v8764_v17 = vld [vmem:[%s10749_s5 + $0x118] sm:$0xff]   ;;  %v8765_v18 = vld [vmem:[%s10775_s25 + $0x120] sm:$0xff]  }
0x12bd   : > { %v3219_v26 = vmul.f32 1.442695, %v7008_v22  ;;  %v3223_v27 = vmul.f32 1.442695, %v7010_v23  ;;  %v8766_v19 = vld [vmem:[%s10749_s5 + $0x120] sm:$0xff]   ;;  %v8768_v21 = vld [vmem:[%s10749_s5 + $0x128] sm:$0xff]  }
0x12be   : > { %8961 = vpow2.f32 %v3217_v24  ;;  %v8769_v22 = vld [vmem:[%s10775_s25 + $0x130] sm:$0xff]   ;;  %v8771_v24 = vld [vmem:[%s10775_s25 + $0x138] sm:$0xff]  }
0x12bf   : > { %8963 = vpow2.f32 %v3221_v25  ;;  %v8770_v23 = vld [vmem:[%s10749_s5 + $0x130] sm:$0xff]   ;;  %v8772_v25 = vld [vmem:[%s10749_s5 + $0x138] sm:$0xff]  }
0x12c0   : > { %8965 = vpow2.f32 %v3219_v26 }
0x12c1   : > { %8967 = vpow2.f32 %v3223_v27 }
0x12c8   : > { %v8962_v28 = vpop.eup %8961 }
0x12c9   : > { %v8964_v29 = vpop.eup %8963  ;;  %v3225_v30 = vadd.f32 1.0, %v8962_v28 }
0x12ca   : > { %v8966_v31 = vpop.eup %8965  ;;  %v3227_v33 = vadd.f32 1.0, %v8964_v29 }
0x12cb   : > { %v8968_v34 = vpop.eup %8967  ;;  %8969 = vrcp.f32 %v3225_v30  ;;  %v3226_v35 = vadd.f32 1.0, %v8966_v31  ;;  %v7046_v30 = vld [vmem:[%s10776_s27 + $0x1] ss:$0 sm:$0xff] }
0x12cc   : > { %8971 = vrcp.f32 %v3227_v33  ;;  %v3228_v36 = vadd.f32 1.0, %v8968_v34  ;;  %v7047_v33 = vld [vmem:[%s10777_s21 + $0x1] ss:$0 sm:$0xff] }
0x12cd   : > { %8973 = vrcp.f32 %v3226_v35 }
0x12ce   : > { %8975 = vrcp.f32 %v3228_v36  ;;  %v8773_v36 = vld [vmem:[%s10751_s7 + $0x100] sm:$0xff]  }
0x12d5   : > { %v8970_v37 = vpop.eup %8969 }
0x12d6   : > { %v8972_v38 = vpop.eup %8971  ;;  %v3237_v41 = vmul.f32 %v8970_v37, %v3162_v9  ;;  %v8761_v9 = vld [vmem:[%s10775_s25 + $0x110] sm:$0xff]  }
0x12d7   : > { %v8974_v39 = vpop.eup %8973  ;;  %v3239_v43 = vmul.f32 %v8972_v38, %v3203_v10  ;;  %v8774_v38 = vld [vmem:[%s10751_s7 + $0x108] sm:$0xff]  }
0x12d8   : > { %v8976_v42 = vpop.eup %8975  ;;  %v3238_v44 = vmul.f32 %v8974_v39, %v3164_v13  ;;  %v3241_v47 = vpack.c.bf16 %v3237_v41, %v3237_v41  ;;  %v8775_v39 = vld [vmem:[%s10751_s7 + $0x110] sm:$0xff]   ;;  %v8776_v41 = vld [vmem:[%s10751_s7 + $0x118] sm:$0xff]  }
0x12d9   : > { %v3240_v45 = vmul.f32 %v8976_v42, %v3205_v15  ;;  %v3243_v49 = vpack.c.bf16 %v3239_v43, %v3239_v43  ;;  %v8762_v15 = vld [vmem:[%s10749_s5 + $0x110] sm:$0xff]   ;;  %v8777_v42 = vld [vmem:[%s10751_s7 + $0x120] sm:$0xff]   ;;  %v8778_v43 = vld [vmem:[%s10751_s7 + $0x128] sm:$0xff]  }
0x12da   : > { %v3242_v46 = vpack.c.bf16 %v3238_v44, %v3238_v44  ;;  %v8779_v44 = vld [vmem:[%s10751_s7 + $0x130] sm:$0xff]  }
0x12db   : > { %v3244_v48 = vpack.c.bf16 %v3240_v45, %v3240_v45  ;;  %v8780_v45 = vld [vmem:[%s10751_s7 + $0x138] sm:$0xff]  }
0x12dc   : > { %3540 = vmatprep.mubr.bf16.mxu0 %v3242_v46  ;;  %v8781_v46 = vld [vmem:[%s10749_s5 + $0x140] sm:$0xff]  }
0x12dd   : > { %3580 = vmatprep.mubr.bf16.mxu1 %v3244_v48  ;;  %3541 = vmatmul.mubr.bf16.vlgmr.msra.gmra.mrb[44].mxu0 %v3241_v47  ;;  %v8782_v47 = vld [vmem:[%s10749_s5 + $0x148] sm:$0xff]   ;;  %v8783_v48 = vld [vmem:[%s10749_s5 + $0x150] sm:$0xff]  }
0x12de   : > { %3581 = vmatmul.mubr.bf16.vlgmr.msra.gmra.mrb[44].mxu1 %v3243_v49  ;;  %8265 = vmatprep.mubr.msk.bf16.mxu0 %vm9025_vm0, %v9024_v3  ;;  %v8784_v49 = vld [vmem:[%s10749_s5 + $0x158] sm:$0xff]  }
0x12df   : > { %8285 = vmatprep.mubr.msk.bf16.mxu1 %vm9025_vm0, %v9024_v3  ;;  %8250 = vmatpush3.bf16.msra.mxu0 %v8757_v6 }
0x12e0   : > { %8270 = vmatpush3.bf16.msra.mxu1 %v8758_v8  ;;  %8251 = vmatprep.subr.bf16.mxu0 %v9024_v3 }
0x12e1   : > { %8271 = vmatprep.subr.bf16.mxu1 %v9024_v3 }
0x12e3   : > { %8252 = vmatpush3.bf16.msra.mxu0 %v8759_v32 }
0x12e4   : > { %8253 = vmatprep.subr.bf16.mxu0 %v9024_v3 }
0x12e7   : > { %8254 = vmatpush3.bf16.msra.mxu0 %v8761_v9  ;;  %v7117_v9 = vld [vmem:[%s10752_s8 + $0x4] ss:$0 sm:$0xff] }
0x12e8   : > { %8255 = vmatprep.subr.bf16.mxu0 %v9024_v3 }
0x12eb   : > { %8256 = vmatpush3.bf16.msra.mxu0 %v8763_v16  ;;  %v7176_v16 = vld [vmem:[%s10750_s6 + $0x5] ss:$0 sm:$0xff] }
0x12ec   : > { %8257 = vmatprep.subr.bf16.mxu0 %v9024_v3 }
0x12ef   : > { %8258 = vmatpush3.bf16.msra.mxu0 %v8765_v18 }
0x12f0   : > { %8259 = vmatprep.subr.bf16.mxu0 %v9024_v3 }
0x12f3   : > { %8260 = vmatpush3.bf16.msra.mxu0 %v8767_v20 }
0x12f4   : > { %8261 = vmatprep.subr.bf16.mxu0 %v9024_v3 }
0x12f7   : > { %8262 = vmatpush3.bf16.msra.mxu0 %v8769_v22 }
0x12f8   : > { %8263 = vmatprep.subr.bf16.mxu0 %v9024_v3 }
0x12fb   : > { %8264 = vmatpush3.bf16.msra.mxu0 %v8771_v24 }
0x12fc   : > { %8289 = vmatprep.subr.bf16.mxu0 %v9024_v3 }
0x13b0   : > { %v7729_v50 = vpop.f32.mrb[44].mxu0 }
0x13b1   : > { %v7751_v51 = vpop.f32.mrb[44].mxu1  ;;  %v7730_v53 = vpop.f32.mrb[45].mxu0 }
0x13b2   : > { %v7731_v54 = vadd.f32 %v7730_v53, %v7729_v50  ;;  %v7752_v55 = vpop.f32.mrb[45].mxu1  ;;  %v7732_v56 = vpop.f32.mrb[46].mxu0  ;;  %v8785_v50 = vld [vmem:[%s10749_s5 + $0x160] sm:$0xff]   ;;  %v8788_v53 = vld [vmem:[%s10749_s5 + $0x178] sm:$0xff]  }
0x13b3   : > { %v7753_v57 = vadd.f32 %v7752_v55, %v7751_v51  ;;  %v7754_v58 = vpop.f32.mrb[46].mxu1  ;;  %v7733_v59 = vpop.f32.mrb[47].mxu0  ;;  %v8786_v51 = vld [vmem:[%s10749_s5 + $0x168] sm:$0xff]   ;;  %v7091_v55 = vld [vmem:[%s10750_s6 + $0x4] ss:$0 sm:$0xff] }
0x13b4   : > { %v3543_v63 = vadd.f32 %v7731_v54, %v7011_v52  ;;  %v7755_v2 = vpop.f32.mrb[47].mxu1  ;;  %v8787_v52 = vld [vmem:[%s10749_s5 + $0x170] sm:$0xff]   ;;  %v7065_v54 = vld [vmem:[%s10748_s4 + $0x4] ss:$0 sm:$0xff] }
0x13b6   : > { %v3583_v4 = vadd.f32 %v7753_v57, %v3543_v63 }
0x13b8   : > { %v9947_v5 = vadd.f32 %v3583_v4, %v9718_v40  ;;  %v8760_v40 = vld [vmem:[%s10749_s5 + $0x108] sm:$0xff]  }
0x13b9   : > { %8272 = vmatpush3.bf16.msra.mxu1 %v8760_v40 }
0x13ba   : > { %3593 = vadd.xlane.f32.xlu0 %v9947_v5  ;;  %8273 = vmatprep.subr.bf16.mxu1 %v9024_v3 }
0x13bd   : > { %8274 = vmatpush3.bf16.msra.mxu1 %v8762_v15 }
0x13be   : > { %8275 = vmatprep.subr.bf16.mxu1 %v9024_v3 }
0x13c1   : > { %8276 = vmatpush3.bf16.msra.mxu1 %v8764_v17 }
0x13c2   : > { %8277 = vmatprep.subr.bf16.mxu1 %v9024_v3 }
0x13c5   : > { %8278 = vmatpush3.bf16.msra.mxu1 %v8766_v19 }
0x13c6   : > { %8279 = vmatprep.subr.bf16.mxu1 %v9024_v3 }
0x13c9   : > { %8280 = vmatpush3.bf16.msra.mxu1 %v8768_v21 }
0x13ca   : > { %8281 = vmatprep.subr.bf16.mxu1 %v9024_v3 }
0x13cd   : > { %8282 = vmatpush3.bf16.msra.mxu1 %v8770_v23 }
0x13ce   : > { %8283 = vmatprep.subr.bf16.mxu1 %v9024_v3 }
0x13d1   : > { %8284 = vmatpush3.bf16.msra.mxu1 %v8772_v25 }
0x13d2   : > { %8309 = vmatprep.subr.mxu1 %v9024_v3 }
0x1447   : > { %v3594_v10 = vpop.xlane.xlu0 %3593 }
0x1448   : > { %v3595_v7 = vmul.f32 0.0078125, %v3594_v10 }
0x144a   : > { %v3596_v12 = vsub.f32 %v9947_v5, %v3595_v7 }
0x144c   : > { %v3597_v13 = vmul.f32 %v3596_v12, %v3596_v12 }
0x144e   : > { %3598 = vadd.xlane.f32.xlu1 %v3597_v13 }
0x14db   : > { %v3599_v26 = vpop.xlane.xlu1 %3598 }
0x14dc   : > { %v3600_v27 = vmul.f32 0.0078125, %v3599_v26 }
0x14de   : > { %v3601_v28 = vadd.f32 1e-05, %v3600_v27 }
0x14e0   : > { %8977 = vrsqrt.f32 %v3601_v28 }
0x14ea   : > { %v8978_v29 = vpop.eup %8977 }
0x14eb   : > { %v3603_v31 = vmul.f32 %v8978_v29, %v3596_v12 }
0x14ed   : > { %v3610_v34 = vmul.f32 %v7046_v30, %v3603_v31 }
0x14ef   : > { %v3617_v35 = vadd.f32 %v7047_v33, %v3610_v34  ;;  %v8789_v34 = vld [vmem:[%s10775_s25 + $0x140] sm:$0xff]  }
0x14f1   : > { %v10024_v37 = vpack.c.bf16 %v3617_v35, %v3617_v35 }
0x14f3   : > { %8266 = vmatmul.mubr.bf16.vlgmr.msra.gmra.mrb[48].mxu0 %v10024_v37  ;;  %8286 = vmatmul.mubr.bf16.vlgmr.msra.gmra.mrb[48].mxu1 %v10024_v37 }
0x14f4   : > { %8290 = vmatpush3.bf16.msra.mxu0 %v8773_v36  ;;  %8305 = vmatprep.mubr.msk.bf16.mxu0 %vm9025_vm0, %v9024_v3  ;;  %v8790_v36 = vld [vmem:[%s10775_s25 + $0x148] sm:$0xff]  }
0x14f5   : > { %8291 = vmatprep.subr.bf16.mxu0 %v9024_v3  ;;  %8311 = vmatprep.mubr.msk.f32.mxu1 %vm9025_vm0, %v9024_v3 }
0x14f8   : > { %8292 = vmatpush3.bf16.msra.mxu0 %v8774_v38  ;;  %v8791_v38 = vld [vmem:[%s10775_s25 + $0x150] sm:$0xff]  }
0x14f9   : > { %8293 = vmatprep.subr.bf16.mxu0 %v9024_v3 }
0x14fc   : > { %8294 = vmatpush3.bf16.msra.mxu0 %v8775_v39  ;;  %v8792_v39 = vld [vmem:[%s10775_s25 + $0x158] sm:$0xff]  }
0x14fd   : > { %8295 = vmatprep.subr.bf16.mxu0 %v9024_v3 }
0x1500   : > { %8296 = vmatpush3.bf16.msra.mxu0 %v8776_v41  ;;  %v8793_v41 = vld [vmem:[%s10775_s25 + $0x160] sm:$0xff]  }
0x1501   : > { %8297 = vmatprep.subr.bf16.mxu0 %v9024_v3 }
0x1504   : > { %8298 = vmatpush3.bf16.msra.mxu0 %v8777_v42  ;;  %v8794_v42 = vld [vmem:[%s10775_s25 + $0x168] sm:$0xff]  }
0x1505   : > { %8299 = vmatprep.subr.bf16.mxu0 %v9024_v3 }
0x1508   : > { %8300 = vmatpush3.bf16.msra.mxu0 %v8778_v43  ;;  %v8795_v43 = vld [vmem:[%s10775_s25 + $0x170] sm:$0xff]  }
0x1509   : > { %8301 = vmatprep.subr.bf16.mxu0 %v9024_v3 }
0x150c   : > { %8302 = vmatpush3.bf16.msra.mxu0 %v8779_v44  ;;  %v8796_v44 = vld [vmem:[%s10775_s25 + $0x178] sm:$0xff]  }
0x150d   : > { %8303 = vmatprep.subr.bf16.mxu0 %v9024_v3 }
0x1510   : > { %8304 = vmatpush3.bf16.msra.mxu0 %v8780_v45  ;;  %v8797_v45 = vld [vmem:[%s10751_s7 + $0x140] sm:$0xff]  }
0x1511   : > { %8339 = vmatprep.subr.bf16.mxu0 %v9024_v3 }
0x1513   : > { %8306 = vmatmul.mubr.bf16.vlgmr.msra.gmra.mrb[52].mxu0 %v10024_v37 }
0x1514   : > { %8340 = vmatpush3.bf16.msra.mxu0 %v8781_v46  ;;  %8355 = vmatprep.mubr.msk.bf16.mxu0 %vm9025_vm0, %v9024_v3  ;;  %v8798_v46 = vld [vmem:[%s10751_s7 + $0x148] sm:$0xff]  }
0x1515   : > { %8341 = vmatprep.subr.bf16.mxu0 %v9024_v3 }
0x1518   : > { %8342 = vmatpush3.bf16.msra.mxu0 %v8782_v47  ;;  %v8799_v47 = vld [vmem:[%s10751_s7 + $0x150] sm:$0xff]  }
0x1519   : > { %8343 = vmatprep.subr.bf16.mxu0 %v9024_v3 }
0x151c   : > { %8344 = vmatpush3.bf16.msra.mxu0 %v8783_v48  ;;  %v8800_v48 = vld [vmem:[%s10751_s7 + $0x158] sm:$0xff]  }
0x151d   : > { %8345 = vmatprep.subr.bf16.mxu0 %v9024_v3 }
0x1520   : > { %8346 = vmatpush3.bf16.msra.mxu0 %v8784_v49  ;;  %v8801_v49 = vld [vmem:[%s10751_s7 + $0x160] sm:$0xff]  }
0x1521   : > { %8347 = vmatprep.subr.bf16.mxu0 %v9024_v3 }
0x1524   : > { %8348 = vmatpush3.bf16.msra.mxu0 %v8785_v50  ;;  %v8802_v50 = vld [vmem:[%s10751_s7 + $0x168] sm:$0xff]  }
0x1525   : > { %8349 = vmatprep.subr.bf16.mxu0 %v9024_v3 }
0x1528   : > { %8350 = vmatpush3.bf16.msra.mxu0 %v8786_v51  ;;  %v8803_v51 = vld [vmem:[%s10751_s7 + $0x170] sm:$0xff]  }
0x1529   : > { %8351 = vmatprep.subr.bf16.mxu0 %v9024_v3 }
0x152c   : > { %8352 = vmatpush3.bf16.msra.mxu0 %v8787_v52  ;;  %v8804_v52 = vld [vmem:[%s10751_s7 + $0x178] sm:$0xff]  }
0x152d   : > { %8353 = vmatprep.subr.bf16.mxu0 %v9024_v3 }
0x1530   : > { %8354 = vmatpush3.bf16.msra.mxu0 %v8788_v53  ;;  %v8805_v53 = vld [vmem:[%s10753_s9 + $0x40] sm:$0xff]  }
0x1531   : > { %8379 = vmatprep.subr.mxu0 %v9024_v3 }
0x1533   : > { %8356 = vmatmul.mubr.bf16.vlgmr.msra.gmra.mrb[56].mxu0 %v10024_v37 }
0x1534   : > { %8381 = vmatprep.mubr.msk.f32.mxu0 %vm9025_vm0, %v9024_v3 }
0x15c6   : > { %v3726_v56 = vpop.f32.mrb[48].mxu0  ;;  %v3839_v57 = vpop.f32.mrb[48].mxu1 }
0x15c7   : > { %v3727_v58 = vadd.f32 %v7065_v54, %v3726_v56  ;;  %v3840_v59 = vadd.f32 %v7091_v55, %v3839_v57  ;;  %v8267_v63 = vpop.f32.mrb[49].mxu0  ;;  %v8287_v2 = vpop.f32.mrb[49].mxu1  ;;  %v8806_v54 = vld [vmem:[%s10753_s9 + $0x48] sm:$0xff]   ;;  %v8807_v56 = vld [vmem:[%s10749_s5 + $0x180] sm:$0xff]  }
0x15c8   : > { %v3729_v4 = vpop.f32.mrb[50].mxu0  ;;  %v3842_v6 = vpop.f32.mrb[50].mxu1  ;;  %v8809_v63 = vld [vmem:[%s10749_s5 + $0x190] sm:$0xff]   ;;  %v8810_v2 = vld [vmem:[%s10749_s5 + $0x198] sm:$0xff]  }
0x15c9   : > { %v3958_v8 = vmul.f32 0.17677669, %v3727_v58  ;;  %v8268_v32 = vpop.f32.mrb[51].mxu0  ;;  %v8288_v40 = vpop.f32.mrb[51].mxu1  ;;  %8310 = vmatpush3.xpose.msk.msra.mxu1 %vm969_vm1, %v3840_v59  ;;  %v8808_v59 = vld [vmem:[%s10749_s5 + $0x188] sm:$0xff]   ;;  %v8811_v4 = vld [vmem:[%s10749_s5 + $0x1a0] sm:$0xff]  }
0x15ca   : > { %8314 = vmatprep.subr.mxu1 %v9024_v3  ;;  %v8812_v6 = vld [vmem:[%s10749_s5 + $0x1a8] sm:$0xff]   ;;  %v8814_v32 = vld [vmem:[%s10749_s5 + $0x1b8] sm:$0xff]   ;;  %v7150_v40 = vld [vmem:[%s10748_s4 + $0x5] ss:$0 sm:$0xff] }
0x15cc   : > { %8312 = vmatmul.mubr.msk.f32.vlgmr.msra.gmra.mrb[52].mxu1 %vm969_vm1, %v3958_v8  ;;  %v8813_v8 = vld [vmem:[%s10749_s5 + $0x1b0] sm:$0xff]  }
0x15cd   : > { %8316 = vmatprep.mubr.msk.f32.mxu1 %vm9025_vm0, %v9024_v3 }
0x15e6   : > { %v3952_v10 = vpop.f32.mrb[52].mxu0 }
0x15e7   : > { %v3953_v7 = vadd.f32 %v7117_v9, %v3952_v10  ;;  %v8307_v12 = vpop.f32.mrb[53].mxu0 }
0x15e8   : > { %v3955_v13 = vpop.f32.mrb[54].mxu0 }
0x15e9   : > { %v8308_v15 = vpop.f32.mrb[55].mxu0  ;;  %8315 = vmatpush3.msra.mxu1 %v3953_v7 }
0x15ea   : > { %8319 = vmatprep.subr.bf16.mxu1 %v9024_v3 }
0x1606   : > { %v4345_v17 = vpop.f32.mrb[56].mxu0 }
0x1607   : > { %v4346_v18 = vadd.f32 %v7176_v16, %v4345_v17  ;;  %v8357_v19 = vpop.f32.mrb[57].mxu0  ;;  %v7202_v16 = vld [vmem:[%s10752_s8 + $0x5] ss:$0 sm:$0xff] }
0x1608   : > { %v4348_v20 = vpop.f32.mrb[58].mxu0 }
0x1609   : > { %v8358_v21 = vpop.f32.mrb[59].mxu0  ;;  %8380 = vmatpush3.xpose.msk.msra.mxu0 %vm969_vm1, %v4346_v18 }
0x160a   : > { %8384 = vmatprep.subr.mxu0 %v9024_v3 }
0x169f   : > { %v4031_v22 = vpop.f32.mrb[52].mxu1 }
0x16a0   : > { %v4032_v23 = vadd.f32 %v4031_v22, %v9324_v14  ;;  %v8313_v24 = vpop.f32.mrb[53].mxu1 }
0x16a2   : > { %v4035_v25 = vsel %vm1046_vm3, %v4032_v23, -inf }
0x16a3   : > { %4036 = vmax.xlane.f32.xlu0 %v4035_v25 }
0x1730   : > { %v4037_v26 = vpop.xlane.xlu0 %4036 }
0x1731   : > { %v4038_v27 = vsub.f32 %v4032_v23, %v4037_v26  ;;  %v7267_v26 = vld [vmem:[%s10750_s6 + $0x6] ss:$0 sm:$0xff] }
0x1733   : > { %v4039_v28 = vmul.f32 1.442695, %v4038_v27 }
0x1735   : > { %8979 = vpow2.f32 %v4039_v28 }
0x173f   : > { %v8980_v29 = vpop.eup %8979 }
0x1740   : > { %v4041_v30 = vsel %vm1046_vm3, %v8980_v29, 0.0 }
0x1741   : > { %4042 = vadd.xlane.f32.xlu1 %v4041_v30 }
0x17ce   : > { %v4043_v31 = vpop.xlane.xlu1 %4042 }
0x17cf   : > { %8981 = vrcp.f32 %v4043_v31 }
0x17d9   : > { %v8982_v33 = vpop.eup %8981 }
0x17da   : > { %v4045_v35 = vmul.f32 %v8982_v33, %v8980_v29 }
0x17dc   : > { %8317 = vmatmul.mubr.msk.f32.vlgmr.msra.gmra.mrb[54].mxu1 %vm1046_vm3, %v4045_v35 }
0x17dd   : > { %8320 = vmatpush3.bf16.msra.mxu1 %v8789_v34  ;;  %8335 = vmatprep.mubr.msk.bf16.mxu1 %vm9025_vm0, %v9024_v3 }
0x17de   : > { %8321 = vmatprep.subr.bf16.mxu1 %v9024_v3 }
0x17e1   : > { %8322 = vmatpush3.bf16.msra.mxu1 %v8790_v36 }
0x17e2   : > { %8323 = vmatprep.subr.bf16.mxu1 %v9024_v3 }
0x17e5   : > { %8324 = vmatpush3.bf16.msra.mxu1 %v8791_v38 }
0x17e6   : > { %8325 = vmatprep.subr.bf16.mxu1 %v9024_v3 }
0x17e9   : > { %8326 = vmatpush3.bf16.msra.mxu1 %v8792_v39 }
0x17ea   : > { %8327 = vmatprep.subr.bf16.mxu1 %v9024_v3 }
0x17ed   : > { %8328 = vmatpush3.bf16.msra.mxu1 %v8793_v41 }
0x17ee   : > { %8329 = vmatprep.subr.bf16.mxu1 %v9024_v3 }
0x17f1   : > { %8330 = vmatpush3.bf16.msra.mxu1 %v8794_v42 }
0x17f2   : > { %8331 = vmatprep.subr.bf16.mxu1 %v9024_v3 }
0x17f5   : > { %8332 = vmatpush3.bf16.msra.mxu1 %v8795_v43 }
0x17f6   : > { %8333 = vmatprep.subr.bf16.mxu1 %v9024_v3 }
0x17f9   : > { %8334 = vmatpush3.bf16.msra.mxu1 %v8796_v44 }
0x17fa   : > { %8359 = vmatprep.subr.bf16.mxu1 %v9024_v3 }
0x17fc   : > { %8336 = vmatmul.mubr.bf16.vlgmr.msra.gmra.mrb[56].mxu1 %v10024_v37 }
0x17fd   : > { %8360 = vmatpush3.bf16.msra.mxu1 %v8797_v45  ;;  %8375 = vmatprep.mubr.msk.bf16.mxu1 %vm9025_vm0, %v9024_v3 }
0x17fe   : > { %8361 = vmatprep.subr.bf16.mxu1 %v9024_v3 }
0x1801   : > { %8362 = vmatpush3.bf16.msra.mxu1 %v8798_v46  ;;  %v8815_v46 = vld [vmem:[%s10753_s9 + $0x50] sm:$0xff]  }
0x1802   : > { %8363 = vmatprep.subr.bf16.mxu1 %v9024_v3 }
0x1805   : > { %8364 = vmatpush3.bf16.msra.mxu1 %v8799_v47 }
0x1806   : > { %8365 = vmatprep.subr.bf16.mxu1 %v9024_v3 }
0x1809   : > { %8366 = vmatpush3.bf16.msra.mxu1 %v8800_v48  ;;  %v8816_v48 = vld [vmem:[%s10753_s9 + $0x58] sm:$0xff]  }
0x180a   : > { %8367 = vmatprep.subr.bf16.mxu1 %v9024_v3 }
0x180d   : > { %8368 = vmatpush3.bf16.msra.mxu1 %v8801_v49 }
0x180e   : > { %8369 = vmatprep.subr.bf16.mxu1 %v9024_v3 }
0x1811   : > { %8370 = vmatpush3.bf16.msra.mxu1 %v8802_v50  ;;  %v8817_v50 = vld [vmem:[%s10775_s25 + $0x180] sm:$0xff]  }
0x1812   : > { %8371 = vmatprep.subr.bf16.mxu1 %v9024_v3 }
0x1815   : > { %8372 = vmatpush3.bf16.msra.mxu1 %v8803_v51 }
0x1816   : > { %8373 = vmatprep.subr.bf16.mxu1 %v9024_v3 }
0x1819   : > { %8374 = vmatpush3.bf16.msra.mxu1 %v8804_v52 }
0x181a   : > { %8397 = vmatprep.subr.bf16.mxu1 %v9024_v3 }
0x181c   : > { %8376 = vmatmul.mubr.bf16.vlgmr.msra.gmra.mrb[60].mxu1 %v10024_v37 }
0x181d   : > { %8398 = vmatpush3.bf16.msra.mxu1 %v8805_v53  ;;  %8401 = vmatprep.mubr.msk.bf16.mxu1 %vm9025_vm0, %v9024_v3  ;;  %v8818_v53 = vld [vmem:[%s10775_s25 + $0x188] sm:$0xff]  }
0x181e   : > { %8399 = vmatprep.subr.bf16.mxu1 %v9024_v3 }
0x1821   : > { %8400 = vmatpush3.bf16.msra.mxu1 %v8806_v54  ;;  %v8819_v54 = vld [vmem:[%s10775_s25 + $0x190] sm:$0xff]  }
0x1822   : > { %8425 = vmatprep.subr.bf16.mxu1 %v9024_v3 }
0x18af   : > { %v4115_v55 = vpop.f32.mrb[54].mxu1 }
0x18b0   : > { %v4119_v57 = vpack.c.bf16 %v4115_v55, %v4115_v55  ;;  %v8318_v58 = vpop.f32.mrb[55].mxu1  ;;  %v8820_v55 = vld [vmem:[%s10775_s25 + $0x198] sm:$0xff]  }
0x18b1   : > { %v8823_v58 = vld [vmem:[%s10775_s25 + $0x1b0] sm:$0xff]  }
0x18b2   : > { %8402 = vmatmul.mubr.msk.bf16.vlgmr.msra.gmra.mrb[64].mxu1 %vm969_vm1, %v4119_v57  ;;  %v8822_v57 = vld [vmem:[%s10775_s25 + $0x1a8] sm:$0xff]  }
0x18b3   : > { %8426 = vmatpush3.bf16.msra.mxu1 %v8807_v56  ;;  %8441 = vmatprep.mubr.msk.bf16.mxu1 %vm9025_vm0, %v9024_v3  ;;  %v8821_v56 = vld [vmem:[%s10775_s25 + $0x1a0] sm:$0xff]  }
0x18b4   : > { %8427 = vmatprep.subr.bf16.mxu1 %v9024_v3 }
0x18b7   : > { %8428 = vmatpush3.bf16.msra.mxu1 %v8808_v59  ;;  %v8824_v59 = vld [vmem:[%s10775_s25 + $0x1b8] sm:$0xff]  }
0x18b8   : > { %8429 = vmatprep.subr.bf16.mxu1 %v9024_v3 }
0x18bb   : > { %8430 = vmatpush3.bf16.msra.mxu1 %v8809_v63  ;;  %v8825_v63 = vld [vmem:[%s10751_s7 + $0x180] sm:$0xff]  }
0x18bc   : > { %8431 = vmatprep.subr.bf16.mxu1 %v9024_v3 }
0x18bf   : > { %8432 = vmatpush3.bf16.msra.mxu1 %v8810_v2  ;;  %v8826_v2 = vld [vmem:[%s10751_s7 + $0x188] sm:$0xff]  }
0x18c0   : > { %8433 = vmatprep.subr.bf16.mxu1 %v9024_v3 }
0x18c3   : > { %8434 = vmatpush3.bf16.msra.mxu1 %v8811_v4  ;;  %v8827_v4 = vld [vmem:[%s10751_s7 + $0x190] sm:$0xff]  }
0x18c4   : > { %8435 = vmatprep.subr.bf16.mxu1 %v9024_v3 }
0x18c7   : > { %8436 = vmatpush3.bf16.msra.mxu1 %v8812_v6  ;;  %v8828_v6 = vld [vmem:[%s10751_s7 + $0x198] sm:$0xff]  }
0x18c8   : > { %8437 = vmatprep.subr.bf16.mxu1 %v9024_v3 }
0x18cb   : > { %8438 = vmatpush3.bf16.msra.mxu1 %v8813_v8  ;;  %v8829_v8 = vld [vmem:[%s10751_s7 + $0x1a0] sm:$0xff]  }
0x18cc   : > { %8439 = vmatprep.subr.bf16.mxu1 %v9024_v3 }
0x18cf   : > { %v4232_v9 = vpop.f32.mrb[56].mxu1  ;;  %8440 = vmatpush3.bf16.msra.mxu1 %v8814_v32  ;;  %v8830_v32 = vld [vmem:[%s10751_s7 + $0x1a8] sm:$0xff]  }
0x18d0   : > { %v4233_v10 = vadd.f32 %v7150_v40, %v4232_v9  ;;  %v8337_v7 = vpop.f32.mrb[57].mxu1  ;;  %8465 = vmatprep.subr.mxu1 %v9024_v3  ;;  %v8831_v40 = vld [vmem:[%s10751_s7 + $0x1b0] sm:$0xff]   ;;  %v8832_v9 = vld [vmem:[%s10751_s7 + $0x1b8] sm:$0xff]  }
0x18d1   : > { %v4235_v12 = vpop.f32.mrb[58].mxu1  ;;  %v8834_v7 = vld [vmem:[%s10749_s5 + $0x1c8] sm:$0xff]  }
0x18d2   : > { %v4464_v13 = vmul.f32 0.17677669, %v4233_v10  ;;  %v8338_v15 = vpop.f32.mrb[59].mxu1  ;;  %8442 = vmatmul.mubr.bf16.vlgmr.msra.gmra.mrb[68].mxu1 %v10024_v37  ;;  %v8833_v10 = vld [vmem:[%s10749_s5 + $0x1c0] sm:$0xff]   ;;  %v8835_v12 = vld [vmem:[%s10749_s5 + $0x1d0] sm:$0xff]  }
0x18d3   : > { %8467 = vmatprep.mubr.msk.f32.mxu1 %vm9025_vm0, %v9024_v3  ;;  %v8837_v15 = vld [vmem:[%s10749_s5 + $0x1e0] sm:$0xff]  }
0x18d4   : > { %8382 = vmatmul.mubr.msk.f32.vlgmr.msra.gmra.mrb[60].mxu0 %vm969_vm1, %v4464_v13  ;;  %v8836_v13 = vld [vmem:[%s10749_s5 + $0x1d8] sm:$0xff]  }
0x18d5   : > { %8386 = vmatprep.mubr.msk.f32.mxu0 %vm9025_vm0, %v9024_v3 }
0x18ef   : > { %v4458_v17 = vpop.f32.mrb[60].mxu1 }
0x18f0   : > { %v4459_v18 = vadd.f32 %v7202_v16, %v4458_v17  ;;  %v8377_v19 = vpop.f32.mrb[61].mxu1  ;;  %v8838_v16 = vld [vmem:[%s10749_s5 + $0x1e8] sm:$0xff]   ;;  %v8839_v17 = vld [vmem:[%s10749_s5 + $0x1f0] sm:$0xff]  }
0x18f1   : > { %v4461_v20 = vpop.f32.mrb[62].mxu1 }
0x18f2   : > { %v8378_v21 = vpop.f32.mrb[63].mxu1  ;;  %8385 = vmatpush3.msra.mxu0 %v4459_v18  ;;  %v8840_v18 = vld [vmem:[%s10749_s5 + $0x1f8] sm:$0xff]  }
0x18f3   : > { %8389 = vmatprep.subr.bf16.mxu0 %v9024_v3 }
0x1985   : > { %v10251_v22 = vpop.f32.mrb[64].mxu1 }
0x1986   : > { %v8403_v23 = vpop.f32.mrb[65].mxu1 }
0x1987   : > { %v4738_v24 = vpop.f32.mrb[66].mxu1 }
0x1988   : > { %v8404_v25 = vpop.f32.mrb[67].mxu1 }
0x1989   : > { %v7241_v25 = vld [vmem:[%s10748_s4 + $0x6] ss:$0 sm:$0xff] }
0x19a5   : > { %v4961_v27 = vpop.f32.mrb[68].mxu1 }
0x19a6   : > { %v4962_v28 = vadd.f32 %v7267_v26, %v4961_v27  ;;  %v8443_v29 = vpop.f32.mrb[69].mxu1 }
0x19a7   : > { %v4537_v30 = vpop.f32.mrb[60].mxu0  ;;  %v4964_v31 = vpop.f32.mrb[70].mxu1 }
0x19a8   : > { %v4538_v33 = vadd.f32 %v4537_v30, %v9324_v14  ;;  %v8383_v34 = vpop.f32.mrb[61].mxu0  ;;  %v8444_v35 = vpop.f32.mrb[71].mxu1  ;;  %8466 = vmatpush3.xpose.msk.msra.mxu1 %vm969_vm1, %v4962_v28 }
0x19a9   : > { %8470 = vmatprep.subr.mxu1 %v9024_v3 }
0x19aa   : > { %v4541_v36 = vsel %vm1046_vm3, %v4538_v33, -inf }
0x19ab   : > { %4542 = vmax.xlane.f32.xlu0 %v4541_v36 }
0x1a38   : > { %v4543_v38 = vpop.xlane.xlu0 %4542 }
0x1a39   : > { %v4544_v39 = vsub.f32 %v4538_v33, %v4543_v38 }
0x1a3b   : > { %v4545_v41 = vmul.f32 1.442695, %v4544_v39  ;;  %v7355_v39 = vld [vmem:[%s10750_s6 + $0x7] ss:$0 sm:$0xff] }
0x1a3d   : > { %8983 = vpow2.f32 %v4545_v41 }
0x1a47   : > { %v8984_v42 = vpop.eup %8983 }
0x1a48   : > { %v4547_v43 = vsel %vm1046_vm3, %v8984_v42, 0.0 }
0x1a49   : > { %4548 = vadd.xlane.f32.xlu1 %v4547_v43 }
0x1ad6   : > { %v4549_v44 = vpop.xlane.xlu1 %4548 }
0x1ad7   : > { %8985 = vrcp.f32 %v4549_v44 }
0x1ae1   : > { %v8986_v45 = vpop.eup %8985 }
0x1ae2   : > { %v4551_v47 = vmul.f32 %v8986_v45, %v8984_v42 }
0x1ae4   : > { %8387 = vmatmul.mubr.msk.f32.vlgmr.msra.gmra.mrb[62].mxu0 %vm1046_vm3, %v4551_v47 }
0x1ae5   : > { %8390 = vmatpush3.bf16.msra.mxu0 %v8815_v46  ;;  %8393 = vmatprep.mubr.msk.bf16.mxu0 %vm9025_vm0, %v9024_v3 }
0x1ae6   : > { %8391 = vmatprep.subr.bf16.mxu0 %v9024_v3 }
0x1ae9   : > { %8392 = vmatpush3.bf16.msra.mxu0 %v8816_v48 }
0x1aea   : > { %8405 = vmatprep.subr.bf16.mxu0 %v9024_v3 }
0x1bb7   : > { %v4621_v49 = vpop.f32.mrb[62].mxu0 }
0x1bb8   : > { %v4625_v51 = vpack.c.bf16 %v4621_v49, %v4621_v49  ;;  %v8388_v52 = vpop.f32.mrb[63].mxu0 }
0x1bba   : > { %8394 = vmatmul.mubr.msk.bf16.vlgmr.msra.gmra.mrb[64].mxu0 %vm969_vm1, %v4625_v51 }
0x1bbb   : > { %8406 = vmatpush3.bf16.msra.mxu0 %v8817_v50  ;;  %8421 = vmatprep.mubr.msk.bf16.mxu0 %vm9025_vm0, %v9024_v3 }
0x1bbc   : > { %8407 = vmatprep.subr.bf16.mxu0 %v9024_v3 }
0x1bbf   : > { %8408 = vmatpush3.bf16.msra.mxu0 %v8818_v53 }
0x1bc0   : > { %8409 = vmatprep.subr.bf16.mxu0 %v9024_v3 }
0x1bc3   : > { %8410 = vmatpush3.bf16.msra.mxu0 %v8819_v54 }
0x1bc4   : > { %8411 = vmatprep.subr.bf16.mxu0 %v9024_v3 }
0x1bc7   : > { %8412 = vmatpush3.bf16.msra.mxu0 %v8820_v55 }
0x1bc8   : > { %8413 = vmatprep.subr.bf16.mxu0 %v9024_v3 }
0x1bcb   : > { %8414 = vmatpush3.bf16.msra.mxu0 %v8821_v56 }
0x1bcc   : > { %8415 = vmatprep.subr.bf16.mxu0 %v9024_v3 }
0x1bcf   : > { %8416 = vmatpush3.bf16.msra.mxu0 %v8822_v57  ;;  %v8841_v57 = vld [vmem:[%s10753_s9 + $0x60] sm:$0xff]  }
0x1bd0   : > { %8417 = vmatprep.subr.bf16.mxu0 %v9024_v3 }
0x1bd3   : > { %8418 = vmatpush3.bf16.msra.mxu0 %v8823_v58 }
0x1bd4   : > { %8419 = vmatprep.subr.bf16.mxu0 %v9024_v3 }
0x1bd7   : > { %8420 = vmatpush3.bf16.msra.mxu0 %v8824_v59  ;;  %v8842_v59 = vld [vmem:[%s10753_s9 + $0x68] sm:$0xff]  }
0x1bd8   : > { %8445 = vmatprep.subr.bf16.mxu0 %v9024_v3 }
0x1bda   : > { %8422 = vmatmul.mubr.bf16.vlgmr.msra.gmra.mrb[68].mxu0 %v10024_v37 }
0x1bdb   : > { %8446 = vmatpush3.bf16.msra.mxu0 %v8825_v63  ;;  %8461 = vmatprep.mubr.msk.bf16.mxu0 %vm9025_vm0, %v9024_v3 }
0x1bdc   : > { %8447 = vmatprep.subr.bf16.mxu0 %v9024_v3 }
0x1bdf   : > { %8448 = vmatpush3.bf16.msra.mxu0 %v8826_v2  ;;  %v8843_v2 = vld [vmem:[%s10775_s25 + $0x1c0] sm:$0xff]  }
0x1be0   : > { %8449 = vmatprep.subr.bf16.mxu0 %v9024_v3 }
0x1be3   : > { %8450 = vmatpush3.bf16.msra.mxu0 %v8827_v4 }
0x1be4   : > { %8451 = vmatprep.subr.bf16.mxu0 %v9024_v3 }
0x1be7   : > { %8452 = vmatpush3.bf16.msra.mxu0 %v8828_v6 }
0x1be8   : > { %8453 = vmatprep.subr.bf16.mxu0 %v9024_v3 }
0x1beb   : > { %8454 = vmatpush3.bf16.msra.mxu0 %v8829_v8  ;;  %v8844_v8 = vld [vmem:[%s10775_s25 + $0x1c8] sm:$0xff]  }
0x1bec   : > { %8455 = vmatprep.subr.bf16.mxu0 %v9024_v3 }
0x1bef   : > { %8456 = vmatpush3.bf16.msra.mxu0 %v8830_v32  ;;  %v8845_v32 = vld [vmem:[%s10775_s25 + $0x1d0] sm:$0xff]  }
0x1bf0   : > { %8457 = vmatprep.subr.bf16.mxu0 %v9024_v3 }
0x1bf3   : > { %8458 = vmatpush3.bf16.msra.mxu0 %v8831_v40  ;;  %v8846_v40 = vld [vmem:[%s10775_s25 + $0x1d8] sm:$0xff]  }
0x1bf4   : > { %8459 = vmatprep.subr.bf16.mxu0 %v9024_v3 }
0x1bf7   : > { %8460 = vmatpush3.bf16.msra.mxu0 %v8832_v9  ;;  %v8847_v9 = vld [vmem:[%s10775_s25 + $0x1e0] sm:$0xff]  }
0x1bf8   : > { %8503 = vmatprep.subr.bf16.mxu0 %v9024_v3 }
0x1bfa   : > { %8462 = vmatmul.mubr.bf16.vlgmr.msra.gmra.mrb[72].mxu0 %v10024_v37 }
0x1bfb   : > { %8504 = vmatpush3.bf16.msra.mxu0 %v8833_v10  ;;  %8519 = vmatprep.mubr.msk.bf16.mxu0 %vm9025_vm0, %v9024_v3  ;;  %v8848_v10 = vld [vmem:[%s10775_s25 + $0x1e8] sm:$0xff]  }
0x1bfc   : > { %8505 = vmatprep.subr.bf16.mxu0 %v9024_v3 }
0x1bff   : > { %8506 = vmatpush3.bf16.msra.mxu0 %v8834_v7  ;;  %v8849_v7 = vld [vmem:[%s10775_s25 + $0x1f0] sm:$0xff]  }
0x1c00   : > { %8507 = vmatprep.subr.bf16.mxu0 %v9024_v3 }
0x1c03   : > { %8508 = vmatpush3.bf16.msra.mxu0 %v8835_v12  ;;  %v8850_v12 = vld [vmem:[%s10775_s25 + $0x1f8] sm:$0xff]  }
0x1c04   : > { %8509 = vmatprep.subr.bf16.mxu0 %v9024_v3 }
0x1c07   : > { %8510 = vmatpush3.bf16.msra.mxu0 %v8836_v13  ;;  %v8851_v13 = vld [vmem:[%s10751_s7 + $0x1c0] sm:$0xff]  }
0x1c08   : > { %8511 = vmatprep.subr.bf16.mxu0 %v9024_v3 }
0x1c0b   : > { %8512 = vmatpush3.bf16.msra.mxu0 %v8837_v15  ;;  %v8852_v15 = vld [vmem:[%s10751_s7 + $0x1c8] sm:$0xff]  }
0x1c0c   : > { %8513 = vmatprep.subr.bf16.mxu0 %v9024_v3 }
0x1c0f   : > { %8514 = vmatpush3.bf16.msra.mxu0 %v8838_v16  ;;  %v8853_v16 = vld [vmem:[%s10751_s7 + $0x1d0] sm:$0xff]  }
0x1c10   : > { %8515 = vmatprep.subr.bf16.mxu0 %v9024_v3 }
0x1c13   : > { %8516 = vmatpush3.bf16.msra.mxu0 %v8839_v17  ;;  %v8854_v17 = vld [vmem:[%s10751_s7 + $0x1d8] sm:$0xff]  }
0x1c14   : > { %8517 = vmatprep.subr.bf16.mxu0 %v9024_v3 }
0x1c17   : > { %8518 = vmatpush3.bf16.msra.mxu0 %v8840_v18  ;;  %v8855_v18 = vld [vmem:[%s10751_s7 + $0x1e0] sm:$0xff]  }
0x1c18   : > { %8543 = vmatprep.subr.mxu0 %v9024_v3 }
0x1c1a   : > { %8520 = vmatmul.mubr.bf16.vlgmr.msra.gmra.mrb[76].mxu0 %v10024_v37 }
0x1c1b   : > { %8545 = vmatprep.mubr.msk.f32.mxu0 %vm9025_vm0, %v9024_v3 }
0x1c8d   : > { %v4680_v19 = vpop.f32.mrb[64].mxu0 }
0x1c8e   : > { %v10381_v20 = vadd.f32 %v10251_v22, %v4680_v19  ;;  %v8395_v21 = vpop.f32.mrb[65].mxu0  ;;  %v7293_v22 = vld [vmem:[%s10752_s8 + $0x6] ss:$0 sm:$0xff]  ;;  %v8856_v19 = vld [vmem:[%s10751_s7 + $0x1e8] sm:$0xff]  }
0x1c8f   : > { %v4683_v23 = vpop.f32.mrb[66].mxu0  ;;  %v8857_v21 = vld [vmem:[%s10751_s7 + $0x1f0] sm:$0xff]  }
0x1c90   : > { %v8396_v24 = vpop.f32.mrb[67].mxu0  ;;  %v8858_v23 = vld [vmem:[%s10751_s7 + $0x1f8] sm:$0xff]  }
0x1cad   : > { %v4848_v26 = vpop.f32.mrb[68].mxu0 }
0x1cae   : > { %v4849_v27 = vadd.f32 %v7241_v25, %v4848_v26  ;;  %v8423_v28 = vpop.f32.mrb[69].mxu0 }
0x1caf   : > { %v4851_v29 = vpop.f32.mrb[70].mxu0 }
0x1cb0   : > { %v5080_v30 = vmul.f32 0.17677669, %v4849_v27  ;;  %v8424_v31 = vpop.f32.mrb[71].mxu0  ;;  %v7329_v29 = vld [vmem:[%s10748_s4 + $0x7] ss:$0 sm:$0xff] }
0x1cb2   : > { %8468 = vmatmul.mubr.msk.f32.vlgmr.msra.gmra.mrb[72].mxu1 %vm969_vm1, %v5080_v30 }
0x1cb3   : > { %8472 = vmatprep.mubr.msk.f32.mxu1 %vm9025_vm0, %v9024_v3 }
0x1ccd   : > { %v5074_v33 = vpop.f32.mrb[72].mxu0 }
0x1cce   : > { %v5075_v34 = vadd.f32 %v7293_v22, %v5074_v33  ;;  %v8463_v35 = vpop.f32.mrb[73].mxu0 }
0x1ccf   : > { %v5077_v36 = vpop.f32.mrb[74].mxu0 }
0x1cd0   : > { %v8464_v38 = vpop.f32.mrb[75].mxu0  ;;  %8471 = vmatpush3.msra.mxu1 %v5075_v34 }
0x1cd1   : > { %8475 = vmatprep.subr.bf16.mxu1 %v9024_v3 }
0x1ced   : > { %v5523_v41 = vpop.f32.mrb[76].mxu0 }
0x1cee   : > { %v5524_v42 = vadd.f32 %v7355_v39, %v5523_v41  ;;  %v8521_v43 = vpop.f32.mrb[77].mxu0 }
0x1cef   : > { %v5526_v44 = vpop.f32.mrb[78].mxu0 }
0x1cf0   : > { %v8522_v45 = vpop.f32.mrb[79].mxu0  ;;  %8544 = vmatpush3.xpose.msk.msra.mxu0 %vm969_vm1, %v5524_v42 }
0x1cf1   : > { %8548 = vmatprep.subr.mxu0 %v9024_v3 }
0x1d85   : > { %v5153_v46 = vpop.f32.mrb[72].mxu1 }
0x1d86   : > { %v5154_v47 = vadd.f32 %v5153_v46, %v9324_v14  ;;  %v8469_v48 = vpop.f32.mrb[73].mxu1 }
0x1d88   : > { %v5157_v49 = vsel %vm1046_vm3, %v5154_v47, -inf }
0x1d89   : > { %5158 = vmax.xlane.f32.xlu0 %v5157_v49 }
0x1e16   : > { %v5159_v50 = vpop.xlane.xlu0 %5158 }
0x1e17   : > { %v5160_v51 = vsub.f32 %v5154_v47, %v5159_v50 }
0x1e19   : > { %v5161_v52 = vmul.f32 1.442695, %v5160_v51 }
0x1e1b   : > { %8987 = vpow2.f32 %v5161_v52 }
0x1e25   : > { %v8988_v53 = vpop.eup %8987 }
0x1e26   : > { %v5163_v54 = vsel %vm1046_vm3, %v8988_v53, 0.0 }
0x1e27   : > { %5164 = vadd.xlane.f32.xlu1 %v5163_v54  ;;  %v8860_v54 = vld [vmem:[%s10753_s9 + $0x78] sm:$0xff]  }
0x1eb4   : > { %v5165_v55 = vpop.xlane.xlu1 %5164 }
0x1eb5   : > { %8989 = vrcp.f32 %v5165_v55 }
0x1ebf   : > { %v8990_v56 = vpop.eup %8989 }
0x1ec0   : > { %v5167_v58 = vmul.f32 %v8990_v56, %v8988_v53  ;;  %v8859_v53 = vld [vmem:[%s10753_s9 + $0x70] sm:$0xff]  }
0x1ec2   : > { %8473 = vmatmul.mubr.msk.f32.vlgmr.msra.gmra.mrb[74].mxu1 %vm1046_vm3, %v5167_v58 }
0x1ec3   : > { %8476 = vmatpush3.bf16.msra.mxu1 %v8841_v57  ;;  %8479 = vmatprep.mubr.msk.bf16.mxu1 %vm9025_vm0, %v9024_v3 }
0x1ec4   : > { %8477 = vmatprep.subr.bf16.mxu1 %v9024_v3 }
0x1ec7   : > { %8478 = vmatpush3.bf16.msra.mxu1 %v8842_v59 }
0x1ec8   : > { %8483 = vmatprep.subr.bf16.mxu1 %v9024_v3 }
0x1f95   : > { %v5237_v63 = vpop.f32.mrb[74].mxu1 }
0x1f96   : > { %v5241_v4 = vpack.c.bf16 %v5237_v63, %v5237_v63  ;;  %v8474_v6 = vpop.f32.mrb[75].mxu1 }
0x1f98   : > { %8480 = vmatmul.mubr.msk.bf16.vlgmr.msra.gmra.mrb[76].mxu1 %vm969_vm1, %v5241_v4 }
0x1f99   : > { %8484 = vmatpush3.bf16.msra.mxu1 %v8843_v2  ;;  %8499 = vmatprep.mubr.msk.bf16.mxu1 %vm9025_vm0, %v9024_v3 }
0x1f9a   : > { %8485 = vmatprep.subr.bf16.mxu1 %v9024_v3 }
0x1f9d   : > { %8486 = vmatpush3.bf16.msra.mxu1 %v8844_v8 }
0x1f9e   : > { %8487 = vmatprep.subr.bf16.mxu1 %v9024_v3 }
0x1fa1   : > { %8488 = vmatpush3.bf16.msra.mxu1 %v8845_v32  ;;  %v8861_v32 = vld [vmem:[%s10757_s13 + $0x100] ss:$16 sps:$4 sm:$0xff]  }
0x1fa2   : > { %8489 = vmatprep.subr.bf16.mxu1 %v9024_v3 }
0x1fa5   : > { %8490 = vmatpush3.bf16.msra.mxu1 %v8846_v40  ;;  %v8864_v40 = vld [vmem:[%s10757_s13 + $0x108] ss:$16 sps:$4 sm:$0xff]  }
0x1fa6   : > { %8491 = vmatprep.subr.bf16.mxu1 %v9024_v3 }
0x1fa9   : > { %8492 = vmatpush3.bf16.msra.mxu1 %v8847_v9  ;;  %v8869_v9 = vld [vmem:[%s10757_s13 + $0x124] ss:$16 sps:$4 sm:$0xff]  }
0x1faa   : > { %8493 = vmatprep.subr.bf16.mxu1 %v9024_v3 }
0x1fad   : > { %8494 = vmatpush3.bf16.msra.mxu1 %v8848_v10  ;;  %v8872_v10 = vld [vmem:[%s10757_s13 + $0x12c] ss:$16 sps:$4 sm:$0xff]  }
0x1fae   : > { %8495 = vmatprep.subr.bf16.mxu1 %v9024_v3 }
0x1fb1   : > { %8496 = vmatpush3.bf16.msra.mxu1 %v8849_v7  ;;  %v8867_v7 = vld [vmem:[%s10757_s13 + $0x120] ss:$16 sps:$4 sm:$0xff]  }
0x1fb2   : > { %8497 = vmatprep.subr.bf16.mxu1 %v9024_v3 }
0x1fb5   : > { %8498 = vmatpush3.bf16.msra.mxu1 %v8850_v12  ;;  %v8870_v12 = vld [vmem:[%s10757_s13 + $0x128] ss:$16 sps:$4 sm:$0xff]  }
0x1fb6   : > { %8523 = vmatprep.subr.bf16.mxu1 %v9024_v3 }
0x1fb8   : > { %8500 = vmatmul.mubr.bf16.vlgmr.msra.gmra.mrb[80].mxu1 %v10024_v37 }
0x1fb9   : > { %8524 = vmatpush3.bf16.msra.mxu1 %v8851_v13  ;;  %8539 = vmatprep.mubr.msk.bf16.mxu1 %vm9025_vm0, %v9024_v3  ;;  %v8875_v13 = vld [vmem:[%s10757_s13 + $0x144] ss:$16 sps:$4 sm:$0xff]  }
0x1fba   : > { %8525 = vmatprep.subr.bf16.mxu1 %v9024_v3 }
0x1fbd   : > { %8526 = vmatpush3.bf16.msra.mxu1 %v8852_v15  ;;  %v8878_v15 = vld [vmem:[%s10757_s13 + $0x14c] ss:$16 sps:$4 sm:$0xff]  }
0x1fbe   : > { %8527 = vmatprep.subr.bf16.mxu1 %v9024_v3 }
0x1fc1   : > { %8528 = vmatpush3.bf16.msra.mxu1 %v8853_v16  ;;  %v8873_v16 = vld [vmem:[%s10757_s13 + $0x140] ss:$16 sps:$4 sm:$0xff]  }
0x1fc2   : > { %8529 = vmatprep.subr.bf16.mxu1 %v9024_v3 }
0x1fc5   : > { %8530 = vmatpush3.bf16.msra.mxu1 %v8854_v17  ;;  %v8876_v17 = vld [vmem:[%s10757_s13 + $0x148] ss:$16 sps:$4 sm:$0xff]  }
0x1fc6   : > { %8531 = vmatprep.subr.bf16.mxu1 %v9024_v3 }
0x1fc9   : > { %8532 = vmatpush3.bf16.msra.mxu1 %v8855_v18 }
0x1fca   : > { %8533 = vmatprep.subr.bf16.mxu1 %v9024_v3 }
0x1fcd   : > { %8534 = vmatpush3.bf16.msra.mxu1 %v8856_v19 }
0x1fce   : > { %8535 = vmatprep.subr.bf16.mxu1 %v9024_v3 }
0x1fd1   : > { %8536 = vmatpush3.bf16.msra.mxu1 %v8857_v21 }
0x1fd2   : > { %8537 = vmatprep.subr.bf16.mxu1 %v9024_v3 }
0x1fd5   : > { %8538 = vmatpush3.bf16.msra.mxu1 %v8858_v23 }
0x1fd8   : > { %8540 = vmatmul.mubr.bf16.vlgmr.msra.gmra.mrb[84].mxu1 %v10024_v37  ;;  %v7381_v37 = vld [vmem:[%s10752_s8 + $0x7] ss:$0 sm:$0xff] }
0x1fd9   : > { %6194 = vmatprep.mubr.bf16.mxu1 %v9027_v62 }
0x206b   : > { %v5296_v24 = vpop.f32.mrb[76].mxu1 }
0x206c   : > { %v5302_v25 = vadd.f32 %v5296_v24, %v10381_v20  ;;  %v8481_v26 = vpop.f32.mrb[77].mxu1  ;;  %v8881_v24 = vld [vmem:[%s10757_s13 + $0x164] ss:$16 sps:$4 sm:$0xff]  }
0x206d   : > { %v5299_v27 = vpop.f32.mrb[78].mxu1  ;;  %v8879_v26 = vld [vmem:[%s10757_s13 + $0x160] ss:$16 sps:$4 sm:$0xff]  }
0x206e   : > { %v8482_v28 = vpop.f32.mrb[79].mxu1  ;;  %v8882_v27 = vld [vmem:[%s10757_s13 + $0x168] ss:$16 sps:$4 sm:$0xff]  }
0x206f   : > { %v8885_v28 = vld [vmem:[%s10757_s13 + $0x180] ss:$16 sps:$4 sm:$0xff]  }
0x208b   : > { %v5410_v30 = vpop.f32.mrb[80].mxu1 }
0x208c   : > { %v5411_v31 = vadd.f32 %v7329_v29, %v5410_v30  ;;  %v8501_v22 = vpop.f32.mrb[81].mxu1  ;;  %v8887_v29 = vld [vmem:[%s10757_s13 + $0x184] ss:$16 sps:$4 sm:$0xff]   ;;  %v8888_v30 = vld [vmem:[%s10757_s13 + $0x188] ss:$16 sps:$4 sm:$0xff]  }
0x208d   : > { %v5413_v33 = vpop.f32.mrb[82].mxu1  ;;  %v8893_v22 = vld [vmem:[%s10757_s13 + $0x1a4] ss:$16 sps:$4 sm:$0xff]  }
0x208e   : > { %v5642_v34 = vmul.f32 0.17677669, %v5411_v31  ;;  %v8502_v35 = vpop.f32.mrb[83].mxu1  ;;  %v8890_v31 = vld [vmem:[%s10757_s13 + $0x18c] ss:$16 sps:$4 sm:$0xff]  }
0x208f   : > { %v8896_v33 = vld [vmem:[%s10757_s13 + $0x1ac] ss:$16 sps:$4 sm:$0xff]   ;;  %v8894_v35 = vld [vmem:[%s10757_s13 + $0x1a8] ss:$16 sps:$4 sm:$0xff]  }
0x2090   : > { %8546 = vmatmul.mubr.msk.f32.vlgmr.msra.gmra.mrb[80].mxu0 %vm969_vm1, %v5642_v34  ;;  %v8891_v34 = vld [vmem:[%s10757_s13 + $0x1a0] ss:$16 sps:$4 sm:$0xff]  }
0x2091   : > { %8550 = vmatprep.mubr.msk.f32.mxu0 %vm9025_vm0, %v9024_v3 }
0x20ab   : > { %v5636_v20 = vpop.f32.mrb[84].mxu1 }
0x20ac   : > { %v5637_v36 = vadd.f32 %v7381_v37, %v5636_v20  ;;  %v8541_v38 = vpop.f32.mrb[85].mxu1  ;;  %v8899_v37 = vld [vmem:[%s10757_s13 + $0x1c4] ss:$16 sps:$4 sm:$0xff]   ;;  %v8902_v20 = vld [vmem:[%s10757_s13 + $0x1cc] ss:$16 sps:$4 sm:$0xff]  }
0x20ad   : > { %v5639_v39 = vpop.f32.mrb[86].mxu1  ;;  %v8900_v38 = vld [vmem:[%s10757_s13 + $0x1c8] ss:$16 sps:$4 sm:$0xff]  }
0x20ae   : > { %v8542_v41 = vpop.f32.mrb[87].mxu1  ;;  %8549 = vmatpush3.msra.mxu0 %v5637_v36  ;;  %v8897_v36 = vld [vmem:[%s10757_s13 + $0x1c0] ss:$16 sps:$4 sm:$0xff]   ;;  %v8905_v39 = vld [vmem:[%s10757_s13 + $0x1e4] ss:$16 sps:$4 sm:$0xff]  }
0x20af   : > { %8553 = vmatprep.subr.bf16.mxu0 %v9024_v3  ;;  %v8908_v41 = vld [vmem:[%s10757_s13 + $0x1ec] ss:$16 sps:$4 sm:$0xff]  }
0x2163   : > { %v5715_v42 = vpop.f32.mrb[80].mxu0 }
0x2164   : > { %v5716_v43 = vadd.f32 %v5715_v42, %v9324_v14  ;;  %v8547_v44 = vpop.f32.mrb[81].mxu0  ;;  %v8903_v42 = vld [vmem:[%s10757_s13 + $0x1e0] ss:$16 sps:$4 sm:$0xff]  }
0x2166   : > { %v5719_v45 = vsel %vm1046_vm3, %v5716_v43, -inf }
0x2167   : > { %5720 = vmax.xlane.f32.xlu0 %v5719_v45 }
0x21f4   : > { %v5721_v46 = vpop.xlane.xlu0 %5720 }
0x21f5   : > { %v5722_v47 = vsub.f32 %v5716_v43, %v5721_v46  ;;  %v8906_v43 = vld [vmem:[%s10757_s13 + $0x1e8] ss:$16 sps:$4 sm:$0xff]  }
0x21f7   : > { %v5723_v48 = vmul.f32 1.442695, %v5722_v47 }
0x21f9   : > { %8991 = vpow2.f32 %v5723_v48  ;;  %v7404_v48 = vld [vmem:[%s10755_s11 + $0x1] ss:$0 sm:$0xff] }
0x2203   : > { %v8992_v49 = vpop.eup %8991 }
0x2204   : > { %v5725_v50 = vsel %vm1046_vm3, %v8992_v49, 0.0 }
0x2205   : > { %5726 = vadd.xlane.f32.xlu1 %v5725_v50  ;;  %v7405_v50 = vld [vmem:[%s10756_s12 + $0x1] ss:$0 sm:$0xff] }
0x2292   : > { %v5727_v51 = vpop.xlane.xlu1 %5726 }
0x2293   : > { %8993 = vrcp.f32 %v5727_v51 }
0x229d   : > { %v8994_v52 = vpop.eup %8993 }
0x229e   : > { %v5729_v14 = vmul.f32 %v8994_v52, %v8992_v49 }
0x22a0   : > { %8551 = vmatmul.mubr.msk.f32.vlgmr.msra.gmra.mrb[82].mxu0 %vm1046_vm3, %v5729_v14  ;;  %v8909_v14 = vld [vmem:[%s10759_s15 + $0x140] sm:$0xff]  }
0x22a1   : > { %8554 = vmatpush3.bf16.msra.mxu0 %v8859_v53  ;;  %8557 = vmatprep.mubr.msk.bf16.mxu0 %vm9025_vm0, %v9024_v3 }
0x22a2   : > { %8555 = vmatprep.subr.bf16.mxu0 %v9024_v3  ;;  %v7401_v3 = vld [vmem:[%s10754_s10 + $0x1] ss:$0 sm:$0xff] }
0x22a5   : > { %8556 = vmatpush3.bf16.msra.mxu0 %v8860_v54  ;;  %v8910_v54 = vld [vmem:[%s10759_s15 + $0x1c0] sm:$0xff]  }
0x2373   : > { %v5799_v55 = vpop.f32.mrb[82].mxu0 }
0x2374   : > { %v5803_v56 = vpack.c.bf16 %v5799_v55, %v5799_v55  ;;  %v8552_v57 = vpop.f32.mrb[83].mxu0  ;;  %v8911_v55 = vld [vmem:[%s10759_s15 + $0x100] sm:$0xff]  }
0x2375   : > { %v8913_v57 = vld [vmem:[%s10759_s15 + $0x148] sm:$0xff]  }
0x2376   : > { %8558 = vmatmul.mubr.msk.bf16.vlgmr.msra.gmra.mrb[84].mxu0 %vm969_vm1, %v5803_v56  ;;  %v8912_v56 = vld [vmem:[%s10759_s15 + $0x180] sm:$0xff]  }
0x2377   : > { %6153 = vmatprep.mubr.bf16.mxu0 %v9027_v62  ;;  %v8863_v62 = vld [vmem:[%s10757_s13 + $0x104] ss:$16 sps:$4 sm:$0xff]  }
0x2378   : > { %6121 = vmatprep.subr.bf16.mxu0 %v8863_v62  ;;  %v8922_v62 = vld [vmem:[%s10759_s15 + $0x1d8] sm:$0xff]  }
0x2379   : > { %6122 = vmatpush1.bf16.msra.mxu0 %v8861_v32  ;;  %v8921_v32 = vld [vmem:[%s10759_s15 + $0x158] sm:$0xff]  }
0x237a   : > { %6123 = vmatprep.subr.bf16.mxu0 %v8869_v9  ;;  %v8925_v9 = vld [vmem:[%s10759_s15 + $0x160] sm:$0xff]  }
0x237d   : > { %6124 = vmatpush1.bf16.msra.mxu0 %v8867_v7  ;;  %v8927_v7 = vld [vmem:[%s10759_s15 + $0x120] sm:$0xff]  }
0x237e   : > { %6125 = vmatprep.subr.bf16.mxu0 %v8875_v13  ;;  %v8929_v13 = vld [vmem:[%s10759_s15 + $0x168] sm:$0xff]  }
0x2381   : > { %6126 = vmatpush1.bf16.msra.mxu0 %v8873_v16  ;;  %v8931_v16 = vld [vmem:[%s10759_s15 + $0x128] sm:$0xff]  }
0x2382   : > { %6127 = vmatprep.subr.bf16.mxu0 %v8881_v24  ;;  %v8937_v24 = vld [vmem:[%s10759_s15 + $0x178] sm:$0xff]  }
0x2385   : > { %6128 = vmatpush1.bf16.msra.mxu0 %v8879_v26  ;;  %v8939_v26 = vld [vmem:[%s10759_s15 + $0x138] sm:$0xff]  }
0x2386   : > { %6129 = vmatprep.subr.bf16.mxu0 %v8887_v29 }
0x2389   : > { %6130 = vmatpush1.bf16.msra.mxu0 %v8885_v28  ;;  %v7438_v28 = vld [vmem:[%s10758_s14 + $0x4] sm:$0xf] }
0x238a   : > { %6131 = vmatprep.subr.bf16.mxu0 %v8893_v22  ;;  %v5944_v29 = vrot.slane %v7438_v28, %v2949_v60  ;;  %v5956_v22 = vrot.slane %v7438_v28, %v2961_v1 }
0x238d   : > { %6132 = vmatpush1.bf16.msra.mxu0 %v8891_v34 }
0x238e   : > { %6133 = vmatprep.subr.bf16.mxu0 %v8899_v37 }
0x2391   : > { %6134 = vmatpush1.bf16.msra.mxu0 %v8897_v36 }
0x2392   : > { %6135 = vmatprep.subr.bf16.mxu0 %v8905_v39 }
0x2395   : > { %6136 = vmatpush1.bf16.msra.mxu0 %v8903_v42 }
0x2396   : > { %7893 = vmatprep.subr.bf16.mxu0 %v8909_v14 }
0x2449   : > { %v5858_v58 = vpop.f32.mrb[84].mxu0 }
0x244a   : > { %v5864_v59 = vadd.f32 %v5858_v58, %v5302_v25  ;;  %v8559_v63 = vpop.f32.mrb[85].mxu0  ;;  %v8884_v25 = vld [vmem:[%s10757_s13 + $0x16c] ss:$16 sps:$4 sm:$0xff]  }
0x244b   : > { %v5861_v2 = vpop.f32.mrb[86].mxu0  ;;  %v8914_v58 = vld [vmem:[%s10759_s15 + $0x1c8] sm:$0xff]  }
0x244c   : > { %v5865_v4 = vadd.f32 %v5864_v59, %v9947_v5  ;;  %v8560_v6 = vpop.f32.mrb[87].mxu0  ;;  %v8866_v5 = vld [vmem:[%s10757_s13 + $0x10c] ss:$16 sps:$4 sm:$0xff]   ;;  %v8917_v2 = vld [vmem:[%s10759_s15 + $0x150] sm:$0xff]  }
0x244d   : > { %6162 = vmatprep.subr.bf16.mxu1 %v8866_v5  ;;  %v8915_v59 = vld [vmem:[%s10759_s15 + $0x108] sm:$0xff]   ;;  %v8920_v6 = vld [vmem:[%s10759_s15 + $0x190] sm:$0xff]   ;;  %v8924_v5 = vld [vmem:[%s10759_s15 + $0x198] sm:$0xff]  }
0x244e   : > { %v10513_v8 = vadd.f32 %v7401_v3, %v5865_v4  ;;  %6163 = vmatpush1.bf16.msra.mxu1 %v8864_v40  ;;  %v8916_v63 = vld [vmem:[%s10759_s15 + $0x188] sm:$0xff]   ;;  %v8918_v3 = vld [vmem:[%s10759_s15 + $0x1d0] sm:$0xff]   ;;  %v8923_v40 = vld [vmem:[%s10759_s15 + $0x118] sm:$0xff]  }
0x244f   : > { %6164 = vmatprep.subr.bf16.mxu1 %v8872_v10  ;;  %v8919_v4 = vld [vmem:[%s10759_s15 + $0x110] sm:$0xff]   ;;  %v8926_v10 = vld [vmem:[%s10759_s15 + $0x1e0] sm:$0xff]  }
0x2450   : > { %5879 = vadd.xlane.f32.xlu0 %v10513_v8 }
0x2452   : > { %6165 = vmatpush1.bf16.msra.mxu1 %v8870_v12  ;;  %v8928_v12 = vld [vmem:[%s10759_s15 + $0x1a0] sm:$0xff]  }
0x2453   : > { %6166 = vmatprep.subr.bf16.mxu1 %v8878_v15  ;;  %v8930_v15 = vld [vmem:[%s10759_s15 + $0x1e8] sm:$0xff]  }
0x2456   : > { %6167 = vmatpush1.bf16.msra.mxu1 %v8876_v17  ;;  %v8932_v17 = vld [vmem:[%s10759_s15 + $0x1a8] sm:$0xff]  }
0x2457   : > { %6168 = vmatprep.subr.bf16.mxu1 %v8884_v25  ;;  %v8938_v25 = vld [vmem:[%s10759_s15 + $0x1f8] sm:$0xff]  }
0x245a   : > { %6169 = vmatpush1.bf16.msra.mxu1 %v8882_v27  ;;  %v8940_v27 = vld [vmem:[%s10759_s15 + $0x1b8] sm:$0xff]  }
0x245b   : > { %6170 = vmatprep.subr.bf16.mxu1 %v8890_v31  ;;  %v5948_v31 = vrot.slane %v7438_v28, %v2953_v0 }
0x245e   : > { %6171 = vmatpush1.bf16.msra.mxu1 %v8888_v30  ;;  %v5952_v30 = vrot.slane %v7438_v28, %v2957_v61 }
0x245f   : > { %6172 = vmatprep.subr.bf16.mxu1 %v8896_v33 }
0x2462   : > { %6173 = vmatpush1.bf16.msra.mxu1 %v8894_v35 }
0x2463   : > { %6174 = vmatprep.subr.bf16.mxu1 %v8902_v20 }
0x2466   : > { %6175 = vmatpush1.bf16.msra.mxu1 %v8900_v38 }
0x2467   : > { %6176 = vmatprep.subr.bf16.mxu1 %v8908_v41 }
0x246a   : > { %6177 = vmatpush1.bf16.msra.mxu1 %v8906_v43 }
0x246b   : > { %7915 = vmatprep.subr.bf16.mxu1 %v8910_v54 }
0x24dd   : > { %v5880_v18 = vpop.xlane.xlu0 %5879 }
0x24de   : > { %v5881_v19 = vmul.f32 0.0078125, %v5880_v18  ;;  %v8933_v18 = vld [vmem:[%s10759_s15 + $0x170] sm:$0xff]  }
0x24e0   : > { %v5882_v21 = vsub.f32 %v10513_v8, %v5881_v19  ;;  %v8934_v19 = vld [vmem:[%s10759_s15 + $0x1f0] sm:$0xff]  }
0x24e2   : > { %v5883_v23 = vmul.f32 %v5882_v21, %v5882_v21 }
0x24e4   : > { %5884 = vadd.xlane.f32.xlu1 %v5883_v23  ;;  %v8936_v23 = vld [vmem:[%s10759_s15 + $0x1b0] sm:$0xff]  }
0x2571   : > { %v5885_v44 = vpop.xlane.xlu1 %5884 }
0x2572   : > { %v5886_v45 = vmul.f32 0.0078125, %v5885_v44 }
0x2574   : > { %v5887_v46 = vadd.f32 1e-05, %v5886_v45 }
0x2576   : > { %8995 = vrsqrt.f32 %v5887_v46 }
0x2580   : > { %v8996_v47 = vpop.eup %8995 }
0x2581   : > { %v5889_v49 = vmul.f32 %v8996_v47, %v5882_v21  ;;  %v8935_v21 = vld [vmem:[%s10759_s15 + $0x130] sm:$0xff]  }
0x2583   : > { %v5896_v51 = vmul.f32 %v7404_v48, %v5889_v49 }
0x2585   : > { %v5903_v52 = vadd.f32 %v7405_v50, %v5896_v51 }
0x2587   : > { %v5904_v53 = vpack.c.bf16 %v5903_v52, %v5903_v52 }
0x2589   : > { %6154 = vmatmul.mubr.bf16.vlgmr.msra.gmra.mrb[88].mxu0 %v5904_v53  ;;  %6195 = vmatmul.mubr.bf16.vlgmr.msra.gmra.mrb[88].mxu1 %v5904_v53 }
0x258a   : > { %7894 = vmatpush3.bf16.msra.mxu0 %v8911_v55  ;;  %7916 = vmatpush3.bf16.msra.mxu1 %v8912_v56 }
0x258b   : > { %7895 = vmatprep.subr.bf16.mxu0 %v8913_v57  ;;  %7917 = vmatprep.subr.bf16.mxu1 %v8914_v58 }
0x258e   : > { %7896 = vmatpush3.bf16.msra.mxu0 %v8915_v59  ;;  %7918 = vmatpush3.bf16.msra.mxu1 %v8916_v63 }
0x258f   : > { %7897 = vmatprep.subr.bf16.mxu0 %v8917_v2  ;;  %7919 = vmatprep.subr.bf16.mxu1 %v8918_v3 }
0x2592   : > { %7898 = vmatpush3.bf16.msra.mxu0 %v8919_v4  ;;  %7920 = vmatpush3.bf16.msra.mxu1 %v8920_v6 }
0x2593   : > { %7899 = vmatprep.subr.bf16.mxu0 %v8921_v32  ;;  %7921 = vmatprep.subr.bf16.mxu1 %v8922_v62 }
0x2596   : > { %7900 = vmatpush3.bf16.msra.mxu0 %v8923_v40  ;;  %7922 = vmatpush3.bf16.msra.mxu1 %v8924_v5 }
0x2597   : > { %7901 = vmatprep.subr.bf16.mxu0 %v8925_v9  ;;  %7923 = vmatprep.subr.bf16.mxu1 %v8926_v10  ;;  %v7540_v9 = vld [vmem:[%s10760_s16 + $0x1] ss:$0 sm:$0xff] }
0x259a   : > { %7902 = vmatpush3.bf16.msra.mxu0 %v8927_v7  ;;  %7924 = vmatpush3.bf16.msra.mxu1 %v8928_v12 }
0x259b   : > { %7903 = vmatprep.subr.bf16.mxu0 %v8929_v13  ;;  %7925 = vmatprep.subr.bf16.mxu1 %v8930_v15 }
0x259e   : > { %7904 = vmatpush3.bf16.msra.mxu0 %v8931_v16  ;;  %7926 = vmatpush3.bf16.msra.mxu1 %v8932_v17 }
0x259f   : > { %7905 = vmatprep.subr.bf16.mxu0 %v8933_v18  ;;  %7927 = vmatprep.subr.bf16.mxu1 %v8934_v19 }
0x25a2   : > { %7906 = vmatpush3.bf16.msra.mxu0 %v8935_v21  ;;  %7928 = vmatpush3.bf16.msra.mxu1 %v8936_v23 }
0x25a3   : > { %7907 = vmatprep.subr.bf16.mxu0 %v8937_v24  ;;  %7929 = vmatprep.subr.bf16.mxu1 %v8938_v25 }
0x25a6   : > { %7908 = vmatpush3.bf16.msra.mxu0 %v8939_v26  ;;  %7930 = vmatpush3.bf16.msra.mxu1 %v8940_v27 }
0x265c   : > { %v6155_v33 = vpop.f32.mrb[88].mxu0  ;;  %v6196_v34 = vpop.f32.mrb[88].mxu1 }
0x265d   : > { %v6156_v35 = vadd.f32 %v6155_v33, %v5944_v29  ;;  %v6197_v37 = vadd.f32 %v6196_v34, %v5952_v30  ;;  %v6157_v20 = vpop.f32.mrb[89].mxu0  ;;  %v6198_v36 = vpop.f32.mrb[89].mxu1 }
0x265e   : > { %v6158_v38 = vadd.f32 %v6157_v20, %v5948_v31  ;;  %v6199_v39 = vadd.f32 %v6198_v36, %v5956_v22  ;;  %v6159_v41 = vpop.f32.mrb[90].mxu0  ;;  %v6200_v42 = vpop.f32.mrb[90].mxu1  ;;  %v7573_v22 = vld [vmem:[%s10761_s17] ss:$0 sm:$0xff] }
0x265f   : > { %v7471_v60 = vmul.f32 -1.702, %v6156_v35  ;;  %v7473_v43 = vmul.f32 -1.702, %v6197_v37  ;;  %v6160_v44 = vpop.f32.mrb[91].mxu0  ;;  %v6201_v61 = vpop.f32.mrb[91].mxu1 }
0x2660   : > { %v7472_v45 = vmul.f32 -1.702, %v6158_v38  ;;  %v7474_v46 = vmul.f32 -1.702, %v6199_v39 }
0x2661   : > { %v6211_v0 = vmul.f32 1.442695, %v7471_v60  ;;  %v6215_v47 = vmul.f32 1.442695, %v7473_v43 }
0x2662   : > { %v6213_v11 = vmul.f32 1.442695, %v7472_v45  ;;  %v6217_v1 = vmul.f32 1.442695, %v7474_v46 }
0x2663   : > { %8997 = vpow2.f32 %v6211_v0 }
0x2664   : > { %8999 = vpow2.f32 %v6215_v47 }
0x2665   : > { %9001 = vpow2.f32 %v6213_v11 }
0x2666   : > { %9003 = vpow2.f32 %v6217_v1 }
0x266d   : > { %v8998_v48 = vpop.eup %8997 }
0x266e   : > { %v9000_v49 = vpop.eup %8999  ;;  %v6219_v50 = vadd.f32 1.0, %v8998_v48 }
0x266f   : > { %v9002_v51 = vpop.eup %9001  ;;  %v6221_v52 = vadd.f32 1.0, %v9000_v49 }
0x2670   : > { %v9004_v53 = vpop.eup %9003  ;;  %9005 = vrcp.f32 %v6219_v50  ;;  %v6220_v14 = vadd.f32 1.0, %v9002_v51 }
0x2671   : > { %9007 = vrcp.f32 %v6221_v52  ;;  %v6222_v54 = vadd.f32 1.0, %v9004_v53 }
0x2672   : > { %9009 = vrcp.f32 %v6220_v14 }
0x2673   : > { %9011 = vrcp.f32 %v6222_v54 }
0x267a   : > { %v9006_v55 = vpop.eup %9005 }
0x267b   : > { %v9008_v56 = vpop.eup %9007  ;;  %v6231_v58 = vmul.f32 %v9006_v55, %v6156_v35 }
0x267c   : > { %v9010_v57 = vpop.eup %9009  ;;  %v6233_v63 = vmul.f32 %v9008_v56, %v6197_v37 }
0x267d   : > { %v9012_v59 = vpop.eup %9011  ;;  %v6232_v2 = vmul.f32 %v9010_v57, %v6158_v38  ;;  %v6235_v6 = vpack.c.bf16 %v6231_v58, %v6231_v58 }
0x267e   : > { %v6234_v3 = vmul.f32 %v9012_v59, %v6199_v39  ;;  %v6237_v62 = vpack.c.bf16 %v6233_v63, %v6233_v63 }
0x267f   : > { %v6236_v4 = vpack.c.bf16 %v6232_v2, %v6232_v2 }
0x2680   : > { %v6238_v32 = vpack.c.bf16 %v6234_v3, %v6234_v3 }
0x2681   : > { %6536 = vmatprep.mubr.bf16.mxu0 %v6236_v4 }
0x2682   : > { %6576 = vmatprep.mubr.bf16.mxu1 %v6238_v32  ;;  %6537 = vmatmul.mubr.bf16.vlgmr.msra.gmra.mrb[92].mxu0 %v6235_v6 }
0x2683   : > { %6577 = vmatmul.mubr.bf16.vlgmr.msra.gmra.mrb[92].mxu1 %v6237_v62 }
0x2755   : > { %v7909_v40 = vpop.f32.mrb[92].mxu0 }
0x2756   : > { %v7931_v5 = vpop.f32.mrb[92].mxu1  ;;  %v7910_v10 = vpop.f32.mrb[93].mxu0 }
0x2757   : > { %v7911_v7 = vadd.f32 %v7910_v10, %v7909_v40  ;;  %v7932_v12 = vpop.f32.mrb[93].mxu1  ;;  %v7912_v13 = vpop.f32.mrb[94].mxu0 }
0x2758   : > { %v7933_v15 = vadd.f32 %v7932_v12, %v7931_v5  ;;  %v7934_v16 = vpop.f32.mrb[94].mxu1  ;;  %v7913_v17 = vpop.f32.mrb[95].mxu0 }
0x2759   : > { %v6539_v18 = vadd.f32 %v7911_v7, %v7540_v9  ;;  %v7935_v19 = vpop.f32.mrb[95].mxu1 }
0x275b   : > { %v6579_v21 = vadd.f32 %v7933_v15, %v6539_v18 }
0x275d   : > { %v6584_v23 = vadd.f32 %v6579_v21, %v10513_v8  ;;  %v7574_v8 = vld [vmem:[%s10762_s18] ss:$0 sm:$0xff] }
0x275f   : > { %6587 = vadd.xlane.f32.xlu0 %v6584_v23 }
0x27ec   : > { %v6588_v24 = vpop.xlane.xlu0 %6587 }
0x27ed   : > { %v6589_v25 = vmul.f32 0.0078125, %v6588_v24 }
0x27ef   : > { %v6590_v26 = vsub.f32 %v6584_v23, %v6589_v25 }
0x27f1   : > { %v6591_v27 = vmul.f32 %v6590_v26, %v6590_v26 }
0x27f3   : > { %6592 = vadd.xlane.f32.xlu1 %v6591_v27 }
0x2880   : > { %v6593_v28 = vpop.xlane.xlu1 %6592 }
0x2881   : > { %v6594_v29 = vmul.f32 0.0078125, %v6593_v28 }
0x2883   : > { %v6595_v30 = vadd.f32 1e-05, %v6594_v29 }
0x2885   : > { %9013 = vrsqrt.f32 %v6595_v30 }
0x288f   : > { %v9014_v31 = vpop.eup %9013 }
0x2890   : > { %v6597_v33 = vmul.f32 %v9014_v31, %v6590_v26 }
0x2892   : > { %v6604_v34 = vmul.f32 %v7573_v22, %v6597_v33 }
0x2894   : > { %v6611_v35 = vadd.f32 %v7574_v8, %v6604_v34 }
0x2896   : > { %6612 = vst [vmem:[%s597_s23] sm:$0xff] %v6611_v35 }
0x2897 PF: > { %s10779_s24 = sld [smem:[#allocation2_spill]] }
0x289d   : > { %s29_s0 = sadd.s32 1, %s10779_s24  }
0x289e   : > { %p26_p4 = scmp.ge.s32.totalorder %s29_s0, 4  }
0x28a0   :  { %28 = sbr.rel (!%p26_p4) target bundleno = 5 (0x5), region = 184 }

</bundles_post_ra>
